<compile_context>
chip_gen: v7x
topology: tpu7x:2x2x1
jax: 0.10.0
libtpu: 0.0.40
codegen_flags: <defaults>
</compile_context>

<pallas_src>
import functools

import jax
import jax.numpy as jnp
from jax.experimental import pallas as pl
from jax.experimental.pallas import tpu as pltpu


# ----------------------------- model config -------------------------------- #
B, S = 2, 16
H, N_HEADS, FFN = 64, 4, 128
D_HEAD = H // N_HEADS
N_LAYERS = 2
VOCAB, MAX_POS = 50, 64
OUT_CLASS = 4
LN_EPS = 1e-5


# ----------------------------- in-kernel helpers --------------------------- #

def _gelu_tanh(x):
    # TODO(synk): HF RoBERTa uses exact (erf) GELU; tanh approximation used here
    # for robust Mosaic lowering.
    return 0.5 * x * (1.0 + jnp.tanh(0.7978845608028654 * (x + 0.044715 * x * x * x)))


def _layernorm(x, g, b, eps):
    mu = jnp.mean(x, axis=-1, keepdims=True)
    xc = x - mu
    var = jnp.mean(xc * xc, axis=-1, keepdims=True)
    return xc * jax.lax.rsqrt(var + eps) * g + b


# ----------------------------- fused kernel -------------------------------- #

def encoder_kernel(x_ref, mask_ref, wqkv_ref, wo_ref, w1_ref, w2_ref,
                   vec_ref, misc_ref, w_out_ref, o_ref, *,
                   n_layers, n_heads, d_head, n_batch, seq_len, eps):
    """Single grid step: full encoder + mean pool + classifier, all in VMEM."""
    Hh = n_heads * d_head
    ffn = w1_ref.shape[-1]
    bs = n_batch * seq_len
    n_class = o_ref.shape[-1]

    x = x_ref[...]                 # [B*S, H]   f32 embedded tokens
    mask = mask_ref[...]           # [B*S, B*S] f32 block-diag additive mask
    misc = misc_ref[...]           # [3+B, max(H,B*S)] f32

    # embedding layernorm (no residual)
    x = _layernorm(x, misc[0:1, 0:Hh], misc[1:2, 0:Hh], eps)

    for l in range(n_layers):
        wqkv = wqkv_ref[l]         # [H, 3H] bf16 (Q cols pre-scaled by 1/sqrt(d))
        wo = wo_ref[l]             # [H, H]  bf16
        w1 = w1_ref[l]             # [H, F]  bf16
        w2 = w2_ref[l]             # [F, H]  bf16
        vec = vec_ref[l]           # [8, 3H] f32 packed 1-D params
        bqkv = vec[0:1, :]         # [1, 3H] (K section zero: softmax-invariant)
        bo = vec[1:2, 0:Hh]
        g1 = vec[2:3, 0:Hh]
        be1 = vec[3:4, 0:Hh]
        b1 = vec[4:5, 0:ffn]
        b2 = vec[5:6, 0:Hh]
        g2 = vec[6:7, 0:Hh]
        be2 = vec[7:8, 0:Hh]

        resid = x

        # --- fused QKV projection: one matmul + one bias add ---
        qkv = jnp.dot(x.astype(jnp.bfloat16), wqkv,
                      preferred_element_type=jnp.float32) + bqkv      # [B*S, 3H]
        q = qkv[:, 0:Hh].astype(jnp.bfloat16)
        k = qkv[:, Hh:2 * Hh].astype(jnp.bfloat16)
        v = qkv[:, 2 * Hh:3 * Hh].astype(jnp.bfloat16)

        # --- per-head attention over the collapsed batch (block-diag mask) ---
        ctx_heads = []
        for h in range(n_heads):
            lo, hi = h * d_head, (h + 1) * d_head
            s = jax.lax.dot_general(
                q[:, lo:hi], k[:, lo:hi],
                (((1,), (1,)), ((), ())),
                preferred_element_type=jnp.float32)                   # [BS, BS]
            s = s + mask
            s = s - jnp.max(s, axis=-1, keepdims=True)
            p = jnp.exp(s)
            p = p * pl.reciprocal(jnp.sum(p, axis=-1, keepdims=True), approx=True)
            ctx_heads.append(jnp.dot(p.astype(jnp.bfloat16), v[:, lo:hi],
                                     preferred_element_type=jnp.float32))  # [BS, d]
        ctx = jnp.concatenate(ctx_heads, axis=-1)                     # [BS, H]

        # --- single out-projection merges heads ---
        attn = jnp.dot(ctx.astype(jnp.bfloat16), wo,
                       preferred_element_type=jnp.float32) + bo
        x = _layernorm(attn + resid, g1, be1, eps)

        # --- fused FFN: matmul + GELU + matmul + residual LN ---
        ff = jnp.dot(x.astype(jnp.bfloat16), w1,
                     preferred_element_type=jnp.float32) + b1          # [BS, F]
        ff = _gelu_tanh(ff)
        ff = jnp.dot(ff.astype(jnp.bfloat16), w2,
                     preferred_element_type=jnp.float32) + b2          # [BS, H]
        x = _layernorm(ff + x, g2, be2, eps)

    # --- mean pool over sequence via block-diag (1/S) matrix on the MXU ---
    # (matches torch.mean(dim=1): unmasked mean, padded positions included)
    pool = misc[3:3 + n_batch, 0:bs]                                   # [B, B*S]
    pooled = jnp.dot(pool, x, preferred_element_type=jnp.float32)      # [B, H]

    logits = jnp.dot(pooled, w_out_ref[...],
                     preferred_element_type=jnp.float32) + misc[2:3, 0:n_class]
    o_ref[...] = logits                                                # [B, C]


# ----------------------------- wrapper ------------------------------------- #

def speech_recognition_forward(params, input_ids, attention_mask):
    Bb, Ss = input_ids.shape
    Hh = params["word_emb"].shape[1]
    nH = N_HEADS
    d = Hh // nH
    n_layers = len(params["layers"])
    n_class = params["w_out"].shape[1]
    bs = Bb * Ss
    scale = 1.0 / (d ** 0.5)

    # embedding gather + sum stays in plain JAX (glue); LN happens in-kernel
    x = (params["word_emb"][input_ids]
         + params["pos_emb"][jnp.arange(Ss)][None, :, :]
         + params["type_emb"][0][None, None, :]).astype(jnp.float32)   # [B, S, H]
    x = x.reshape(bs, Hh)

    # block-diagonal additive attention mask over the collapsed batch:
    # 0 where (same batch AND key attended), -1e9 otherwise
    rowb = jnp.repeat(jnp.arange(Bb), Ss)
    attn_ok = attention_mask.reshape(-1).astype(jnp.float32) > 0.5
    mask2d = jnp.where((rowb[:, None] == rowb[None, :]) & attn_ok[None, :],
                       0.0, -1e9).astype(jnp.float32)                  # [B*S, B*S]

    # --- pack weights: matrices stacked over layers ---
    wqkv_all = jnp.stack([
        jnp.concatenate([lyr["wq"] * scale, lyr["wk"], lyr["wv"]], axis=1)
        for lyr in params["layers"]]).astype(jnp.bfloat16)             # [L, H, 3H]
    wo_all = jnp.stack([lyr["wo"] for lyr in params["layers"]]).astype(jnp.bfloat16)
    w1_all = jnp.stack([lyr["w1"] for lyr in params["layers"]]).astype(jnp.bfloat16)
    w2_all = jnp.stack([lyr["w2"] for lyr in params["layers"]]).astype(jnp.bfloat16)

    # --- pack all per-layer 1-D params into one [L, 8, 3H] f32 slab ---
    vw = 3 * Hh

    def pad_row(v):
        return jnp.pad(v, (0, vw - v.shape[0]))

    vec_rows = []
    for lyr in params["layers"]:
        # K bias dropped (zeros): softmax is invariant to per-row score constants.
        bqkv = jnp.concatenate([lyr["bq"] * scale,
                                jnp.zeros_like(lyr["bk"]),
                                lyr["bv"]])
        vec_rows.append(jnp.stack([
            bqkv, pad_row(lyr["bo"]),
            pad_row(lyr["ln1_g"]), pad_row(lyr["ln1_b"]),
            pad_row(lyr["b1"]), pad_row(lyr["b2"]),
            pad_row(lyr["ln2_g"]), pad_row(lyr["ln2_b"]),
        ]))
    vec_all = jnp.stack(vec_rows).astype(jnp.float32)                  # [L, 8, 3H]

    # --- misc slab: emb LN gamma/beta, classifier bias, mean-pool matrix ---
    mw = max(Hh, bs)

    def pad_m(v):
        return jnp.pad(v, (0, mw - v.shape[0]))

    pool = jnp.repeat(jnp.eye(Bb, dtype=jnp.float32), Ss, axis=1) / Ss  # [B, B*S]
    misc = jnp.concatenate([
        jnp.stack([pad_m(params["emb_ln_g"]), pad_m(params["emb_ln_b"]),
                   pad_m(params["b_out"])]),
        jnp.pad(pool, ((0, 0), (0, mw - bs))),
    ], axis=0).astype(jnp.float32)                                     # [3+B, mw]

    w_out = params["w_out"].astype(jnp.float32)                        # [H, C]

    kernel = functools.partial(
        encoder_kernel, n_layers=n_layers, n_heads=nH, d_head=d,
        n_batch=Bb, seq_len=Ss, eps=LN_EPS)

    inputs = [x, mask2d, wqkv_all, wo_all, w1_all, w2_all, vec_all, misc, w_out]

    def full_spec(a):
        return pl.BlockSpec(tuple(a.shape), lambda i, _n=a.ndim: (0,) * _n)

    logits = pl.pallas_call(
        kernel,
        out_shape=jax.ShapeDtypeStruct((Bb, n_class), jnp.float32),
        grid=(1,),
        in_specs=[full_spec(a) for a in inputs],
        out_specs=pl.BlockSpec((Bb, n_class), lambda i: (0, 0)),
        compiler_params=pltpu.CompilerParams(
            dimension_semantics=("arbitrary",)),
    )(*inputs)
    return logits


# ----------------------------- params -------------------------------------- #

def init_params(key):
    scale = 0.02
    keys = iter(jax.random.split(key, 64))

    def rnd(shape):
        return (scale * jax.random.normal(next(keys), shape)).astype(jnp.float32)

    params = {
        "word_emb": rnd((VOCAB, H)),
        "pos_emb": rnd((MAX_POS, H)),
        "type_emb": rnd((1, H)),
        "emb_ln_g": jnp.ones((H,), jnp.float32),
        "emb_ln_b": jnp.zeros((H,), jnp.float32),
        "layers": [],
        "w_out": rnd((H, OUT_CLASS)),
        "b_out": rnd((OUT_CLASS,)),
    }
    for _ in range(N_LAYERS):
        params["layers"].append({
            "wq": rnd((H, H)), "bq": rnd((H,)),
            "wk": rnd((H, H)), "bk": rnd((H,)),
            "wv": rnd((H, H)), "bv": rnd((H,)),
            "wo": rnd((H, H)), "bo": rnd((H,)),
            "ln1_g": jnp.ones((H,), jnp.float32), "ln1_b": jnp.zeros((H,), jnp.float32),
            "w1": rnd((H, FFN)), "b1": rnd((FFN,)),
            "w2": rnd((FFN, H)), "b2": rnd((H,)),
            "ln2_g": jnp.ones((H,), jnp.float32), "ln2_b": jnp.zeros((H,), jnp.float32),
        })
    return params


# ----------------------------- main ----------------------------------------- #

if __name__ == "__main__":
    key = jax.random.PRNGKey(0)
    k_param, k_ids = jax.random.split(key)

    params = init_params(k_param)
    input_ids = jax.random.randint(k_ids, (B, S), 0, VOCAB, dtype=jnp.int32)
    lengths = jnp.array([S, S - 4], dtype=jnp.int32)
    attention_mask = (jnp.arange(S)[None, :] < lengths[:, None]).astype(jnp.int32)

    fwd = jax.jit(speech_recognition_forward)
    logits = jax.block_until_ready(fwd(params, input_ids, attention_mask))

    assert logits.shape == (B, OUT_CLASS)
    assert bool(jnp.all(jnp.isfinite(logits)))
    print("KERNEL_OK")
</pallas_src>

<mosaic_0001>
module attributes {stable_mosaic.version = 11 : i64} {
  func.func @encoder_kernel(%arg0: i32, %arg1: memref<32x64xf32, #tpu.memory_space<vmem>>, %arg2: memref<32x32xf32, #tpu.memory_space<vmem>>, %arg3: memref<2x64x192xbf16, #tpu.memory_space<vmem>>, %arg4: memref<2x64x64xbf16, #tpu.memory_space<vmem>>, %arg5: memref<2x64x128xbf16, #tpu.memory_space<vmem>>, %arg6: memref<2x128x64xbf16, #tpu.memory_space<vmem>>, %arg7: memref<2x8x192xf32, #tpu.memory_space<vmem>>, %arg8: memref<5x64xf32, #tpu.memory_space<vmem>>, %arg9: memref<64x4xf32, #tpu.memory_space<vmem>>, %arg10: memref<2x4xf32, #tpu.memory_space<vmem>>) attributes {dimension_semantics = [#tpu.dimension_semantics<arbitrary>], iteration_bounds = array<i64: 1>, scalar_prefetch = 0 : i64, scratch_operands = 0 : i64, tpu.core_type = #tpu.core_type<tc>, window_params = [{pipeline_mode = #tpu.pipeline_mode<synchronous>, transform_indices = @transform_0, window_bounds = array<i64: 32, 64>}, {pipeline_mode = #tpu.pipeline_mode<synchronous>, transform_indices = @transform_1, window_bounds = array<i64: 32, 32>}, {pipeline_mode = #tpu.pipeline_mode<synchronous>, transform_indices = @transform_2, window_bounds = array<i64: 2, 64, 192>}, {pipeline_mode = #tpu.pipeline_mode<synchronous>, transform_indices = @transform_3, window_bounds = array<i64: 2, 64, 64>}, {pipeline_mode = #tpu.pipeline_mode<synchronous>, transform_indices = @transform_4, window_bounds = array<i64: 2, 64, 128>}, {pipeline_mode = #tpu.pipeline_mode<synchronous>, transform_indices = @transform_5, window_bounds = array<i64: 2, 128, 64>}, {pipeline_mode = #tpu.pipeline_mode<synchronous>, transform_indices = @transform_6, window_bounds = array<i64: 2, 8, 192>}, {pipeline_mode = #tpu.pipeline_mode<synchronous>, transform_indices = @transform_7, window_bounds = array<i64: 5, 64>}, {pipeline_mode = #tpu.pipeline_mode<synchronous>, transform_indices = @transform_8, window_bounds = array<i64: 64, 4>}, {pipeline_mode = #tpu.pipeline_mode<synchronous>, transform_indices = @transform_9, window_bounds = array<i64: 2, 4>}]} {
    %c0 = arith.constant 0 : index
    %c0_0 = arith.constant 0 : index
    %0 = vector.load %arg1[%c0, %c0_0] : memref<32x64xf32, #tpu.memory_space<vmem>>, vector<32x64xf32>
    %c0_1 = arith.constant 0 : index
    %c0_2 = arith.constant 0 : index
    %1 = vector.load %arg2[%c0_1, %c0_2] : memref<32x32xf32, #tpu.memory_space<vmem>>, vector<32x32xf32>
    %c0_3 = arith.constant 0 : index
    %c0_4 = arith.constant 0 : index
    %2 = vector.load %arg8[%c0_3, %c0_4] : memref<5x64xf32, #tpu.memory_space<vmem>>, vector<5x64xf32>
    %3 = vector.extract_strided_slice %2 {offsets = [0, 0], sizes = [1, 64], strides = [1, 1]} : vector<5x64xf32> to vector<1x64xf32>
    %4 = vector.extract_strided_slice %2 {offsets = [1, 0], sizes = [1, 64], strides = [1, 1]} : vector<5x64xf32> to vector<1x64xf32>
    %cst = arith.constant dense<0.000000e+00> : vector<32xf32>
    %5 = vector.multi_reduction <add>, %0, %cst [1] : vector<32x64xf32> to vector<32xf32>
    %6 = vector.shape_cast %5 : vector<32xf32> to vector<32x1xf32>
    %cst_5 = arith.constant 6.400000e+01 : f32
    %7 = vector.broadcast %cst_5 : f32 to vector<32x1xf32>
    %8 = arith.divf %6, %7 : vector<32x1xf32>
    %9 = vector.broadcast %8 : vector<32x1xf32> to vector<32x64xf32>
    %10 = arith.subf %0, %9 : vector<32x64xf32>
    %11 = arith.mulf %10, %10 : vector<32x64xf32>
    %cst_6 = arith.constant dense<0.000000e+00> : vector<32xf32>
    %12 = vector.multi_reduction <add>, %11, %cst_6 [1] : vector<32x64xf32> to vector<32xf32>
    %13 = vector.shape_cast %12 : vector<32xf32> to vector<32x1xf32>
    %cst_7 = arith.constant 6.400000e+01 : f32
    %14 = vector.broadcast %cst_7 : f32 to vector<32x1xf32>
    %15 = arith.divf %13, %14 : vector<32x1xf32>
    %cst_8 = arith.constant 9.99999974E-6 : f32
    %16 = vector.broadcast %cst_8 : f32 to vector<32x1xf32>
    %17 = arith.addf %15, %16 : vector<32x1xf32>
    %18 = math.rsqrt %17 : vector<32x1xf32>
    %19 = vector.broadcast %18 : vector<32x1xf32> to vector<32x64xf32>
    %20 = arith.mulf %10, %19 : vector<32x64xf32>
    %21 = vector.broadcast %3 : vector<1x64xf32> to vector<32x64xf32>
    %22 = arith.mulf %20, %21 : vector<32x64xf32>
    %23 = vector.broadcast %4 : vector<1x64xf32> to vector<32x64xf32>
    %24 = arith.addf %22, %23 : vector<32x64xf32>
    %c0_9 = arith.constant 0 : index
    %c0_10 = arith.constant 0 : index
    %c0_11 = arith.constant 0 : index
    %25 = vector.load %arg3[%c0_9, %c0_10, %c0_11] : memref<2x64x192xbf16, #tpu.memory_space<vmem>>, vector<1x64x192xbf16>
    %26 = vector.shape_cast %25 : vector<1x64x192xbf16> to vector<64x192xbf16>
    %c0_12 = arith.constant 0 : index
    %c0_13 = arith.constant 0 : index
    %c0_14 = arith.constant 0 : index
    %27 = vector.load %arg4[%c0_12, %c0_13, %c0_14] : memref<2x64x64xbf16, #tpu.memory_space<vmem>>, vector<1x64x64xbf16>
    %28 = vector.shape_cast %27 : vector<1x64x64xbf16> to vector<64x64xbf16>
    %c0_15 = arith.constant 0 : index
    %c0_16 = arith.constant 0 : index
    %c0_17 = arith.constant 0 : index
    %29 = vector.load %arg5[%c0_15, %c0_16, %c0_17] : memref<2x64x128xbf16, #tpu.memory_space<vmem>>, vector<1x64x128xbf16>
    %30 = vector.shape_cast %29 : vector<1x64x128xbf16> to vector<64x128xbf16>
    %c0_18 = arith.constant 0 : index
    %c0_19 = arith.constant 0 : index
    %c0_20 = arith.constant 0 : index
    %31 = vector.load %arg6[%c0_18, %c0_19, %c0_20] : memref<2x128x64xbf16, #tpu.memory_space<vmem>>, vector<1x128x64xbf16>
    %32 = vector.shape_cast %31 : vector<1x128x64xbf16> to vector<128x64xbf16>
    %c0_21 = arith.constant 0 : index
    %c0_22 = arith.constant 0 : index
    %c0_23 = arith.constant 0 : index
    %33 = vector.load %arg7[%c0_21, %c0_22, %c0_23] : memref<2x8x192xf32, #tpu.memory_space<vmem>>, vector<1x8x192xf32>
    %34 = vector.shape_cast %33 : vector<1x8x192xf32> to vector<8x192xf32>
    %35 = vector.extract_strided_slice %34 {offsets = [0, 0], sizes = [1, 192], strides = [1, 1]} : vector<8x192xf32> to vector<1x192xf32>
    %36 = vector.extract_strided_slice %34 {offsets = [1, 0], sizes = [1, 64], strides = [1, 1]} : vector<8x192xf32> to vector<1x64xf32>
    %37 = vector.extract_strided_slice %34 {offsets = [2, 0], sizes = [1, 64], strides = [1, 1]} : vector<8x192xf32> to vector<1x64xf32>
    %38 = vector.extract_strided_slice %34 {offsets = [3, 0], sizes = [1, 64], strides = [1, 1]} : vector<8x192xf32> to vector<1x64xf32>
    %39 = vector.extract_strided_slice %34 {offsets = [4, 0], sizes = [1, 128], strides = [1, 1]} : vector<8x192xf32> to vector<1x128xf32>
    %40 = vector.extract_strided_slice %34 {offsets = [5, 0], sizes = [1, 64], strides = [1, 1]} : vector<8x192xf32> to vector<1x64xf32>
    %41 = vector.extract_strided_slice %34 {offsets = [6, 0], sizes = [1, 64], strides = [1, 1]} : vector<8x192xf32> to vector<1x64xf32>
    %42 = vector.extract_strided_slice %34 {offsets = [7, 0], sizes = [1, 64], strides = [1, 1]} : vector<8x192xf32> to vector<1x64xf32>
    %43 = arith.truncf %24 : vector<32x64xf32> to vector<32x64xbf16>
    %cst_24 = arith.constant dense<0.000000e+00> : vector<32x192xf32>
    %44 = tpu.matmul %43, %26, %cst_24 {dimension_numbers = #tpu.dot_dimension_numbers<[1], [0], [0], [1], [0, 0, 1, 1], [], []>} : vector<32x64xbf16>, vector<64x192xbf16>, vector<32x192xf32> -> vector<32x192xf32>
    %45 = vector.broadcast %35 : vector<1x192xf32> to vector<32x192xf32>
    %46 = arith.addf %44, %45 : vector<32x192xf32>
    %47 = vector.extract_strided_slice %46 {offsets = [0, 0], sizes = [32, 64], strides = [1, 1]} : vector<32x192xf32> to vector<32x64xf32>
    %48 = arith.truncf %47 : vector<32x64xf32> to vector<32x64xbf16>
    %49 = vector.extract_strided_slice %46 {offsets = [0, 64], sizes = [32, 64], strides = [1, 1]} : vector<32x192xf32> to vector<32x64xf32>
    %50 = arith.truncf %49 : vector<32x64xf32> to vector<32x64xbf16>
    %51 = vector.extract_strided_slice %46 {offsets = [0, 128], sizes = [32, 64], strides = [1, 1]} : vector<32x192xf32> to vector<32x64xf32>
    %52 = arith.truncf %51 : vector<32x64xf32> to vector<32x64xbf16>
    %53 = vector.extract_strided_slice %48 {offsets = [0, 0], sizes = [32, 16], strides = [1, 1]} : vector<32x64xbf16> to vector<32x16xbf16>
    %54 = vector.extract_strided_slice %50 {offsets = [0, 0], sizes = [32, 16], strides = [1, 1]} : vector<32x64xbf16> to vector<32x16xbf16>
    %cst_25 = arith.constant dense<0.000000e+00> : vector<32x32xf32>
    %55 = tpu.matmul %53, %54, %cst_25 {dimension_numbers = #tpu.dot_dimension_numbers<[1], [1], [0], [0], [0, 0, 1, 0], [], []>} : vector<32x16xbf16>, vector<32x16xbf16>, vector<32x32xf32> -> vector<32x32xf32>
    %56 = arith.addf %55, %1 : vector<32x32xf32>
    %cst_26 = arith.constant dense<0xFF800000> : vector<32xf32>
    %57 = vector.multi_reduction <maximumf>, %56, %cst_26 [1] : vector<32x32xf32> to vector<32xf32>
    %58 = vector.shape_cast %57 : vector<32xf32> to vector<32x1xf32>
    %59 = vector.broadcast %58 : vector<32x1xf32> to vector<32x32xf32>
    %60 = arith.subf %56, %59 : vector<32x32xf32>
    %61 = math.exp %60 : vector<32x32xf32>
    %cst_27 = arith.constant dense<0.000000e+00> : vector<32xf32>
    %62 = vector.multi_reduction <add>, %61, %cst_27 [1] : vector<32x32xf32> to vector<32xf32>
    %63 = vector.shape_cast %62 : vector<32xf32> to vector<32x1xf32>
    %64 = tpu.reciprocal %63 {approx = true} : vector<32x1xf32> -> vector<32x1xf32>
    %65 = vector.broadcast %64 : vector<32x1xf32> to vector<32x32xf32>
    %66 = arith.mulf %61, %65 : vector<32x32xf32>
    %67 = arith.truncf %66 : vector<32x32xf32> to vector<32x32xbf16>
    %68 = vector.extract_strided_slice %52 {offsets = [0, 0], sizes = [32, 16], strides = [1, 1]} : vector<32x64xbf16> to vector<32x16xbf16>
    %cst_28 = arith.constant dense<0.000000e+00> : vector<32x16xf32>
    %69 = tpu.matmul %67, %68, %cst_28 {dimension_numbers = #tpu.dot_dimension_numbers<[1], [0], [0], [1], [0, 0, 1, 1], [], []>} : vector<32x32xbf16>, vector<32x16xbf16>, vector<32x16xf32> -> vector<32x16xf32>
    %70 = vector.extract_strided_slice %48 {offsets = [0, 16], sizes = [32, 16], strides = [1, 1]} : vector<32x64xbf16> to vector<32x16xbf16>
    %71 = vector.extract_strided_slice %50 {offsets = [0, 16], sizes = [32, 16], strides = [1, 1]} : vector<32x64xbf16> to vector<32x16xbf16>
    %cst_29 = arith.constant dense<0.000000e+00> : vector<32x32xf32>
    %72 = tpu.matmul %70, %71, %cst_29 {dimension_numbers = #tpu.dot_dimension_numbers<[1], [1], [0], [0], [0, 0, 1, 0], [], []>} : vector<32x16xbf16>, vector<32x16xbf16>, vector<32x32xf32> -> vector<32x32xf32>
    %73 = arith.addf %72, %1 : vector<32x32xf32>
    %cst_30 = arith.constant dense<0xFF800000> : vector<32xf32>
    %74 = vector.multi_reduction <maximumf>, %73, %cst_30 [1] : vector<32x32xf32> to vector<32xf32>
    %75 = vector.shape_cast %74 : vector<32xf32> to vector<32x1xf32>
    %76 = vector.broadcast %75 : vector<32x1xf32> to vector<32x32xf32>
    %77 = arith.subf %73, %76 : vector<32x32xf32>
    %78 = math.exp %77 : vector<32x32xf32>
    %cst_31 = arith.constant dense<0.000000e+00> : vector<32xf32>
    %79 = vector.multi_reduction <add>, %78, %cst_31 [1] : vector<32x32xf32> to vector<32xf32>
    %80 = vector.shape_cast %79 : vector<32xf32> to vector<32x1xf32>
    %81 = tpu.reciprocal %80 {approx = true} : vector<32x1xf32> -> vector<32x1xf32>
    %82 = vector.broadcast %81 : vector<32x1xf32> to vector<32x32xf32>
    %83 = arith.mulf %78, %82 : vector<32x32xf32>
    %84 = arith.truncf %83 : vector<32x32xf32> to vector<32x32xbf16>
    %85 = vector.extract_strided_slice %52 {offsets = [0, 16], sizes = [32, 16], strides = [1, 1]} : vector<32x64xbf16> to vector<32x16xbf16>
    %cst_32 = arith.constant dense<0.000000e+00> : vector<32x16xf32>
    %86 = tpu.matmul %84, %85, %cst_32 {dimension_numbers = #tpu.dot_dimension_numbers<[1], [0], [0], [1], [0, 0, 1, 1], [], []>} : vector<32x32xbf16>, vector<32x16xbf16>, vector<32x16xf32> -> vector<32x16xf32>
    %87 = vector.extract_strided_slice %48 {offsets = [0, 32], sizes = [32, 16], strides = [1, 1]} : vector<32x64xbf16> to vector<32x16xbf16>
    %88 = vector.extract_strided_slice %50 {offsets = [0, 32], sizes = [32, 16], strides = [1, 1]} : vector<32x64xbf16> to vector<32x16xbf16>
    %cst_33 = arith.constant dense<0.000000e+00> : vector<32x32xf32>
    %89 = tpu.matmul %87, %88, %cst_33 {dimension_numbers = #tpu.dot_dimension_numbers<[1], [1], [0], [0], [0, 0, 1, 0], [], []>} : vector<32x16xbf16>, vector<32x16xbf16>, vector<32x32xf32> -> vector<32x32xf32>
    %90 = arith.addf %89, %1 : vector<32x32xf32>
    %cst_34 = arith.constant dense<0xFF800000> : vector<32xf32>
    %91 = vector.multi_reduction <maximumf>, %90, %cst_34 [1] : vector<32x32xf32> to vector<32xf32>
    %92 = vector.shape_cast %91 : vector<32xf32> to vector<32x1xf32>
    %93 = vector.broadcast %92 : vector<32x1xf32> to vector<32x32xf32>
    %94 = arith.subf %90, %93 : vector<32x32xf32>
    %95 = math.exp %94 : vector<32x32xf32>
    %cst_35 = arith.constant dense<0.000000e+00> : vector<32xf32>
    %96 = vector.multi_reduction <add>, %95, %cst_35 [1] : vector<32x32xf32> to vector<32xf32>
    %97 = vector.shape_cast %96 : vector<32xf32> to vector<32x1xf32>
    %98 = tpu.reciprocal %97 {approx = true} : vector<32x1xf32> -> vector<32x1xf32>
    %99 = vector.broadcast %98 : vector<32x1xf32> to vector<32x32xf32>
    %100 = arith.mulf %95, %99 : vector<32x32xf32>
    %101 = arith.truncf %100 : vector<32x32xf32> to vector<32x32xbf16>
    %102 = vector.extract_strided_slice %52 {offsets = [0, 32], sizes = [32, 16], strides = [1, 1]} : vector<32x64xbf16> to vector<32x16xbf16>
    %cst_36 = arith.constant dense<0.000000e+00> : vector<32x16xf32>
    %103 = tpu.matmul %101, %102, %cst_36 {dimension_numbers = #tpu.dot_dimension_numbers<[1], [0], [0], [1], [0, 0, 1, 1], [], []>} : vector<32x32xbf16>, vector<32x16xbf16>, vector<32x16xf32> -> vector<32x16xf32>
    %104 = vector.extract_strided_slice %48 {offsets = [0, 48], sizes = [32, 16], strides = [1, 1]} : vector<32x64xbf16> to vector<32x16xbf16>
    %105 = vector.extract_strided_slice %50 {offsets = [0, 48], sizes = [32, 16], strides = [1, 1]} : vector<32x64xbf16> to vector<32x16xbf16>
    %cst_37 = arith.constant dense<0.000000e+00> : vector<32x32xf32>
    %106 = tpu.matmul %104, %105, %cst_37 {dimension_numbers = #tpu.dot_dimension_numbers<[1], [1], [0], [0], [0, 0, 1, 0], [], []>} : vector<32x16xbf16>, vector<32x16xbf16>, vector<32x32xf32> -> vector<32x32xf32>
    %107 = arith.addf %106, %1 : vector<32x32xf32>
    %cst_38 = arith.constant dense<0xFF800000> : vector<32xf32>
    %108 = vector.multi_reduction <maximumf>, %107, %cst_38 [1] : vector<32x32xf32> to vector<32xf32>
    %109 = vector.shape_cast %108 : vector<32xf32> to vector<32x1xf32>
    %110 = vector.broadcast %109 : vector<32x1xf32> to vector<32x32xf32>
    %111 = arith.subf %107, %110 : vector<32x32xf32>
    %112 = math.exp %111 : vector<32x32xf32>
    %cst_39 = arith.constant dense<0.000000e+00> : vector<32xf32>
    %113 = vector.multi_reduction <add>, %112, %cst_39 [1] : vector<32x32xf32> to vector<32xf32>
    %114 = vector.shape_cast %113 : vector<32xf32> to vector<32x1xf32>
    %115 = tpu.reciprocal %114 {approx = true} : vector<32x1xf32> -> vector<32x1xf32>
    %116 = vector.broadcast %115 : vector<32x1xf32> to vector<32x32xf32>
    %117 = arith.mulf %112, %116 : vector<32x32xf32>
    %118 = arith.truncf %117 : vector<32x32xf32> to vector<32x32xbf16>
    %119 = vector.extract_strided_slice %52 {offsets = [0, 48], sizes = [32, 16], strides = [1, 1]} : vector<32x64xbf16> to vector<32x16xbf16>
    %cst_40 = arith.constant dense<0.000000e+00> : vector<32x16xf32>
    %120 = tpu.matmul %118, %119, %cst_40 {dimension_numbers = #tpu.dot_dimension_numbers<[1], [0], [0], [1], [0, 0, 1, 1], [], []>} : vector<32x32xbf16>, vector<32x16xbf16>, vector<32x16xf32> -> vector<32x16xf32>
    %121 = tpu.concatenate %69, %86, %103, %120 in 1 : vector<32x16xf32>, vector<32x16xf32>, vector<32x16xf32>, vector<32x16xf32> -> vector<32x64xf32>
    %122 = arith.truncf %121 : vector<32x64xf32> to vector<32x64xbf16>
    %cst_41 = arith.constant dense<0.000000e+00> : vector<32x64xf32>
    %123 = tpu.matmul %122, %28, %cst_41 {dimension_numbers = #tpu.dot_dimension_numbers<[1], [0], [0], [1], [0, 0, 1, 1], [], []>} : vector<32x64xbf16>, vector<64x64xbf16>, vector<32x64xf32> -> vector<32x64xf32>
    %124 = vector.broadcast %36 : vector<1x64xf32> to vector<32x64xf32>
    %125 = arith.addf %123, %124 : vector<32x64xf32>
    %126 = arith.addf %125, %24 : vector<32x64xf32>
    %cst_42 = arith.constant dense<0.000000e+00> : vector<32xf32>
    %127 = vector.multi_reduction <add>, %126, %cst_42 [1] : vector<32x64xf32> to vector<32xf32>
    %128 = vector.shape_cast %127 : vector<32xf32> to vector<32x1xf32>
    %cst_43 = arith.constant 6.400000e+01 : f32
    %129 = vector.broadcast %cst_43 : f32 to vector<32x1xf32>
    %130 = arith.divf %128, %129 : vector<32x1xf32>
    %131 = vector.broadcast %130 : vector<32x1xf32> to vector<32x64xf32>
    %132 = arith.subf %126, %131 : vector<32x64xf32>
    %133 = arith.mulf %132, %132 : vector<32x64xf32>
    %cst_44 = arith.constant dense<0.000000e+00> : vector<32xf32>
    %134 = vector.multi_reduction <add>, %133, %cst_44 [1] : vector<32x64xf32> to vector<32xf32>
    %135 = vector.shape_cast %134 : vector<32xf32> to vector<32x1xf32>
    %cst_45 = arith.constant 6.400000e+01 : f32
    %136 = vector.broadcast %cst_45 : f32 to vector<32x1xf32>
    %137 = arith.divf %135, %136 : vector<32x1xf32>
    %cst_46 = arith.constant 9.99999974E-6 : f32
    %138 = vector.broadcast %cst_46 : f32 to vector<32x1xf32>
    %139 = arith.addf %137, %138 : vector<32x1xf32>
    %140 = math.rsqrt %139 : vector<32x1xf32>
    %141 = vector.broadcast %140 : vector<32x1xf32> to vector<32x64xf32>
    %142 = arith.mulf %132, %141 : vector<32x64xf32>
    %143 = vector.broadcast %37 : vector<1x64xf32> to vector<32x64xf32>
    %144 = arith.mulf %142, %143 : vector<32x64xf32>
    %145 = vector.broadcast %38 : vector<1x64xf32> to vector<32x64xf32>
    %146 = arith.addf %144, %145 : vector<32x64xf32>
    %147 = arith.truncf %146 : vector<32x64xf32> to vector<32x64xbf16>
    %cst_47 = arith.constant dense<0.000000e+00> : vector<32x128xf32>
    %148 = tpu.matmul %147, %30, %cst_47 {dimension_numbers = #tpu.dot_dimension_numbers<[1], [0], [0], [1], [0, 0, 1, 1], [], []>} : vector<32x64xbf16>, vector<64x128xbf16>, vector<32x128xf32> -> vector<32x128xf32>
    %149 = vector.broadcast %39 : vector<1x128xf32> to vector<32x128xf32>
    %150 = arith.addf %148, %149 : vector<32x128xf32>
    %cst_48 = arith.constant 5.000000e-01 : f32
    %151 = vector.broadcast %cst_48 : f32 to vector<32x128xf32>
    %152 = arith.mulf %151, %150 : vector<32x128xf32>
    %cst_49 = arith.constant 4.471500e-02 : f32
    %153 = vector.broadcast %cst_49 : f32 to vector<32x128xf32>
    %154 = arith.mulf %153, %150 : vector<32x128xf32>
    %155 = arith.mulf %154, %150 : vector<32x128xf32>
    %156 = arith.mulf %155, %150 : vector<32x128xf32>
    %157 = arith.addf %150, %156 : vector<32x128xf32>
    %cst_50 = arith.constant 0.797884583 : f32
    %158 = vector.broadcast %cst_50 : f32 to vector<32x128xf32>
    %159 = arith.mulf %158, %157 : vector<32x128xf32>
    %160 = math.tanh %159 : vector<32x128xf32>
    %cst_51 = arith.constant 1.000000e+00 : f32
    %161 = vector.broadcast %cst_51 : f32 to vector<32x128xf32>
    %162 = arith.addf %161, %160 : vector<32x128xf32>
    %163 = arith.mulf %152, %162 : vector<32x128xf32>
    %164 = arith.truncf %163 : vector<32x128xf32> to vector<32x128xbf16>
    %cst_52 = arith.constant dense<0.000000e+00> : vector<32x64xf32>
    %165 = tpu.matmul %164, %32, %cst_52 {dimension_numbers = #tpu.dot_dimension_numbers<[1], [0], [0], [1], [0, 0, 1, 1], [], []>} : vector<32x128xbf16>, vector<128x64xbf16>, vector<32x64xf32> -> vector<32x64xf32>
    %166 = vector.broadcast %40 : vector<1x64xf32> to vector<32x64xf32>
    %167 = arith.addf %165, %166 : vector<32x64xf32>
    %168 = arith.addf %167, %146 : vector<32x64xf32>
    %cst_53 = arith.constant dense<0.000000e+00> : vector<32xf32>
    %169 = vector.multi_reduction <add>, %168, %cst_53 [1] : vector<32x64xf32> to vector<32xf32>
    %170 = vector.shape_cast %169 : vector<32xf32> to vector<32x1xf32>
    %cst_54 = arith.constant 6.400000e+01 : f32
    %171 = vector.broadcast %cst_54 : f32 to vector<32x1xf32>
    %172 = arith.divf %170, %171 : vector<32x1xf32>
    %173 = vector.broadcast %172 : vector<32x1xf32> to vector<32x64xf32>
    %174 = arith.subf %168, %173 : vector<32x64xf32>
    %175 = arith.mulf %174, %174 : vector<32x64xf32>
    %cst_55 = arith.constant dense<0.000000e+00> : vector<32xf32>
    %176 = vector.multi_reduction <add>, %175, %cst_55 [1] : vector<32x64xf32> to vector<32xf32>
    %177 = vector.shape_cast %176 : vector<32xf32> to vector<32x1xf32>
    %cst_56 = arith.constant 6.400000e+01 : f32
    %178 = vector.broadcast %cst_56 : f32 to vector<32x1xf32>
    %179 = arith.divf %177, %178 : vector<32x1xf32>
    %cst_57 = arith.constant 9.99999974E-6 : f32
    %180 = vector.broadcast %cst_57 : f32 to vector<32x1xf32>
    %181 = arith.addf %179, %180 : vector<32x1xf32>
    %182 = math.rsqrt %181 : vector<32x1xf32>
    %183 = vector.broadcast %182 : vector<32x1xf32> to vector<32x64xf32>
    %184 = arith.mulf %174, %183 : vector<32x64xf32>
    %185 = vector.broadcast %41 : vector<1x64xf32> to vector<32x64xf32>
    %186 = arith.mulf %184, %185 : vector<32x64xf32>
    %187 = vector.broadcast %42 : vector<1x64xf32> to vector<32x64xf32>
    %188 = arith.addf %186, %187 : vector<32x64xf32>
    %c1 = arith.constant 1 : index
    %c0_58 = arith.constant 0 : index
    %c0_59 = arith.constant 0 : index
    %189 = vector.load %arg3[%c1, %c0_58, %c0_59] : memref<2x64x192xbf16, #tpu.memory_space<vmem>>, vector<1x64x192xbf16>
    %190 = vector.shape_cast %189 : vector<1x64x192xbf16> to vector<64x192xbf16>
    %c1_60 = arith.constant 1 : index
    %c0_61 = arith.constant 0 : index
    %c0_62 = arith.constant 0 : index
    %191 = vector.load %arg4[%c1_60, %c0_61, %c0_62] : memref<2x64x64xbf16, #tpu.memory_space<vmem>>, vector<1x64x64xbf16>
    %192 = vector.shape_cast %191 : vector<1x64x64xbf16> to vector<64x64xbf16>
    %c1_63 = arith.constant 1 : index
    %c0_64 = arith.constant 0 : index
    %c0_65 = arith.constant 0 : index
    %193 = vector.load %arg5[%c1_63, %c0_64, %c0_65] : memref<2x64x128xbf16, #tpu.memory_space<vmem>>, vector<1x64x128xbf16>
    %194 = vector.shape_cast %193 : vector<1x64x128xbf16> to vector<64x128xbf16>
    %c1_66 = arith.constant 1 : index
    %c0_67 = arith.constant 0 : index
    %c0_68 = arith.constant 0 : index
    %195 = vector.load %arg6[%c1_66, %c0_67, %c0_68] : memref<2x128x64xbf16, #tpu.memory_space<vmem>>, vector<1x128x64xbf16>
    %196 = vector.shape_cast %195 : vector<1x128x64xbf16> to vector<128x64xbf16>
    %c1_69 = arith.constant 1 : index
    %c0_70 = arith.constant 0 : index
    %c0_71 = arith.constant 0 : index
    %197 = vector.load %arg7[%c1_69, %c0_70, %c0_71] : memref<2x8x192xf32, #tpu.memory_space<vmem>>, vector<1x8x192xf32>
    %198 = vector.shape_cast %197 : vector<1x8x192xf32> to vector<8x192xf32>
    %199 = vector.extract_strided_slice %198 {offsets = [0, 0], sizes = [1, 192], strides = [1, 1]} : vector<8x192xf32> to vector<1x192xf32>
    %200 = vector.extract_strided_slice %198 {offsets = [1, 0], sizes = [1, 64], strides = [1, 1]} : vector<8x192xf32> to vector<1x64xf32>
    %201 = vector.extract_strided_slice %198 {offsets = [2, 0], sizes = [1, 64], strides = [1, 1]} : vector<8x192xf32> to vector<1x64xf32>
    %202 = vector.extract_strided_slice %198 {offsets = [3, 0], sizes = [1, 64], strides = [1, 1]} : vector<8x192xf32> to vector<1x64xf32>
    %203 = vector.extract_strided_slice %198 {offsets = [4, 0], sizes = [1, 128], strides = [1, 1]} : vector<8x192xf32> to vector<1x128xf32>
    %204 = vector.extract_strided_slice %198 {offsets = [5, 0], sizes = [1, 64], strides = [1, 1]} : vector<8x192xf32> to vector<1x64xf32>
    %205 = vector.extract_strided_slice %198 {offsets = [6, 0], sizes = [1, 64], strides = [1, 1]} : vector<8x192xf32> to vector<1x64xf32>
    %206 = vector.extract_strided_slice %198 {offsets = [7, 0], sizes = [1, 64], strides = [1, 1]} : vector<8x192xf32> to vector<1x64xf32>
    %207 = arith.truncf %188 : vector<32x64xf32> to vector<32x64xbf16>
    %cst_72 = arith.constant dense<0.000000e+00> : vector<32x192xf32>
    %208 = tpu.matmul %207, %190, %cst_72 {dimension_numbers = #tpu.dot_dimension_numbers<[1], [0], [0], [1], [0, 0, 1, 1], [], []>} : vector<32x64xbf16>, vector<64x192xbf16>, vector<32x192xf32> -> vector<32x192xf32>
    %209 = vector.broadcast %199 : vector<1x192xf32> to vector<32x192xf32>
    %210 = arith.addf %208, %209 : vector<32x192xf32>
    %211 = vector.extract_strided_slice %210 {offsets = [0, 0], sizes = [32, 64], strides = [1, 1]} : vector<32x192xf32> to vector<32x64xf32>
    %212 = arith.truncf %211 : vector<32x64xf32> to vector<32x64xbf16>
    %213 = vector.extract_strided_slice %210 {offsets = [0, 64], sizes = [32, 64], strides = [1, 1]} : vector<32x192xf32> to vector<32x64xf32>
    %214 = arith.truncf %213 : vector<32x64xf32> to vector<32x64xbf16>
    %215 = vector.extract_strided_slice %210 {offsets = [0, 128], sizes = [32, 64], strides = [1, 1]} : vector<32x192xf32> to vector<32x64xf32>
    %216 = arith.truncf %215 : vector<32x64xf32> to vector<32x64xbf16>
    %217 = vector.extract_strided_slice %212 {offsets = [0, 0], sizes = [32, 16], strides = [1, 1]} : vector<32x64xbf16> to vector<32x16xbf16>
    %218 = vector.extract_strided_slice %214 {offsets = [0, 0], sizes = [32, 16], strides = [1, 1]} : vector<32x64xbf16> to vector<32x16xbf16>
    %cst_73 = arith.constant dense<0.000000e+00> : vector<32x32xf32>
    %219 = tpu.matmul %217, %218, %cst_73 {dimension_numbers = #tpu.dot_dimension_numbers<[1], [1], [0], [0], [0, 0, 1, 0], [], []>} : vector<32x16xbf16>, vector<32x16xbf16>, vector<32x32xf32> -> vector<32x32xf32>
    %220 = arith.addf %219, %1 : vector<32x32xf32>
    %cst_74 = arith.constant dense<0xFF800000> : vector<32xf32>
    %221 = vector.multi_reduction <maximumf>, %220, %cst_74 [1] : vector<32x32xf32> to vector<32xf32>
    %222 = vector.shape_cast %221 : vector<32xf32> to vector<32x1xf32>
    %223 = vector.broadcast %222 : vector<32x1xf32> to vector<32x32xf32>
    %224 = arith.subf %220, %223 : vector<32x32xf32>
    %225 = math.exp %224 : vector<32x32xf32>
    %cst_75 = arith.constant dense<0.000000e+00> : vector<32xf32>
    %226 = vector.multi_reduction <add>, %225, %cst_75 [1] : vector<32x32xf32> to vector<32xf32>
    %227 = vector.shape_cast %226 : vector<32xf32> to vector<32x1xf32>
    %228 = tpu.reciprocal %227 {approx = true} : vector<32x1xf32> -> vector<32x1xf32>
    %229 = vector.broadcast %228 : vector<32x1xf32> to vector<32x32xf32>
    %230 = arith.mulf %225, %229 : vector<32x32xf32>
    %231 = arith.truncf %230 : vector<32x32xf32> to vector<32x32xbf16>
    %232 = vector.extract_strided_slice %216 {offsets = [0, 0], sizes = [32, 16], strides = [1, 1]} : vector<32x64xbf16> to vector<32x16xbf16>
    %cst_76 = arith.constant dense<0.000000e+00> : vector<32x16xf32>
    %233 = tpu.matmul %231, %232, %cst_76 {dimension_numbers = #tpu.dot_dimension_numbers<[1], [0], [0], [1], [0, 0, 1, 1], [], []>} : vector<32x32xbf16>, vector<32x16xbf16>, vector<32x16xf32> -> vector<32x16xf32>
    %234 = vector.extract_strided_slice %212 {offsets = [0, 16], sizes = [32, 16], strides = [1, 1]} : vector<32x64xbf16> to vector<32x16xbf16>
    %235 = vector.extract_strided_slice %214 {offsets = [0, 16], sizes = [32, 16], strides = [1, 1]} : vector<32x64xbf16> to vector<32x16xbf16>
    %cst_77 = arith.constant dense<0.000000e+00> : vector<32x32xf32>
    %236 = tpu.matmul %234, %235, %cst_77 {dimension_numbers = #tpu.dot_dimension_numbers<[1], [1], [0], [0], [0, 0, 1, 0], [], []>} : vector<32x16xbf16>, vector<32x16xbf16>, vector<32x32xf32> -> vector<32x32xf32>
    %237 = arith.addf %236, %1 : vector<32x32xf32>
    %cst_78 = arith.constant dense<0xFF800000> : vector<32xf32>
    %238 = vector.multi_reduction <maximumf>, %237, %cst_78 [1] : vector<32x32xf32> to vector<32xf32>
    %239 = vector.shape_cast %238 : vector<32xf32> to vector<32x1xf32>
    %240 = vector.broadcast %239 : vector<32x1xf32> to vector<32x32xf32>
    %241 = arith.subf %237, %240 : vector<32x32xf32>
    %242 = math.exp %241 : vector<32x32xf32>
    %cst_79 = arith.constant dense<0.000000e+00> : vector<32xf32>
    %243 = vector.multi_reduction <add>, %242, %cst_79 [1] : vector<32x32xf32> to vector<32xf32>
    %244 = vector.shape_cast %243 : vector<32xf32> to vector<32x1xf32>
    %245 = tpu.reciprocal %244 {approx = true} : vector<32x1xf32> -> vector<32x1xf32>
    %246 = vector.broadcast %245 : vector<32x1xf32> to vector<32x32xf32>
    %247 = arith.mulf %242, %246 : vector<32x32xf32>
    %248 = arith.truncf %247 : vector<32x32xf32> to vector<32x32xbf16>
    %249 = vector.extract_strided_slice %216 {offsets = [0, 16], sizes = [32, 16], strides = [1, 1]} : vector<32x64xbf16> to vector<32x16xbf16>
    %cst_80 = arith.constant dense<0.000000e+00> : vector<32x16xf32>
    %250 = tpu.matmul %248, %249, %cst_80 {dimension_numbers = #tpu.dot_dimension_numbers<[1], [0], [0], [1], [0, 0, 1, 1], [], []>} : vector<32x32xbf16>, vector<32x16xbf16>, vector<32x16xf32> -> vector<32x16xf32>
    %251 = vector.extract_strided_slice %212 {offsets = [0, 32], sizes = [32, 16], strides = [1, 1]} : vector<32x64xbf16> to vector<32x16xbf16>
    %252 = vector.extract_strided_slice %214 {offsets = [0, 32], sizes = [32, 16], strides = [1, 1]} : vector<32x64xbf16> to vector<32x16xbf16>
    %cst_81 = arith.constant dense<0.000000e+00> : vector<32x32xf32>
    %253 = tpu.matmul %251, %252, %cst_81 {dimension_numbers = #tpu.dot_dimension_numbers<[1], [1], [0], [0], [0, 0, 1, 0], [], []>} : vector<32x16xbf16>, vector<32x16xbf16>, vector<32x32xf32> -> vector<32x32xf32>
    %254 = arith.addf %253, %1 : vector<32x32xf32>
    %cst_82 = arith.constant dense<0xFF800000> : vector<32xf32>
    %255 = vector.multi_reduction <maximumf>, %254, %cst_82 [1] : vector<32x32xf32> to vector<32xf32>
    %256 = vector.shape_cast %255 : vector<32xf32> to vector<32x1xf32>
    %257 = vector.broadcast %256 : vector<32x1xf32> to vector<32x32xf32>
    %258 = arith.subf %254, %257 : vector<32x32xf32>
    %259 = math.exp %258 : vector<32x32xf32>
    %cst_83 = arith.constant dense<0.000000e+00> : vector<32xf32>
    %260 = vector.multi_reduction <add>, %259, %cst_83 [1] : vector<32x32xf32> to vector<32xf32>
    %261 = vector.shape_cast %260 : vector<32xf32> to vector<32x1xf32>
    %262 = tpu.reciprocal %261 {approx = true} : vector<32x1xf32> -> vector<32x1xf32>
    %263 = vector.broadcast %262 : vector<32x1xf32> to vector<32x32xf32>
    %264 = arith.mulf %259, %263 : vector<32x32xf32>
    %265 = arith.truncf %264 : vector<32x32xf32> to vector<32x32xbf16>
    %266 = vector.extract_strided_slice %216 {offsets = [0, 32], sizes = [32, 16], strides = [1, 1]} : vector<32x64xbf16> to vector<32x16xbf16>
    %cst_84 = arith.constant dense<0.000000e+00> : vector<32x16xf32>
    %267 = tpu.matmul %265, %266, %cst_84 {dimension_numbers = #tpu.dot_dimension_numbers<[1], [0], [0], [1], [0, 0, 1, 1], [], []>} : vector<32x32xbf16>, vector<32x16xbf16>, vector<32x16xf32> -> vector<32x16xf32>
    %268 = vector.extract_strided_slice %212 {offsets = [0, 48], sizes = [32, 16], strides = [1, 1]} : vector<32x64xbf16> to vector<32x16xbf16>
    %269 = vector.extract_strided_slice %214 {offsets = [0, 48], sizes = [32, 16], strides = [1, 1]} : vector<32x64xbf16> to vector<32x16xbf16>
    %cst_85 = arith.constant dense<0.000000e+00> : vector<32x32xf32>
    %270 = tpu.matmul %268, %269, %cst_85 {dimension_numbers = #tpu.dot_dimension_numbers<[1], [1], [0], [0], [0, 0, 1, 0], [], []>} : vector<32x16xbf16>, vector<32x16xbf16>, vector<32x32xf32> -> vector<32x32xf32>
    %271 = arith.addf %270, %1 : vector<32x32xf32>
    %cst_86 = arith.constant dense<0xFF800000> : vector<32xf32>
    %272 = vector.multi_reduction <maximumf>, %271, %cst_86 [1] : vector<32x32xf32> to vector<32xf32>
    %273 = vector.shape_cast %272 : vector<32xf32> to vector<32x1xf32>
    %274 = vector.broadcast %273 : vector<32x1xf32> to vector<32x32xf32>
    %275 = arith.subf %271, %274 : vector<32x32xf32>
    %276 = math.exp %275 : vector<32x32xf32>
    %cst_87 = arith.constant dense<0.000000e+00> : vector<32xf32>
    %277 = vector.multi_reduction <add>, %276, %cst_87 [1] : vector<32x32xf32> to vector<32xf32>
    %278 = vector.shape_cast %277 : vector<32xf32> to vector<32x1xf32>
    %279 = tpu.reciprocal %278 {approx = true} : vector<32x1xf32> -> vector<32x1xf32>
    %280 = vector.broadcast %279 : vector<32x1xf32> to vector<32x32xf32>
    %281 = arith.mulf %276, %280 : vector<32x32xf32>
    %282 = arith.truncf %281 : vector<32x32xf32> to vector<32x32xbf16>
    %283 = vector.extract_strided_slice %216 {offsets = [0, 48], sizes = [32, 16], strides = [1, 1]} : vector<32x64xbf16> to vector<32x16xbf16>
    %cst_88 = arith.constant dense<0.000000e+00> : vector<32x16xf32>
    %284 = tpu.matmul %282, %283, %cst_88 {dimension_numbers = #tpu.dot_dimension_numbers<[1], [0], [0], [1], [0, 0, 1, 1], [], []>} : vector<32x32xbf16>, vector<32x16xbf16>, vector<32x16xf32> -> vector<32x16xf32>
    %285 = tpu.concatenate %233, %250, %267, %284 in 1 : vector<32x16xf32>, vector<32x16xf32>, vector<32x16xf32>, vector<32x16xf32> -> vector<32x64xf32>
    %286 = arith.truncf %285 : vector<32x64xf32> to vector<32x64xbf16>
    %cst_89 = arith.constant dense<0.000000e+00> : vector<32x64xf32>
    %287 = tpu.matmul %286, %192, %cst_89 {dimension_numbers = #tpu.dot_dimension_numbers<[1], [0], [0], [1], [0, 0, 1, 1], [], []>} : vector<32x64xbf16>, vector<64x64xbf16>, vector<32x64xf32> -> vector<32x64xf32>
    %288 = vector.broadcast %200 : vector<1x64xf32> to vector<32x64xf32>
    %289 = arith.addf %287, %288 : vector<32x64xf32>
    %290 = arith.addf %289, %188 : vector<32x64xf32>
    %cst_90 = arith.constant dense<0.000000e+00> : vector<32xf32>
    %291 = vector.multi_reduction <add>, %290, %cst_90 [1] : vector<32x64xf32> to vector<32xf32>
    %292 = vector.shape_cast %291 : vector<32xf32> to vector<32x1xf32>
    %cst_91 = arith.constant 6.400000e+01 : f32
    %293 = vector.broadcast %cst_91 : f32 to vector<32x1xf32>
    %294 = arith.divf %292, %293 : vector<32x1xf32>
    %295 = vector.broadcast %294 : vector<32x1xf32> to vector<32x64xf32>
    %296 = arith.subf %290, %295 : vector<32x64xf32>
    %297 = arith.mulf %296, %296 : vector<32x64xf32>
    %cst_92 = arith.constant dense<0.000000e+00> : vector<32xf32>
    %298 = vector.multi_reduction <add>, %297, %cst_92 [1] : vector<32x64xf32> to vector<32xf32>
    %299 = vector.shape_cast %298 : vector<32xf32> to vector<32x1xf32>
    %cst_93 = arith.constant 6.400000e+01 : f32
    %300 = vector.broadcast %cst_93 : f32 to vector<32x1xf32>
    %301 = arith.divf %299, %300 : vector<32x1xf32>
    %cst_94 = arith.constant 9.99999974E-6 : f32
    %302 = vector.broadcast %cst_94 : f32 to vector<32x1xf32>
    %303 = arith.addf %301, %302 : vector<32x1xf32>
    %304 = math.rsqrt %303 : vector<32x1xf32>
    %305 = vector.broadcast %304 : vector<32x1xf32> to vector<32x64xf32>
    %306 = arith.mulf %296, %305 : vector<32x64xf32>
    %307 = vector.broadcast %201 : vector<1x64xf32> to vector<32x64xf32>
    %308 = arith.mulf %306, %307 : vector<32x64xf32>
    %309 = vector.broadcast %202 : vector<1x64xf32> to vector<32x64xf32>
    %310 = arith.addf %308, %309 : vector<32x64xf32>
    %311 = arith.truncf %310 : vector<32x64xf32> to vector<32x64xbf16>
    %cst_95 = arith.constant dense<0.000000e+00> : vector<32x128xf32>
    %312 = tpu.matmul %311, %194, %cst_95 {dimension_numbers = #tpu.dot_dimension_numbers<[1], [0], [0], [1], [0, 0, 1, 1], [], []>} : vector<32x64xbf16>, vector<64x128xbf16>, vector<32x128xf32> -> vector<32x128xf32>
    %313 = vector.broadcast %203 : vector<1x128xf32> to vector<32x128xf32>
    %314 = arith.addf %312, %313 : vector<32x128xf32>
    %cst_96 = arith.constant 5.000000e-01 : f32
    %315 = vector.broadcast %cst_96 : f32 to vector<32x128xf32>
    %316 = arith.mulf %315, %314 : vector<32x128xf32>
    %cst_97 = arith.constant 4.471500e-02 : f32
    %317 = vector.broadcast %cst_97 : f32 to vector<32x128xf32>
    %318 = arith.mulf %317, %314 : vector<32x128xf32>
    %319 = arith.mulf %318, %314 : vector<32x128xf32>
    %320 = arith.mulf %319, %314 : vector<32x128xf32>
    %321 = arith.addf %314, %320 : vector<32x128xf32>
    %cst_98 = arith.constant 0.797884583 : f32
    %322 = vector.broadcast %cst_98 : f32 to vector<32x128xf32>
    %323 = arith.mulf %322, %321 : vector<32x128xf32>
    %324 = math.tanh %323 : vector<32x128xf32>
    %cst_99 = arith.constant 1.000000e+00 : f32
    %325 = vector.broadcast %cst_99 : f32 to vector<32x128xf32>
    %326 = arith.addf %325, %324 : vector<32x128xf32>
    %327 = arith.mulf %316, %326 : vector<32x128xf32>
    %328 = arith.truncf %327 : vector<32x128xf32> to vector<32x128xbf16>
    %cst_100 = arith.constant dense<0.000000e+00> : vector<32x64xf32>
    %329 = tpu.matmul %328, %196, %cst_100 {dimension_numbers = #tpu.dot_dimension_numbers<[1], [0], [0], [1], [0, 0, 1, 1], [], []>} : vector<32x128xbf16>, vector<128x64xbf16>, vector<32x64xf32> -> vector<32x64xf32>
    %330 = vector.broadcast %204 : vector<1x64xf32> to vector<32x64xf32>
    %331 = arith.addf %329, %330 : vector<32x64xf32>
    %332 = arith.addf %331, %310 : vector<32x64xf32>
    %cst_101 = arith.constant dense<0.000000e+00> : vector<32xf32>
    %333 = vector.multi_reduction <add>, %332, %cst_101 [1] : vector<32x64xf32> to vector<32xf32>
    %334 = vector.shape_cast %333 : vector<32xf32> to vector<32x1xf32>
    %cst_102 = arith.constant 6.400000e+01 : f32
    %335 = vector.broadcast %cst_102 : f32 to vector<32x1xf32>
    %336 = arith.divf %334, %335 : vector<32x1xf32>
    %337 = vector.broadcast %336 : vector<32x1xf32> to vector<32x64xf32>
    %338 = arith.subf %332, %337 : vector<32x64xf32>
    %339 = arith.mulf %338, %338 : vector<32x64xf32>
    %cst_103 = arith.constant dense<0.000000e+00> : vector<32xf32>
    %340 = vector.multi_reduction <add>, %339, %cst_103 [1] : vector<32x64xf32> to vector<32xf32>
    %341 = vector.shape_cast %340 : vector<32xf32> to vector<32x1xf32>
    %cst_104 = arith.constant 6.400000e+01 : f32
    %342 = vector.broadcast %cst_104 : f32 to vector<32x1xf32>
    %343 = arith.divf %341, %342 : vector<32x1xf32>
    %cst_105 = arith.constant 9.99999974E-6 : f32
    %344 = vector.broadcast %cst_105 : f32 to vector<32x1xf32>
    %345 = arith.addf %343, %344 : vector<32x1xf32>
    %346 = math.rsqrt %345 : vector<32x1xf32>
    %347 = vector.broadcast %346 : vector<32x1xf32> to vector<32x64xf32>
    %348 = arith.mulf %338, %347 : vector<32x64xf32>
    %349 = vector.broadcast %205 : vector<1x64xf32> to vector<32x64xf32>
    %350 = arith.mulf %348, %349 : vector<32x64xf32>
    %351 = vector.broadcast %206 : vector<1x64xf32> to vector<32x64xf32>
    %352 = arith.addf %350, %351 : vector<32x64xf32>
    %353 = vector.extract_strided_slice %2 {offsets = [3, 0], sizes = [2, 32], strides = [1, 1]} : vector<5x64xf32> to vector<2x32xf32>
    %cst_106 = arith.constant dense<0.000000e+00> : vector<2x64xf32>
    %354 = tpu.matmul %353, %352, %cst_106 {dimension_numbers = #tpu.dot_dimension_numbers<[1], [0], [0], [1], [0, 0, 1, 1], [], []>} : vector<2x32xf32>, vector<32x64xf32>, vector<2x64xf32> -> vector<2x64xf32>
    %c0_107 = arith.constant 0 : index
    %c0_108 = arith.constant 0 : index
    %355 = vector.load %arg9[%c0_107, %c0_108] : memref<64x4xf32, #tpu.memory_space<vmem>>, vector<64x4xf32>
    %cst_109 = arith.constant dense<0.000000e+00> : vector<2x4xf32>
    %356 = tpu.matmul %354, %355, %cst_109 {dimension_numbers = #tpu.dot_dimension_numbers<[1], [0], [0], [1], [0, 0, 1, 1], [], []>} : vector<2x64xf32>, vector<64x4xf32>, vector<2x4xf32> -> vector<2x4xf32>
    %357 = vector.extract_strided_slice %2 {offsets = [2, 0], sizes = [1, 4], strides = [1, 1]} : vector<5x64xf32> to vector<1x4xf32>
    %358 = vector.broadcast %357 : vector<1x4xf32> to vector<2x4xf32>
    %359 = arith.addf %356, %358 : vector<2x4xf32>
    %c0_110 = arith.constant 0 : index
    %c0_111 = arith.constant 0 : index
    %360 = vector.load %arg10[%c0_110, %c0_111] : memref<2x4xf32, #tpu.memory_space<vmem>>, vector<2x4xf32>
    tpu.vector_store %arg10[%c0_110, %c0_111], %359 {strides = array<i32>} : memref<2x4xf32, #tpu.memory_space<vmem>>, vector<2x4xf32>,
    return
  }
  func.func @transform_0(%arg0: i32) -> (i32, i32) {
    %c0_i32 = arith.constant 0 : i32
    %c0_i32_0 = arith.constant 0 : i32
    %c0_i32_1 = arith.constant 0 : i32
    return %c0_i32, %c0_i32_0 : i32, i32
  }
  func.func @transform_1(%arg0: i32) -> (i32, i32) {
    %c0_i32 = arith.constant 0 : i32
    %c0_i32_0 = arith.constant 0 : i32
    %c0_i32_1 = arith.constant 0 : i32
    return %c0_i32, %c0_i32_0 : i32, i32
  }
  func.func @transform_2(%arg0: i32) -> (i32, i32, i32) {
    %c0_i32 = arith.constant 0 : i32
    %c0_i32_0 = arith.constant 0 : i32
    %c0_i32_1 = arith.constant 0 : i32
    %c0_i32_2 = arith.constant 0 : i32
    return %c0_i32, %c0_i32_0, %c0_i32_1 : i32, i32, i32
  }
  func.func @transform_3(%arg0: i32) -> (i32, i32, i32) {
    %c0_i32 = arith.constant 0 : i32
    %c0_i32_0 = arith.constant 0 : i32
    %c0_i32_1 = arith.constant 0 : i32
    %c0_i32_2 = arith.constant 0 : i32
    return %c0_i32, %c0_i32_0, %c0_i32_1 : i32, i32, i32
  }
  func.func @transform_4(%arg0: i32) -> (i32, i32, i32) {
    %c0_i32 = arith.constant 0 : i32
    %c0_i32_0 = arith.constant 0 : i32
    %c0_i32_1 = arith.constant 0 : i32
    %c0_i32_2 = arith.constant 0 : i32
    return %c0_i32, %c0_i32_0, %c0_i32_1 : i32, i32, i32
  }
  func.func @transform_5(%arg0: i32) -> (i32, i32, i32) {
    %c0_i32 = arith.constant 0 : i32
    %c0_i32_0 = arith.constant 0 : i32
    %c0_i32_1 = arith.constant 0 : i32
    %c0_i32_2 = arith.constant 0 : i32
    return %c0_i32, %c0_i32_0, %c0_i32_1 : i32, i32, i32
  }
  func.func @transform_6(%arg0: i32) -> (i32, i32, i32) {
    %c0_i32 = arith.constant 0 : i32
    %c0_i32_0 = arith.constant 0 : i32
    %c0_i32_1 = arith.constant 0 : i32
    %c0_i32_2 = arith.constant 0 : i32
    return %c0_i32, %c0_i32_0, %c0_i32_1 : i32, i32, i32
  }
  func.func @transform_7(%arg0: i32) -> (i32, i32) {
    %c0_i32 = arith.constant 0 : i32
    %c0_i32_0 = arith.constant 0 : i32
    %c0_i32_1 = arith.constant 0 : i32
    return %c0_i32, %c0_i32_0 : i32, i32
  }
  func.func @transform_8(%arg0: i32) -> (i32, i32) {
    %c0_i32 = arith.constant 0 : i32
    %c0_i32_0 = arith.constant 0 : i32
    %c0_i32_1 = arith.constant 0 : i32
    return %c0_i32, %c0_i32_0 : i32, i32
  }
  func.func @transform_9(%arg0: i32) -> (i32, i32) {
    %c0_i32 = arith.constant 0 : i32
    %c0_i32_0 = arith.constant 0 : i32
    %c0_i32_1 = arith.constant 0 : i32
    return %c0_i32, %c0_i32_0 : i32, i32
  }
}

</mosaic_0001>

<bundles_post_ra>
// kernel: speech_recognition_forward.1
= control target key start
LH: loop header
LB: loop body
LE: loop exit
PB: predicated region body
PF: predicated region fallthrough
CT: control target
= control target key end

     0   :  { %vm43_vm0 = vcmask 523264   ;;  %s4852_s0 = inlined_call_operand.vmem [shape: f32[32,64], index: 0, kind: input, shape index: {}]   ;;  %s4853_s1 = inlined_call_operand.vmem [shape: f32[32,32], index: 1, kind: input, shape index: {}]   ;;  %s4854_s2 = inlined_call_operand.vmem [shape: bf16[2,64,192], index: 2, kind: input, shape index: {}]   ;;  %s4855_s3 = inlined_call_operand.vmem [shape: bf16[2,64,64], index: 3, kind: input, shape index: {}]   ;;  %s4856_s4 = inlined_call_operand.vmem [shape: bf16[2,64,128], index: 4, kind: input, shape index: {}]   ;;  %s4857_s5 = inlined_call_operand.vmem [shape: bf16[2,128,64], index: 5, kind: input, shape index: {}]   ;;  %s4858_s6 = inlined_call_operand.vmem [shape: f32[2,8,192], index: 6, kind: input, shape index: {}]   ;;  %s4859_s7 = inlined_call_operand.vmem [shape: f32[5,64], index: 7, kind: input, shape index: {}]   ;;  %s4860_s8 = inlined_call_operand.vmem [shape: f32[64,4], index: 8, kind: input, shape index: {}]   ;;  %s4861_s9 = inlined_call_operand.hbm [shape: f32[2,4], index: 9, kind: output, shape index: {}]  }
   0x1   :  { %v34_v0 = vld [vmem:[%s4852_s0] sm:$0xff]  ;;  %v36_v1 = vld [vmem:[%s4852_s0 + $0x10] sm:$0xff]  ;;  %v35_v2 = vld [vmem:[%s4852_s0 + $0x8] sm:$0xff] }
   0x2   :  { %v44_v3 = vsel %vm43_vm0, %v34_v0, 0.0  ;;  %v50_v4 = vsel %vm43_vm0, %v36_v1, 0.0  ;;  %v37_v5 = vld [vmem:[%s4852_s0 + $0x18] sm:$0xff]  ;;  %v47_v6 = vsel %vm43_vm0, %v35_v2, 0.0 }
   0x3   :  { %45 = vadd.xlane.f32.xlu0 %v44_v3  ;;  %51 = vadd.xlane.f32.xlu1 %v50_v4  ;;  %v53_v7 = vsel %vm43_vm0, %v37_v5, 0.0 }
   0x7   :  { %48 = vadd.xlane.f32.xlu0 %v47_v6  ;;  %54 = vadd.xlane.f32.xlu1 %v53_v7 }
   0x8   :  { %14 = vsyncpa [#allocation3], 0  ;;  %v3638_v28 = vld [vmem:[%s4854_s2 + $0x4] ss:$8 sps:$4 sm:$0xff]   ;;  %v3640_v29 = vld [vmem:[%s4854_s2] ss:$8 sps:$4 sm:$0xff]   ;;  %v97_v42 = vlaneseq }
   0x9   :  { %211 = vmatprep.subr.bf16.mxu0 %v3638_v28  ;;  %v3641_v30 = vld [vmem:[%s4854_s2 + $0x14] ss:$8 sps:$4 sm:$0xff]   ;;  %v3643_v31 = vld [vmem:[%s4854_s2 + $0x10] ss:$8 sps:$4 sm:$0xff]   ;;  %v3644_v32 = vld [vmem:[%s4854_s2 + $0x24] ss:$8 sps:$4 sm:$0xff]  }
   0xa   :  { %212 = vmatpush1.bf16.msra.mxu0 %v3640_v29  ;;  %v3909_v33 = vmov 0   ;;  %v3646_v34 = vld [vmem:[%s4854_s2 + $0x20] ss:$8 sps:$4 sm:$0xff]   ;;  %v3647_v35 = vld [vmem:[%s4854_s2 + $0x34] ss:$8 sps:$4 sm:$0xff]   ;;  %v4024_v48 = vshrl.u32 %v97_v42, 7 }
   0xb   :  { %213 = vmatprep.subr.bf16.mxu0 %v3641_v30  ;;  %243 = vmatprep.mubr.bf16.mxu0 %v3909_v33  ;;  %v3649_v36 = vld [vmem:[%s4854_s2 + $0x30] ss:$8 sps:$4 sm:$0xff]   ;;  %v42_v52 = vld [vmem:[%s4859_s7] sm:$0x1f]  ;;  %vm274_vm1 = vcmask 130048   ;;  %s3910_s0 = smov 48  }
   0xc   :  { %v4027_v51 = vsub.s32 0, %v4024_v48  ;;  %v4034_v56 = vsub.s32 1, %v4024_v48  ;;  %s3911_s17 = smov 64   ;;  %s3912_s18 = smov 112   ;;  %vm336_vm2 = vcmask 261120   ;;  %vm1024_vm3 = vcmask 392192  }
   0xd   :  { %s3913_s19 = smov 96   ;;  %s3914_s20 = smov 32   ;;  %vm3918_vm4 = vmmov 0   ;;  %vm3012_vm5 = vcmask 25600  }
   0xe   :  { %214 = vmatpush1.bf16.msra.mxu0 %v3643_v31  ;;  %v100_v55 = vrot.slane %v42_v52, %v4027_v51  ;;  %v108_v60 = vrot.slane %v42_v52, %v4034_v56  ;;  %s3915_s29 = smov 16   ;;  %s3916_s30 = smov 80  }
   0xf   :  { %215 = vmatprep.subr.bf16.mxu0 %v3644_v32  ;;  %s3920_s25 = smov [#allocation2]  }
  0x10   :  { %s3020_s26 = sshll.u32 %s3920_s25, 4  ;;  %s3021_s26 = int_to_ptr.vmem [resolvable:$true] %s3020_s26 }
  0x11   :  { %p3890_p1 = scmp.lt.s32.totalorder %s3021_s26, %s3021_s26 }
  0x12   :  { %216 = vmatpush1.bf16.msra.mxu0 %v3646_v34 }
  0x13   :  { %217 = vmatprep.subr.bf16.mxu0 %v3647_v35 }
  0x16   :  { %218 = vmatpush1.bf16.msra.mxu0 %v3649_v36 }
  0x90   :  { %v46_v8 = vpop.xlane.xlu0 %45  ;;  %v52_v9 = vpop.xlane.xlu1 %51 }
  0x91   :  { %v57_v10 = vmul.f32 0.015625, %v46_v8  ;;  %v59_v11 = vmul.f32 0.015625, %v52_v9 }
  0x93   :  { %v61_v12 = vsub.f32 %v34_v0, %v57_v10  ;;  %v3987_v13 = vsub.f32 %v36_v1, %v59_v11  ;;  %v4057_v10 = vld [vmem:[%s4858_s6] sm:$0xff]  ;;  %v154_v11 = vld [vmem:[%s4858_s6 + $0x8] sm:$0xff] }
  0x94   :  { %v49_v14 = vpop.xlane.xlu0 %48  ;;  %v55_v15 = vpop.xlane.xlu1 %54 }
  0x95   :  { %v58_v16 = vmul.f32 0.015625, %v49_v14  ;;  %v60_v17 = vmul.f32 0.015625, %v55_v15  ;;  %v65_v18 = vmul.f32 %v61_v12, %v61_v12  ;;  %v67_v19 = vmul.f32 %v3987_v13, %v3987_v13 }
  0x96   :  { %v164_v14 = vrot.slane %v154_v11, %v4027_v51 }
  0x97   :  { %v62_v20 = vsub.f32 %v35_v2, %v58_v16  ;;  %v3991_v21 = vsub.f32 %v37_v5, %v60_v17  ;;  %v69_v22 = vsel %vm43_vm0, %v65_v18, 0.0  ;;  %v75_v23 = vsel %vm43_vm0, %v67_v19, 0.0 }
  0x98   :  { %70 = vadd.xlane.f32.xlu0 %v69_v22 }
  0x99   :  { %v66_v24 = vmul.f32 %v62_v20, %v62_v20  ;;  %v68_v25 = vmul.f32 %v3991_v21, %v3991_v21 }
  0x9b   :  { %v72_v26 = vsel %vm43_vm0, %v66_v24, 0.0  ;;  %v78_v27 = vsel %vm43_vm0, %v68_v25, 0.0 }
  0x9c   :  { %76 = vadd.xlane.f32.xlu0 %v75_v23  ;;  %73 = vadd.xlane.f32.xlu1 %v72_v26 }
  0xa0   :  { %79 = vadd.xlane.f32.xlu1 %v78_v27 }
 0x125   :  { %v71_v37 = vpop.xlane.xlu0 %70 }
 0x126   :  { %v81_v38 = vmul.f32 0.015625, %v71_v37 }
 0x128   :  { %v85_v39 = vadd.f32 1e-05, %v81_v38 }
 0x129   :  { %v74_v40 = vpop.xlane.xlu1 %73  ;;  %v77_v41 = vpop.xlane.xlu0 %76 }
 0x12a   :  { %3694 = vrsqrt.f32 %v85_v39  ;;  %v82_v43 = vmul.f32 0.015625, %v74_v40  ;;  %v83_v44 = vmul.f32 0.015625, %v77_v41 }
 0x12c   :  { %v86_v45 = vadd.f32 1e-05, %v82_v43  ;;  %v87_v46 = vadd.f32 1e-05, %v83_v44 }
 0x12d   :  { %v80_v47 = vpop.xlane.xlu1 %79 }
 0x12e   :  { %3696 = vrsqrt.f32 %v86_v45  ;;  %v84_v49 = vmul.f32 0.015625, %v80_v47 }
 0x12f   :  { %3698 = vrsqrt.f32 %v87_v46 }
 0x130   :  { %v88_v50 = vadd.f32 1e-05, %v84_v49 }
 0x132   :  { %3700 = vrsqrt.f32 %v88_v50 }
 0x134   :  { %v3695_v53 = vpop.eup %3694 }
 0x135   :  { %v93_v54 = vmul.f32 %v3695_v53, %v61_v12  ;;  %v160_v12 = vrot.slane %v4057_v10, %v4027_v51  ;;  %v4120_v53 = vld [vmem:[%s4853_s1 + $0x10] sm:$0xff] }
 0x137   :  { %v101_v59 = vmul.f32 %v100_v55, %v93_v54 }
 0x138   :  { %v3697_v57 = vpop.eup %3696 }
 0x139   :  { %v94_v58 = vmul.f32 %v3697_v57, %v62_v20  ;;  %v3699_v61 = vpop.eup %3698  ;;  %v4037_v0 = vadd.f32 %v108_v60, %v101_v59  ;;  %v4131_v59 = vld [vmem:[%s4853_s1 + $0x8] sm:$0xff] }
 0x13a   :  { %v95_v2 = vmul.f32 %v3699_v61, %v3987_v13 }
 0x13b   :  { %v102_v62 = vmul.f32 %v100_v55, %v94_v58 }
 0x13c   :  { %v3701_v63 = vpop.eup %3700  ;;  %v103_v6 = vmul.f32 %v100_v55, %v95_v2  ;;  %v4140_v2 = vld [vmem:[%s4853_s1 + $0x18] sm:$0xff] }
 0x13d   :  { %v4039_v1 = vadd.f32 %v108_v60, %v102_v62  ;;  %v96_v3 = vmul.f32 %v3701_v63, %v3991_v21 }
 0x13e   :  { %v4049_v8 = vadd.f32 %v108_v60, %v103_v6 }
 0x13f   :  { %v155_v4 = vpack.c.bf16 %v4039_v1, %v4037_v0  ;;  %v104_v5 = vmul.f32 %v100_v55, %v96_v3  ;;  %v4125_v55 = vld [vmem:[%s4853_s1] sm:$0xff] }
 0x141   :  { %3036 = vmatmul.mubr.msk.bf16.vlgmr.msra.gmra.mrb[0].mxu0 %vm43_vm0, %v155_v4  ;;  %v4047_v7 = vadd.f32 %v108_v60, %v104_v5 }
 0x142   :  { %253 = vmatprep.mubr.bf16.mxu0 %v3909_v33 }
 0x143   :  { %v156_v9 = vpack.c.bf16 %v4047_v7, %v4049_v8 }
 0x149   :  { %3037 = vmatmul.mubr.msk.bf16.gmra.mrb[4].mxu0 %vm43_vm0, %v156_v9 }
 0x214   :  { %v245_v13 = vpop.f32.mrb[0].mxu0 }
 0x215   :  { %v247_v15 = vpop.f32.mrb[1].mxu0  ;;  %v246_v17 = vadd.f32 %v245_v13, %v160_v12 }
 0x216   :  { %v249_v16 = vpop.f32.mrb[2].mxu0  ;;  %v248_v20 = vadd.f32 %v247_v15, %v164_v14 }
 0x217   :  { %v250_v18 = vadd.f32 %v249_v16, %v160_v12  ;;  %v251_v19 = vpop.f32.mrb[3].mxu0 }
 0x218   :  { %v252_v21 = vadd.f32 %v251_v19, %v164_v14 }
 0x219   :  { %v4065_v22 = vpack.c.bf16 %v250_v18, %v246_v17 }
 0x21a   :  { %v4067_v23 = vpack.c.bf16 %v252_v21, %v248_v20 }
 0x21b   :  { %442 = vrot.lane.b32.xlu1 %v4065_v22, %s3910_s0  ;;  %270 = vrot.lane.b32.xlu0 %v4065_v22, %s3911_s17 }
 0x21c   :  { %3290 = vmatprep.mubr.msk.bf16.mxu1 %vm274_vm1, %v4065_v22  ;;  %v255_v24 = vpop.f32.mrb[4].mxu0 }
 0x21d   :  { %v257_v25 = vpop.f32.mrb[5].mxu0  ;;  %v256_v27 = vadd.f32 %v255_v24, %v160_v12 }
 0x21e   :  { %v259_v26 = vpop.f32.mrb[6].mxu0  ;;  %v258_v30 = vadd.f32 %v257_v25, %v164_v14 }
 0x21f   :  { %v260_v28 = vadd.f32 %v259_v26, %v160_v12  ;;  %438 = vrot.lane.b32.xlu0 %v4065_v22, %s3912_s18  ;;  %v261_v29 = vpop.f32.mrb[7].mxu0 }
 0x220   :  { %v262_v31 = vadd.f32 %v261_v29, %v164_v14 }
 0x221   :  { %v4077_v32 = vpack.c.bf16 %v260_v28, %v256_v27 }
 0x222   :  { %v4079_v34 = vpack.c.bf16 %v262_v31, %v258_v30 }
 0x223   :  { %440 = vrot.lane.b32.xlu0 %v4077_v32, %s3912_s18  ;;  %272 = vrot.lane.b32.xlu1 %v4077_v32, %s3911_s17 }
 0x227   :  { %616 = vrot.lane.b32.xlu0 %v4065_v22, %s3913_s19  ;;  %444 = vrot.lane.b32.xlu1 %v4077_v32, %s3910_s0 }
 0x22b   :  { %620 = vrot.lane.b32.xlu1 %v4065_v22, %s3914_s20 }
 0x22f   :  { %622 = vrot.lane.b32.xlu1 %v4077_v32, %s3914_s20 }
 0x233   :  { %618 = vrot.lane.b32.xlu1 %v4077_v32, %s3913_s19 }
 0x28d   :  { %v443_v35 = vpop.permute.xlu1 %442  ;;  %v271_v36 = vpop.permute.xlu0 %270 }
 0x28e   :  { %3550 = vmatprep.subr.msk.bf16.mxu1 %vm274_vm1, %v271_v36  ;;  %3552 = vmatprep.subr.msk.bf16.mxu0 %vm274_vm1, %v443_v35  ;;  %v282_v37 = vsel %vm274_vm1, %v271_v36, 0  ;;  %v453_v38 = vsel %vm274_vm1, %v443_v35, 0 }
 0x28f   :  { %3287 = vmatpush3.bf16.xpose.msra.mxu1 %v282_v37  ;;  %3303 = vmatpush3.bf16.xpose.msra.mxu0 %v453_v38 }
 0x291   :  { %v439_v39 = vpop.permute.xlu0 %438 }
 0x292   :  { %3306 = vmatprep.mubr.msk.bf16.mxu0 %vm274_vm1, %v439_v39 }
 0x295   :  { %v273_v40 = vpop.permute.xlu1 %272  ;;  %v441_v44 = vpop.permute.xlu0 %440 }
 0x296   :  { %3551 = vmatprep.subr.msk.bf16.mxu1 %vm274_vm1, %v273_v40  ;;  %v285_v41 = vsel %vm274_vm1, %v273_v40, 0 }
 0x297   :  { %3289 = vmatpush3.bf16.xpose.msra.mxu1 %v285_v41 }
 0x298   :  { %3294 = vmatprep.subr.bf16.mxu1 %v4067_v23 }
 0x299   :  { %v445_v42 = vpop.permute.xlu1 %444  ;;  %v617_v47 = vpop.permute.xlu0 %616 }
 0x29a   :  { %3553 = vmatprep.subr.msk.bf16.mxu0 %vm274_vm1, %v445_v42  ;;  %v456_v43 = vsel %vm274_vm1, %v445_v42, 0 }
 0x29b   :  { %3305 = vmatpush3.bf16.xpose.msra.mxu0 %v456_v43 }
 0x29d   :  { %v621_v45 = vpop.permute.xlu1 %620 }
 0x29e   :  { %3291 = vmatmul.mubr.msk.bf16.vlgmr.msra.gmra.mrb[0].mxu1 %vm274_vm1, %v4077_v32  ;;  %3554 = vmatprep.subr.msk.bf16.mxu0 %vm274_vm1, %v621_v45  ;;  %v631_v46 = vsel %vm274_vm1, %v621_v45, 0 }
 0x29f   :  { %3295 = vmatpush3.bf16.msra.mxu1 %v4067_v23 }
 0x2a0   :  { %3296 = vmatprep.subr.bf16.mxu1 %v4079_v34 }
 0x2a1   :  { %v623_v49 = vpop.permute.xlu1 %622 }
 0x2a2   :  { %3307 = vmatmul.mubr.msk.bf16.vlgmr.msra.gmra.mrb[8].mxu0 %vm274_vm1, %v441_v44  ;;  %v634_v50 = vsel %vm274_vm1, %v623_v49, 0 }
 0x2a3   :  { %3297 = vmatpush3.bf16.msra.mxu1 %v4079_v34  ;;  %3319 = vmatpush3.bf16.xpose.msra.mxu0 %v631_v46 }
 0x2a4   :  { %3322 = vmatprep.mubr.msk.bf16.mxu0 %vm274_vm1, %v617_v47  ;;  %3555 = vmatprep.subr.msk.bf16.mxu0 %vm274_vm1, %v623_v49 }
 0x2a5   :  { %v619_v52 = vpop.permute.xlu1 %618 }
 0x2ab   :  { %3321 = vmatpush3.bf16.xpose.msra.mxu0 %v634_v50 }
 0x2b2   :  { %3323 = vmatmul.mubr.msk.bf16.vlgmr.msra.gmra.mrb[12].mxu0 %vm274_vm1, %v619_v52 }
 0x371   :  { %v3292_v54 = vpop.f32.mrb[0].mxu1 }
 0x372   :  { %v330_v57 = vadd.f32 %v3292_v54, %v4120_v53  ;;  %v321_v58 = vpop.f32.mrb[1].mxu1 }
 0x373   :  { %v3293_v60 = vpop.f32.mrb[2].mxu1  ;;  %v4134_v61 = vadd.f32 %v321_v58, %v4125_v55 }
 0x374   :  { %v324_v62 = vpop.f32.mrb[3].mxu1  ;;  %v343_v63 = vsel %vm336_vm2, %v330_v57, -inf  ;;  %v333_v11 = vadd.f32 %v3293_v60, %v4140_v2 }
 0x375   :  { %v325_v3 = vadd.f32 %v324_v62, %v4131_v59  ;;  %344 = vmax.xlane.f32.xlu0 %v343_v63  ;;  %v3308_v4 = vpop.f32.mrb[8].mxu0  ;;  %v337_v14 = vsel %vm336_vm2, %v4134_v61, -inf }
 0x376   :  { %v492_v5 = vpop.f32.mrb[9].mxu0  ;;  %v346_v18 = vsel %vm336_vm2, %v333_v11, -inf  ;;  %v501_v20 = vadd.f32 %v3308_v4, %v4120_v53 }
 0x377   :  { %v3309_v6 = vpop.f32.mrb[10].mxu0  ;;  %v340_v9 = vsel %vm336_vm2, %v325_v3, -inf  ;;  %v493_v17 = vadd.f32 %v492_v5, %v4125_v55 }
 0x378   :  { %v504_v12 = vadd.f32 %v3309_v6, %v4140_v2  ;;  %341 = vmax.xlane.f32.xlu1 %v340_v9  ;;  %v495_v13 = vpop.f32.mrb[11].mxu0  ;;  %v513_v24 = vsel %vm336_vm2, %v501_v20, -inf }
 0x379   :  { %338 = vmax.xlane.f32.xlu0 %v337_v14  ;;  %v496_v16 = vadd.f32 %v495_v13, %v4131_v59  ;;  %v507_v21 = vsel %vm336_vm2, %v493_v17, -inf }
 0x37a   :  { %v516_v15 = vsel %vm336_vm2, %v504_v12, -inf }
 0x37b   :  { %v510_v19 = vsel %vm336_vm2, %v496_v16, -inf }
 0x37c   :  { %517 = vmax.xlane.f32.xlu1 %v516_v15 }
 0x37d   :  { %347 = vmax.xlane.f32.xlu0 %v346_v18 }
 0x380   :  { %511 = vmax.xlane.f32.xlu1 %v510_v19 }
 0x381   :  { %508 = vmax.xlane.f32.xlu0 %v507_v21 }
 0x385   :  { %514 = vmax.xlane.f32.xlu0 %v513_v24  ;;  %v3324_v25 = vpop.f32.mrb[12].mxu0 }
 0x386   :  { %v670_v26 = vpop.f32.mrb[13].mxu0  ;;  %v4161_v31 = vadd.f32 %v3324_v25, %v4120_v53 }
 0x387   :  { %v4157_v27 = vadd.f32 %v670_v26, %v4125_v55  ;;  %v3325_v28 = vpop.f32.mrb[14].mxu0 }
 0x388   :  { %v682_v29 = vadd.f32 %v3325_v28, %v4140_v2  ;;  %v673_v30 = vpop.f32.mrb[15].mxu0  ;;  %v691_v38 = vsel %vm336_vm2, %v4161_v31, -inf }
 0x389   :  { %v685_v35 = vsel %vm336_vm2, %v4157_v27, -inf  ;;  %v674_v36 = vadd.f32 %v673_v30, %v4131_v59 }
 0x38a   :  { %686 = vmax.xlane.f32.xlu0 %v685_v35  ;;  %v694_v37 = vsel %vm336_vm2, %v682_v29, -inf }
 0x38b   :  { %695 = vmax.xlane.f32.xlu1 %v694_v37  ;;  %v688_v39 = vsel %vm336_vm2, %v674_v36, -inf }
 0x38e   :  { %692 = vmax.xlane.f32.xlu0 %v691_v38 }
 0x38f   :  { %689 = vmax.xlane.f32.xlu1 %v688_v39 }
 0x3a0   :  { %557 = vrot.lane.b32.xlu1 %v4079_v34, %s3912_s18 }
 0x3a4   :  { %731 = vrot.lane.b32.xlu1 %v4067_v23, %s3913_s19 }
 0x402   :  { %v345_v40 = vpop.xlane.xlu0 %344 }
 0x403   :  { %v351_v41 = vsub.f32 %v330_v57, %v345_v40 }
 0x405   :  { %v357_v42 = vmul.f32 1.442695, %v351_v41  ;;  %v342_v43 = vpop.xlane.xlu1 %341 }
 0x406   :  { %v339_v44 = vpop.xlane.xlu0 %338  ;;  %v350_v50 = vsub.f32 %v325_v3, %v342_v43 }
 0x407   :  { %3702 = vpow2.f32 %v357_v42  ;;  %v349_v62 = vsub.f32 %v4134_v61, %v339_v44 }
 0x408   :  { %v355_v4 = vmul.f32 1.442695, %v350_v50 }
 0x409   :  { %v518_v45 = vpop.xlane.xlu1 %517 }
 0x40a   :  { %v522_v46 = vsub.f32 %v504_v12, %v518_v45  ;;  %v348_v47 = vpop.xlane.xlu0 %347 }
 0x40b   :  { %v352_v49 = vsub.f32 %v333_v11, %v348_v47  ;;  %v353_v11 = vmul.f32 1.442695, %v349_v62 }
 0x40c   :  { %v529_v52 = vmul.f32 1.442695, %v522_v46 }
 0x40d   :  { %v359_v54 = vmul.f32 1.442695, %v352_v49  ;;  %v512_v58 = vpop.xlane.xlu1 %511 }
 0x40e   :  { %v509_v60 = vpop.xlane.xlu0 %508  ;;  %v520_v57 = vsub.f32 %v496_v16, %v512_v58 }
 0x40f   :  { %3704 = vpow2.f32 %v359_v54  ;;  %v519_v3 = vsub.f32 %v493_v17, %v509_v60 }
 0x410   :  { %3706 = vpow2.f32 %v529_v52  ;;  %v525_v12 = vmul.f32 1.442695, %v520_v57 }
 0x411   :  { %v4175_v63 = vpop.eup %3702  ;;  %3708 = vpow2.f32 %v355_v4  ;;  %v523_v14 = vmul.f32 1.442695, %v519_v3 }
 0x412   :  { %v515_v5 = vpop.xlane.xlu0 %514  ;;  %v367_v6 = vsel %vm336_vm2, %v4175_v63, 0.0 }
 0x413   :  { %v521_v9 = vsub.f32 %v501_v20, %v515_v5  ;;  %368 = vadd.xlane.f32.xlu0 %v367_v6 }
 0x415   :  { %v527_v13 = vmul.f32 1.442695, %v521_v9 }
 0x417   :  { %3710 = vpow2.f32 %v527_v13  ;;  %v687_v45 = vpop.xlane.xlu0 %686 }
 0x418   :  { %3712 = vpow2.f32 %v353_v11  ;;  %v696_v61 = vpop.xlane.xlu1 %695  ;;  %v697_v49 = vsub.f32 %v4157_v27, %v687_v45 }
 0x419   :  { %v4179_v15 = vpop.eup %3704  ;;  %3714 = vpow2.f32 %v525_v12  ;;  %v700_v18 = vsub.f32 %v682_v29, %v696_v61 }
 0x41a   :  { %v370_v16 = vsel %vm336_vm2, %v4179_v15, 0.0  ;;  %v4183_v19 = vpop.eup %3706  ;;  %3716 = vpow2.f32 %v523_v14  ;;  %v701_v52 = vmul.f32 1.442695, %v697_v49 }
 0x41b   :  { %v707_v20 = vmul.f32 1.442695, %v700_v18  ;;  %371 = vadd.xlane.f32.xlu1 %v370_v16  ;;  %v540_v24 = vsel %vm336_vm2, %v4183_v19, 0.0  ;;  %v4187_v25 = vpop.eup %3708  ;;  %v693_v46 = vpop.xlane.xlu0 %692 }
 0x41c   :  { %v690_v17 = vpop.xlane.xlu1 %689  ;;  %v364_v30 = vsel %vm336_vm2, %v4187_v25, 0.0  ;;  %v699_v47 = vsub.f32 %v4161_v31, %v693_v46 }
 0x41d   :  { %3718 = vpow2.f32 %v707_v20  ;;  %v698_v21 = vsub.f32 %v674_v36, %v690_v17 }
 0x41e   :  { %v705_v50 = vmul.f32 1.442695, %v699_v47 }
 0x41f   :  { %v703_v26 = vmul.f32 1.442695, %v698_v21  ;;  %541 = vadd.xlane.f32.xlu1 %v540_v24 }
 0x421   :  { %v4189_v28 = vpop.eup %3710  ;;  %3720 = vpow2.f32 %v703_v26 }
 0x422   :  { %v4191_v29 = vpop.eup %3712  ;;  %v537_v35 = vsel %vm336_vm2, %v4189_v28, 0.0  ;;  %3722 = vpow2.f32 %v705_v50 }
 0x423   :  { %v4197_v37 = vpop.eup %3714  ;;  %365 = vadd.xlane.f32.xlu1 %v364_v30  ;;  %538 = vadd.xlane.f32.xlu0 %v537_v35  ;;  %v361_v39 = vsel %vm336_vm2, %v4191_v29, 0.0  ;;  %3724 = vpow2.f32 %v701_v52 }
 0x424   :  { %v4199_v36 = vpop.eup %3716  ;;  %v534_v38 = vsel %vm336_vm2, %v4197_v37, 0.0 }
 0x425   :  { %v531_v42 = vsel %vm336_vm2, %v4199_v36, 0.0 }
 0x427   :  { %v4205_v40 = vpop.eup %3718  ;;  %535 = vadd.xlane.f32.xlu1 %v534_v38  ;;  %362 = vadd.xlane.f32.xlu0 %v361_v39 }
 0x428   :  { %v718_v41 = vsel %vm336_vm2, %v4205_v40, 0.0 }
 0x42b   :  { %v4211_v43 = vpop.eup %3720  ;;  %719 = vadd.xlane.f32.xlu1 %v718_v41  ;;  %532 = vadd.xlane.f32.xlu0 %v531_v42 }
 0x42c   :  { %v712_v44 = vsel %vm336_vm2, %v4211_v43, 0.0  ;;  %v4225_v54 = vpop.eup %3722 }
 0x42d   :  { %v715_v58 = vsel %vm336_vm2, %v4225_v54, 0.0  ;;  %v4229_v60 = vpop.eup %3724 }
 0x42e   :  { %v709_v62 = vsel %vm336_vm2, %v4229_v60, 0.0 }
 0x42f   :  { %713 = vadd.xlane.f32.xlu1 %v712_v44 }
 0x440   :  { %733 = vrot.lane.b32.xlu1 %v4079_v34, %s3913_s19 }
 0x441   :  { %555 = vrot.lane.b32.xlu0 %v4067_v23, %s3912_s18 }
 0x444   :  { %798 = vrot.lane.b32.xlu1 %v4077_v32, %s3915_s29 }
 0x448   :  { %794 = vrot.lane.b32.xlu1 %v4077_v32, %s3916_s30  ;;  %v558_v32 = vpop.permute.xlu1 %557 }
 0x44c   :  { %v732_v27 = vpop.permute.xlu1 %731 }
 0x460   :  { %716 = vadd.xlane.f32.xlu0 %v715_v58 }
 0x464   :  { %710 = vadd.xlane.f32.xlu0 %v709_v62 }
 0x47a   :  { %796 = vrot.lane.b32.xlu0 %v4065_v22, %s3915_s29 }
 0x47e   :  { %792 = vrot.lane.b32.xlu0 %v4065_v22, %s3916_s30 }
 0x4a0   :  { %v369_v4 = vpop.xlane.xlu0 %368 }
 0x4a8   :  { %v372_v31 = vpop.xlane.xlu1 %371 }
 0x4a9   :  { %3726 = vrcp.f32 %v372_v31 }
 0x4ac   :  { %v542_v57 = vpop.xlane.xlu1 %541 }
 0x4b0   :  { %v366_v5 = vpop.xlane.xlu1 %365  ;;  %v539_v6 = vpop.xlane.xlu0 %538 }
 0x4b1   :  { %3728 = vrcp.f32 %v366_v5 }
 0x4b2   :  { %3730 = vrcp.f32 %v369_v4 }
 0x4b3   :  { %v3727_v13 = vpop.eup %3726 }
 0x4b4   :  { %v363_v9 = vpop.xlane.xlu0 %362  ;;  %v536_v11 = vpop.xlane.xlu1 %535  ;;  %v380_v18 = vmul.f32 %v3727_v13, %v4179_v15 }
 0x4b5   :  { %3732 = vrcp.f32 %v363_v9 }
 0x4b6   :  { %3734 = vrcp.f32 %v536_v11 }
 0x4b8   :  { %v533_v3 = vpop.xlane.xlu0 %532  ;;  %v720_v24 = vpop.xlane.xlu1 %719 }
 0x4b9   :  { %3736 = vrcp.f32 %v533_v3 }
 0x4ba   :  { %3738 = vrcp.f32 %v539_v6 }
 0x4bb   :  { %3740 = vrcp.f32 %v542_v57  ;;  %v3729_v22 = vpop.eup %3728 }
 0x4bc   :  { %v556_v12 = vpop.permute.xlu0 %555  ;;  %v3731_v14 = vpop.eup %3730  ;;  %v378_v20 = vmul.f32 %v3729_v22, %v4187_v25 }
 0x4bd   :  { %3310 = vmatprep.subr.bf16.mxu1 %v556_v12  ;;  %v379_v21 = vmul.f32 %v3731_v14, %v4175_v63  ;;  %v714_v63 = vpop.xlane.xlu1 %713 }
 0x4bf   :  { %v3733_v61 = vpop.eup %3732  ;;  %v382_v35 = vpack.c.bf16 %v380_v18, %v379_v21 }
 0x4c0   :  { %v377_v16 = vmul.f32 %v3733_v61, %v4191_v29  ;;  %v3735_v17 = vpop.eup %3734 }
 0x4c1   :  { %v548_v41 = vmul.f32 %v3735_v17, %v4197_v37 }
 0x4c2   :  { %v381_v26 = vpack.c.bf16 %v378_v20, %v377_v16 }
 0x4c3   :  { %v3737_v30 = vpop.eup %3736 }
 0x4c4   :  { %v3739_v38 = vpop.eup %3738  ;;  %3298 = vmatprep.mubr.msk.bf16.mxu1 %vm336_vm2, %v381_v26  ;;  %v547_v39 = vmul.f32 %v3737_v30, %v4199_v36  ;;  %v734_v36 = vpop.permute.xlu1 %733 }
 0x4c5   :  { %3299 = vmatmul.mubr.msk.bf16.vlgmr.msra.gmra.mrb[4].mxu1 %vm336_vm2, %v382_v35  ;;  %v3741_v15 = vpop.eup %3740  ;;  %v549_v25 = vmul.f32 %v3739_v38, %v4189_v28 }
 0x4c6   :  { %3311 = vmatpush3.bf16.msra.mxu1 %v556_v12  ;;  %v551_v29 = vpack.c.bf16 %v548_v41, %v547_v39  ;;  %v550_v42 = vmul.f32 %v3741_v15, %v4183_v19 }
 0x4c7   :  { %3312 = vmatprep.subr.bf16.mxu1 %v558_v32 }
 0x4c8   :  { %3314 = vmatprep.mubr.msk.bf16.mxu1 %vm336_vm2, %v551_v29  ;;  %v552_v44 = vpack.c.bf16 %v550_v42, %v549_v25  ;;  %v799_v57 = vpop.permute.xlu1 %798 }
 0x4ca   :  { %3313 = vmatpush3.bf16.msra.mxu1 %v558_v32 }
 0x4cb   :  { %3326 = vmatprep.subr.bf16.mxu1 %v732_v27 }
 0x4cd   :  { %3315 = vmatmul.mubr.msk.bf16.vlgmr.msra.gmra.mrb[8].mxu1 %vm336_vm2, %v552_v44 }
 0x4ce   :  { %3327 = vmatpush3.bf16.msra.mxu1 %v732_v27 }
 0x4cf   :  { %3328 = vmatprep.subr.bf16.mxu1 %v734_v36 }
 0x4d2   :  { %3329 = vmatpush3.bf16.msra.mxu1 %v734_v36 }
 0x4ed   :  { %v717_v37 = vpop.xlane.xlu0 %716 }
 0x4ee   :  { %3742 = vrcp.f32 %v717_v37 }
 0x4ef   :  { %3744 = vrcp.f32 %v714_v63 }
 0x4f0   :  { %3746 = vrcp.f32 %v720_v24 }
 0x4f1   :  { %v711_v28 = vpop.xlane.xlu0 %710 }
 0x4f2   :  { %3748 = vrcp.f32 %v711_v28 }
 0x4f5   :  { %v797_v45 = vpop.permute.xlu0 %796 }
 0x4f6   :  { %3556 = vmatprep.subr.msk.bf16.mxu1 %vm274_vm1, %v797_v45  ;;  %v807_v4 = vsel %vm274_vm1, %v797_v45, 0 }
 0x4f8   :  { %v3743_v46 = vpop.eup %3742 }
 0x4f9   :  { %v3745_v19 = vpop.eup %3744  ;;  %v727_v50 = vmul.f32 %v3743_v46, %v4225_v54  ;;  %v793_v31 = vpop.permute.xlu0 %792  ;;  %v810_v54 = vsel %vm274_vm1, %v799_v57, 0 }
 0x4fa   :  { %v3747_v47 = vpop.eup %3746  ;;  %v726_v58 = vmul.f32 %v3745_v19, %v4211_v43  ;;  %v795_v43 = vpop.permute.xlu1 %794 }
 0x4fb   :  { %v728_v62 = vmul.f32 %v3747_v47, %v4205_v40 }
 0x4fc   :  { %v3749_v49 = vpop.eup %3748 }
 0x4fd   :  { %v725_v52 = vmul.f32 %v3749_v49, %v4229_v60  ;;  %v730_v27 = vpack.c.bf16 %v728_v62, %v727_v50 }
 0x4ff   :  { %v729_v32 = vpack.c.bf16 %v726_v58, %v725_v52 }
 0x501   :  { %3330 = vmatprep.mubr.msk.bf16.mxu1 %vm336_vm2, %v729_v32 }
 0x502   :  { %3331 = vmatmul.mubr.msk.bf16.vlgmr.msra.gmra.mrb[12].mxu1 %vm336_vm2, %v730_v27 }
 0x503   :  { %3335 = vmatpush3.bf16.xpose.msra.mxu1 %v807_v4  ;;  %3338 = vmatprep.mubr.msk.bf16.mxu1 %vm274_vm1, %v793_v31 }
 0x504   :  { %3557 = vmatprep.subr.msk.bf16.mxu1 %vm274_vm1, %v799_v57 }
 0x50b   :  { %3337 = vmatpush3.bf16.xpose.msra.mxu1 %v810_v54 }
 0x512   :  { %3339 = vmatmul.mubr.msk.bf16.vlgmr.msra.gmra.mrb[16].mxu1 %vm274_vm1, %v795_v43 }
 0x598   :  { %v4261_v40 = vpop.f32.mrb[4].mxu1 }
 0x599   :  { %v4263_v60 = vpop.f32.mrb[5].mxu1 }
 0x59a   :  { %v4265_v5 = vpop.f32.mrb[6].mxu1 }
 0x59b   :  { %v4267_v6 = vpop.f32.mrb[7].mxu1 }
 0x5a0   :  { %v3316_v9 = vpop.f32.mrb[8].mxu1 }
 0x5a1   :  { %v601_v11 = vpop.f32.mrb[9].mxu1 }
 0x5a2   :  { %v3317_v3 = vpop.f32.mrb[10].mxu1 }
 0x5a3   :  { %v3583_v12 = vpack.i.bf16 %v3317_v3, %v3316_v9  ;;  %v604_v13 = vpop.f32.mrb[11].mxu1 }
 0x5a4   :  { %v3578_v22 = vpack.i.bf16 %v604_v13, %v601_v11 }
 0x5d5   :  { %v3332_v14 = vpop.f32.mrb[12].mxu1 }
 0x5d6   :  { %v777_v61 = vpop.f32.mrb[13].mxu1 }
 0x5d7   :  { %v3333_v18 = vpop.f32.mrb[14].mxu1 }
 0x5d8   :  { %v3593_v16 = vpack.i.bf16 %v3333_v18, %v3332_v14  ;;  %v780_v20 = vpop.f32.mrb[15].mxu1 }
 0x5d9   :  { %v3588_v17 = vpack.i.bf16 %v780_v20, %v777_v61  ;;  %v3651_v20 = vld [vmem:[%s4855_s3 + $0x8] sm:$0xff]  }
 0x5e5   :  { %v3340_v21 = vpop.f32.mrb[16].mxu1 }
 0x5e6   :  { %v846_v24 = vpop.f32.mrb[17].mxu1  ;;  %v855_v38 = vadd.f32 %v3340_v21, %v4120_v53  ;;  %v3653_v21 = vld [vmem:[%s4855_s3 + $0x18] sm:$0xff]  }
 0x5e7   :  { %v847_v26 = vadd.f32 %v846_v24, %v4125_v55  ;;  %v3341_v30 = vpop.f32.mrb[18].mxu1 }
 0x5e8   :  { %v849_v35 = vpop.f32.mrb[19].mxu1  ;;  %v858_v29 = vadd.f32 %v3341_v30, %v4140_v2  ;;  %v867_v25 = vsel %vm336_vm2, %v855_v38, -inf }
 0x5e9   :  { %v850_v39 = vadd.f32 %v849_v35, %v4131_v59  ;;  %v861_v41 = vsel %vm336_vm2, %v847_v26, -inf }
 0x5ea   :  { %862 = vmax.xlane.f32.xlu0 %v861_v41  ;;  %v870_v63 = vsel %vm336_vm2, %v858_v29, -inf }
 0x5eb   :  { %v864_v15 = vsel %vm336_vm2, %v850_v39, -inf }
 0x5ec   :  { %865 = vmax.xlane.f32.xlu1 %v864_v15 }
 0x5ee   :  { %868 = vmax.xlane.f32.xlu0 %v867_v25 }
 0x5f2   :  { %871 = vmax.xlane.f32.xlu0 %v870_v63 }
 0x677   :  { %v863_v55 = vpop.xlane.xlu0 %862 }
 0x678   :  { %v873_v42 = vsub.f32 %v847_v26, %v863_v55 }
 0x679   :  { %v866_v44 = vpop.xlane.xlu1 %865 }
 0x67a   :  { %v877_v59 = vmul.f32 1.442695, %v873_v42  ;;  %v874_v37 = vsub.f32 %v850_v39, %v866_v44 }
 0x67b   :  { %v869_v53 = vpop.xlane.xlu0 %868 }
 0x67c   :  { %v875_v36 = vsub.f32 %v855_v38, %v869_v53  ;;  %v879_v19 = vmul.f32 1.442695, %v874_v37 }
 0x67e   :  { %v881_v28 = vmul.f32 1.442695, %v875_v36 }
 0x67f   :  { %v872_v45 = vpop.xlane.xlu0 %871 }
 0x680   :  { %3750 = vpow2.f32 %v881_v28  ;;  %v876_v46 = vsub.f32 %v858_v29, %v872_v45 }
 0x681   :  { %3752 = vpow2.f32 %v877_v59 }
 0x682   :  { %v883_v2 = vmul.f32 1.442695, %v876_v46 }
 0x684   :  { %3754 = vpow2.f32 %v883_v2 }
 0x685   :  { %3756 = vpow2.f32 %v879_v19 }
 0x68a   :  { %v3751_v47 = vpop.eup %3750 }
 0x68b   :  { %v891_v49 = vsel %vm336_vm2, %v3751_v47, 0.0  ;;  %v3753_v50 = vpop.eup %3752 }
 0x68c   :  { %892 = vadd.xlane.f32.xlu0 %v891_v49  ;;  %v885_v58 = vsel %vm336_vm2, %v3753_v50, 0.0 }
 0x68e   :  { %v3755_v52 = vpop.eup %3754 }
 0x68f   :  { %v894_v62 = vsel %vm336_vm2, %v3755_v52, 0.0  ;;  %v3757_v32 = vpop.eup %3756 }
 0x690   :  { %886 = vadd.xlane.f32.xlu0 %v885_v58  ;;  %895 = vadd.xlane.f32.xlu1 %v894_v62  ;;  %v888_v27 = vsel %vm336_vm2, %v3757_v32, 0.0 }
 0x694   :  { %889 = vadd.xlane.f32.xlu1 %v888_v27 }
 0x6a5   :  { %909 = vrot.lane.b32.xlu1 %v4079_v34, %s3916_s30 }
 0x6a6   :  { %907 = vrot.lane.b32.xlu0 %v4067_v23, %s3916_s30 }
 0x6a9   :  { %3579 = vrot.lane.b32.xlu1 %v3578_v22, %s3915_s29 }
 0x6aa   :  { %3589 = vrot.lane.b32.xlu0 %v3588_v17, %s3914_s20  ;;  %v3652_v17 = vld [vmem:[%s4855_s3 + $0x10] sm:$0xff]  }
 0x6ad   :  { %3584 = vrot.lane.b32.xlu1 %v3583_v12, %s3915_s29 }
 0x6b1   :  { %3594 = vrot.lane.b32.xlu1 %v3593_v16, %s3914_s20  ;;  %v3650_v16 = vld [vmem:[%s4855_s3] sm:$0xff]  }
 0x6b2   :  { %3350 = vmatprep.subr.bf16.mxu0 %v3650_v16 }
 0x6b3   :  { %3351 = vmatpush3.bf16.msra.mxu0 %v3650_v16 }
 0x6b4   :  { %3352 = vmatprep.subr.bf16.mxu0 %v3651_v20 }
 0x6b7   :  { %3353 = vmatpush3.bf16.msra.mxu0 %v3651_v20 }
 0x6b8   :  { %3354 = vmatprep.subr.bf16.mxu0 %v3652_v17 }
 0x6bb   :  { %3355 = vmatpush3.bf16.msra.mxu0 %v3652_v17 }
 0x6bc   :  { %3356 = vmatprep.subr.bf16.mxu0 %v3653_v21 }
 0x6bf   :  { %3357 = vmatpush3.bf16.msra.mxu0 %v3653_v21 }
 0x719   :  { %v893_v31 = vpop.xlane.xlu0 %892 }
 0x71d   :  { %v896_v4 = vpop.xlane.xlu1 %895  ;;  %v887_v57 = vpop.xlane.xlu0 %886 }
 0x71e   :  { %3758 = vrcp.f32 %v896_v4 }
 0x71f   :  { %3760 = vrcp.f32 %v887_v57 }
 0x720   :  { %3762 = vrcp.f32 %v893_v31 }
 0x721   :  { %v890_v54 = vpop.xlane.xlu1 %889  ;;  %v908_v43 = vpop.permute.xlu0 %907 }
 0x722   :  { %3764 = vrcp.f32 %v890_v54  ;;  %3342 = vmatprep.subr.bf16.mxu1 %v908_v43  ;;  %v1034_v54 = vrot.slane %v4057_v10, %v4034_v56 }
 0x723   :  { %3343 = vmatpush3.bf16.msra.mxu1 %v908_v43 }
 0x725   :  { %v910_v23 = vpop.permute.xlu1 %909  ;;  %v3590_v25 = vpop.permute.xlu0 %3589 }
 0x726   :  { %3344 = vmatprep.subr.bf16.mxu1 %v910_v23  ;;  %v3592_v59 = vunpack.i.h.bf16 %v3590_v25  ;;  %v3591_v37 = vunpack.i.l.bf16 %v3590_v25 }
 0x727   :  { %3345 = vmatpush3.bf16.msra.mxu1 %v910_v23 }
 0x728   :  { %v3759_v34 = vpop.eup %3758 }
 0x729   :  { %v3761_v9 = vpop.eup %3760  ;;  %v904_v12 = vmul.f32 %v3759_v34, %v3755_v52  ;;  %v3580_v41 = vpop.permute.xlu1 %3579 }
 0x72a   :  { %v3763_v11 = vpop.eup %3762  ;;  %v901_v13 = vmul.f32 %v3761_v9, %v3753_v50  ;;  %v3582_v63 = vunpack.i.h.bf16 %v3580_v41  ;;  %v3581_v55 = vunpack.i.l.bf16 %v3580_v41 }
 0x72b   :  { %v903_v14 = vmul.f32 %v3763_v11, %v3751_v47 }
 0x72c   :  { %v3765_v3 = vpop.eup %3764  ;;  %v1017_v28 = vsel %vm274_vm1, %v4267_v6, %v3582_v63  ;;  %v1016_v45 = vsel %vm274_vm1, %v4263_v60, %v3581_v55 }
 0x72d   :  { %v902_v22 = vmul.f32 %v3765_v3, %v3757_v32  ;;  %v906_v18 = vpack.c.bf16 %v904_v12, %v903_v14  ;;  %v3585_v15 = vpop.permute.xlu1 %3584  ;;  %v1020_v27 = vsel %vm336_vm2, %v1016_v45, %v3591_v37  ;;  %v3656_v37 = vld [vmem:[%s4856_s4 + $0x10] sm:$0xff]  }
 0x72e   :  { %v3587_v42 = vunpack.i.h.bf16 %v3585_v15  ;;  %v3586_v44 = vunpack.i.l.bf16 %v3585_v15 }
 0x72f   :  { %v905_v61 = vpack.c.bf16 %v902_v22, %v901_v13 }
 0x730   :  { %v1019_v19 = vsel %vm274_vm1, %v4265_v5, %v3587_v42  ;;  %v1018_v2 = vsel %vm274_vm1, %v4261_v40, %v3586_v44  ;;  %v1021_v5 = vsel %vm336_vm2, %v1017_v28, %v3592_v59  ;;  %v3655_v59 = vld [vmem:[%s4856_s4 + $0x8] sm:$0xff]   ;;  %v3657_v28 = vld [vmem:[%s4856_s4 + $0x18] sm:$0xff]  }
 0x731   :  { %3346 = vmatprep.mubr.msk.bf16.mxu1 %vm336_vm2, %v905_v61  ;;  %v3595_v29 = vpop.permute.xlu1 %3594 }
 0x732   :  { %3347 = vmatmul.mubr.msk.bf16.vlgmr.msra.gmra.mrb[20].mxu1 %vm336_vm2, %v906_v18  ;;  %v3597_v53 = vunpack.i.h.bf16 %v3595_v29  ;;  %v3596_v36 = vunpack.i.l.bf16 %v3595_v29 }
 0x734   :  { %v1022_v52 = vsel %vm336_vm2, %v1018_v2, %v3596_v36  ;;  %v1023_v58 = vsel %vm336_vm2, %v1019_v19, %v3597_v53  ;;  %v3654_v36 = vld [vmem:[%s4856_s4] sm:$0xff]  }
 0x735   :  { %3362 = vmatprep.subr.bf16.mxu1 %v3654_v36 }
 0x736   :  { %3363 = vmatpush3.bf16.msra.mxu1 %v3654_v36 }
 0x737   :  { %3364 = vmatprep.subr.bf16.mxu1 %v3655_v59 }
 0x73a   :  { %3365 = vmatpush3.bf16.msra.mxu1 %v3655_v59 }
 0x73b   :  { %3366 = vmatprep.subr.bf16.mxu1 %v3656_v37 }
 0x73e   :  { %3367 = vmatpush3.bf16.msra.mxu1 %v3656_v37 }
 0x73f   :  { %3368 = vmatprep.subr.bf16.mxu1 %v3657_v28 }
 0x742   :  { %3369 = vmatpush3.bf16.msra.mxu1 %v3657_v28 }
 0x805   :  { %v3348_v24 = vpop.f32.mrb[20].mxu1 }
 0x806   :  { %v953_v26 = vpop.f32.mrb[21].mxu1 }
 0x807   :  { %v3349_v30 = vpop.f32.mrb[22].mxu1 }
 0x808   :  { %v3603_v35 = vpack.i.bf16 %v3349_v30, %v3348_v24  ;;  %v956_v38 = vpop.f32.mrb[23].mxu1 }
 0x809   :  { %v3598_v39 = vpack.i.bf16 %v956_v38, %v953_v26 }
 0x80a   :  { %3604 = vrot.lane.b32.xlu1 %v3603_v35, %s3910_s0 }
 0x80b   :  { %3599 = vrot.lane.b32.xlu0 %v3598_v39, %s3910_s0 }
 0x87c   :  { %v3605_v46 = vpop.permute.xlu1 %3604 }
 0x87d   :  { %v3607_v47 = vunpack.i.h.bf16 %v3605_v46  ;;  %v3606_v49 = vunpack.i.l.bf16 %v3605_v46  ;;  %v3600_v50 = vpop.permute.xlu0 %3599 }
 0x87e   :  { %v3602_v62 = vunpack.i.h.bf16 %v3600_v50  ;;  %v3601_v6 = vunpack.i.l.bf16 %v3600_v50 }
 0x87f   :  { %v1028_v32 = vsel %vm1024_vm3, %v1023_v58, %v3607_v47  ;;  %v1027_v60 = vsel %vm1024_vm3, %v1022_v52, %v3606_v49 }
 0x880   :  { %v1030_v31 = vpack.c.bf16 %v1028_v32, %v1027_v60  ;;  %v1025_v40 = vsel %vm1024_vm3, %v1020_v27, %v3601_v6  ;;  %v1026_v4 = vsel %vm1024_vm3, %v1021_v5, %v3602_v62  ;;  %v4350_v32 = vsub.s32 2, %v4024_v48  ;;  %v4355_v27 = vld [vmem:[%s4858_s6] sm:$0xff] }
 0x881   :  { %v1029_v57 = vpack.c.bf16 %v1026_v4, %v1025_v40 }
 0x882   :  { %v1173_v5 = vrot.slane %v4355_v27, %v4350_v32 }
 0x883   :  { %3358 = vmatprep.mubr.msk.bf16.mxu0 %vm43_vm0, %v1029_v57 }
 0x884   :  { %3359 = vmatmul.mubr.msk.bf16.vlgmr.msra.gmra.mrb[16].mxu0 %vm43_vm0, %v1030_v31  ;;  %v1180_v31 = vsub.s32 3, %v4024_v48 }
 0x957   :  { %v3360_v43 = vpop.f32.mrb[16].mxu0 }
 0x958   :  { %v1099_v23 = vpop.f32.mrb[17].mxu0  ;;  %v1108_v34 = vadd.f32 %v3360_v43, %v1034_v54 }
 0x959   :  { %v1100_v9 = vadd.f32 %v1099_v23, %v1034_v54  ;;  %v3361_v11 = vpop.f32.mrb[18].mxu0  ;;  %v1181_v23 = vrot.slane %v4355_v27, %v1180_v31 }
 0x95a   :  { %v1102_v3 = vpop.f32.mrb[19].mxu0  ;;  %v1111_v22 = vadd.f32 %v3361_v11, %v1034_v54  ;;  %v1116_v18 = vadd.f32 %v1108_v34, %v4049_v8 }
 0x95b   :  { %v1103_v12 = vadd.f32 %v1102_v3, %v1034_v54  ;;  %v1114_v13 = vadd.f32 %v1100_v9, %v4037_v0 }
 0x95c   :  { %v1124_v10 = vsel %vm43_vm0, %v1116_v18, 0.0  ;;  %v1117_v20 = vadd.f32 %v1111_v22, %v4047_v7 }
 0x95d   :  { %v1118_v14 = vsel %vm43_vm0, %v1114_v13, 0.0  ;;  %v1115_v61 = vadd.f32 %v1103_v12, %v4039_v1 }
 0x95e   :  { %1119 = vadd.xlane.f32.xlu0 %v1118_v14  ;;  %v1127_v17 = vsel %vm43_vm0, %v1117_v20, 0.0 }
 0x95f   :  { %v1121_v16 = vsel %vm43_vm0, %v1115_v61, 0.0 }
 0x960   :  { %1122 = vadd.xlane.f32.xlu1 %v1121_v16 }
 0x962   :  { %1125 = vadd.xlane.f32.xlu0 %v1124_v10 }
 0x966   :  { %1128 = vadd.xlane.f32.xlu0 %v1127_v17  ;;  %v3658_v17 = vld [vmem:[%s4857_s5] sm:$0xff]  }
 0x967   :  { %3374 = vmatprep.subr.bf16.mxu0 %v3658_v17 }
 0x968   :  { %3375 = vmatpush3.bf16.msra.mxu0 %v3658_v17 }
 0x9eb   :  { %v1120_v0 = vpop.xlane.xlu0 %1119 }
 0x9ec   :  { %v1130_v21 = vmul.f32 0.015625, %v1120_v0  ;;  %v3659_v0 = vld [vmem:[%s4857_s5 + $0x8] sm:$0xff]  }
 0x9ed   :  { %v1123_v24 = vpop.xlane.xlu1 %1122  ;;  %3376 = vmatprep.subr.bf16.mxu0 %v3659_v0 }
 0x9ee   :  { %v1134_v26 = vsub.f32 %v1114_v13, %v1130_v21  ;;  %v1131_v30 = vmul.f32 0.015625, %v1123_v24  ;;  %3377 = vmatpush3.bf16.msra.mxu0 %v3659_v0  ;;  %v3660_v21 = vld [vmem:[%s4857_s5 + $0x10] sm:$0xff]   ;;  %v3661_v24 = vld [vmem:[%s4857_s5 + $0x18] sm:$0xff]  }
 0x9ef   :  { %v1126_v1 = vpop.xlane.xlu0 %1125  ;;  %3378 = vmatprep.subr.bf16.mxu0 %v3660_v21 }
 0x9f0   :  { %v1135_v35 = vsub.f32 %v1115_v61, %v1131_v30  ;;  %v1132_v8 = vmul.f32 0.015625, %v1126_v1  ;;  %v1138_v38 = vmul.f32 %v1134_v26, %v1134_v26  ;;  %v3663_v30 = vld [vmem:[%s4857_s5 + $0x28] sm:$0xff]   ;;  %v3664_v1 = vld [vmem:[%s4857_s5 + $0x30] sm:$0xff]  }
 0x9f2   :  { %v1136_v39 = vsub.f32 %v1116_v18, %v1132_v8  ;;  %v1142_v41 = vsel %vm43_vm0, %v1138_v38, 0.0  ;;  %v1139_v15 = vmul.f32 %v1135_v35, %v1135_v35  ;;  %3379 = vmatpush3.bf16.msra.mxu0 %v3660_v21  ;;  %v1190_v8 = vsub.s32 4, %v4024_v48 }
 0x9f3   :  { %1143 = vadd.xlane.f32.xlu0 %v1142_v41  ;;  %v1129_v29 = vpop.xlane.xlu0 %1128  ;;  %3380 = vmatprep.subr.bf16.mxu0 %v3661_v24 }
 0x9f4   :  { %v1133_v7 = vmul.f32 0.015625, %v1129_v29  ;;  %v1145_v25 = vsel %vm43_vm0, %v1139_v15, 0.0  ;;  %v1140_v63 = vmul.f32 %v1136_v39, %v1136_v39  ;;  %v1191_v38 = vrot.slane %v4355_v27, %v1190_v8 }
 0x9f5   :  { %1146 = vadd.xlane.f32.xlu1 %v1145_v25 }
 0x9f6   :  { %v1137_v55 = vsub.f32 %v1117_v20, %v1133_v7  ;;  %v1148_v42 = vsel %vm43_vm0, %v1140_v63, 0.0  ;;  %3381 = vmatpush3.bf16.msra.mxu0 %v3661_v24  ;;  %v1311_v24 = vsub.s32 5, %v4024_v48 }
 0x9f7   :  { %1149 = vadd.xlane.f32.xlu0 %v1148_v42 }
 0x9f8   :  { %v1141_v44 = vmul.f32 %v1137_v55, %v1137_v55 }
 0x9fa   :  { %v1151_v53 = vsel %vm43_vm0, %v1141_v44, 0.0 }
 0x9fb   :  { %1152 = vadd.xlane.f32.xlu1 %v1151_v53 }
 0xa80   :  { %v1144_v45 = vpop.xlane.xlu0 %1143 }
 0xa81   :  { %v1154_v46 = vmul.f32 0.015625, %v1144_v45 }
 0xa82   :  { %v1147_v19 = vpop.xlane.xlu1 %1146 }
 0xa83   :  { %v1158_v2 = vadd.f32 1e-05, %v1154_v46  ;;  %v1155_v47 = vmul.f32 0.015625, %v1147_v19 }
 0xa84   :  { %v1150_v49 = vpop.xlane.xlu0 %1149 }
 0xa85   :  { %3766 = vrsqrt.f32 %v1158_v2  ;;  %v1159_v50 = vadd.f32 1e-05, %v1155_v47  ;;  %v1156_v52 = vmul.f32 0.015625, %v1150_v49 }
 0xa87   :  { %3768 = vrsqrt.f32 %v1159_v50  ;;  %v1160_v58 = vadd.f32 1e-05, %v1156_v52 }
 0xa88   :  { %v1153_v62 = vpop.xlane.xlu1 %1152 }
 0xa89   :  { %3770 = vrsqrt.f32 %v1160_v58  ;;  %v1157_v6 = vmul.f32 0.015625, %v1153_v62 }
 0xa8b   :  { %v1161_v60 = vadd.f32 1e-05, %v1157_v6 }
 0xa8d   :  { %3772 = vrsqrt.f32 %v1161_v60 }
 0xa8f   :  { %v3767_v40 = vpop.eup %3766 }
 0xa90   :  { %v1166_v4 = vmul.f32 %v3767_v40, %v1134_v26  ;;  %v3662_v26 = vld [vmem:[%s4857_s5 + $0x20] sm:$0xff]  }
 0xa91   :  { %v3769_v57 = vpop.eup %3768  ;;  %3382 = vmatprep.subr.bf16.mxu0 %v3662_v26 }
 0xa92   :  { %v1167_v54 = vmul.f32 %v3769_v57, %v1135_v35  ;;  %v1174_v43 = vmul.f32 %v1173_v5, %v1166_v4  ;;  %3383 = vmatpush3.bf16.msra.mxu0 %v3662_v26  ;;  %v3665_v35 = vld [vmem:[%s4857_s5 + $0x38] sm:$0xff]   ;;  %v1312_v26 = vrot.slane %v4355_v27, %v1311_v24 }
 0xa93   :  { %v3771_v34 = vpop.eup %3770  ;;  %3384 = vmatprep.subr.bf16.mxu0 %v3663_v30 }
 0xa94   :  { %v1168_v9 = vmul.f32 %v3771_v34, %v1136_v39  ;;  %v1175_v11 = vmul.f32 %v1173_v5, %v1167_v54  ;;  %v4363_v3 = vadd.f32 %v1181_v23, %v1174_v43 }
 0xa96   :  { %v4365_v12 = vadd.f32 %v1181_v23, %v1175_v11  ;;  %v1176_v22 = vmul.f32 %v1173_v5, %v1168_v9  ;;  %3385 = vmatpush3.bf16.msra.mxu0 %v3663_v30 }
 0xa97   :  { %v3773_v13 = vpop.eup %3772  ;;  %3386 = vmatprep.subr.bf16.mxu0 %v3664_v1 }
 0xa98   :  { %v1169_v14 = vmul.f32 %v3773_v13, %v1137_v55  ;;  %v1186_v61 = vpack.c.bf16 %v4365_v12, %v4363_v3  ;;  %v4370_v16 = vadd.f32 %v1181_v23, %v1176_v22 }
 0xa9a   :  { %v1177_v18 = vmul.f32 %v1173_v5, %v1169_v14  ;;  %3370 = vmatprep.mubr.msk.bf16.mxu1 %vm43_vm0, %v1186_v61  ;;  %3387 = vmatpush3.bf16.msra.mxu0 %v3664_v1 }
 0xa9b   :  { %3388 = vmatprep.subr.bf16.mxu0 %v3665_v35 }
 0xa9c   :  { %v4372_v10 = vadd.f32 %v1181_v23, %v1177_v18 }
 0xa9e   :  { %v1187_v20 = vpack.c.bf16 %v4372_v10, %v4370_v16  ;;  %3389 = vmatpush3.bf16.msra.mxu0 %v3665_v35 }
 0xaa0   :  { %3371 = vmatmul.mubr.msk.bf16.vlgmr.msra.gmra.mrb[24].mxu1 %vm43_vm0, %v1187_v20 }
 0xaa1   :  { %1617 = vmatprep.mubr.bf16.mxu1 %v3909_v33 }
 0xb73   :  { %v3372_v39 = vpop.f32.mrb[24].mxu1 }
 0xb74   :  { %v1265_v41 = vadd.f32 %v3372_v39, %v1191_v38  ;;  %v1256_v15 = vpop.f32.mrb[25].mxu1 }
 0xb75   :  { %v1257_v29 = vadd.f32 %v1256_v15, %v1191_v38  ;;  %v3373_v7 = vpop.f32.mrb[26].mxu1 }
 0xb76   :  { %v1277_v25 = vmul.f32 0.044715, %v1265_v41  ;;  %v1268_v63 = vadd.f32 %v3373_v7, %v1191_v38  ;;  %v1259_v55 = vpop.f32.mrb[27].mxu1  ;;  %v1273_v34 = vmul.f32 0.5, %v1265_v41 }
 0xb77   :  { %v1275_v42 = vmul.f32 0.044715, %v1257_v29  ;;  %v1260_v44 = vadd.f32 %v1259_v55, %v1191_v38  ;;  %v1271_v13 = vmul.f32 0.5, %v1257_v29 }
 0xb78   :  { %v1281_v53 = vmul.f32 %v1277_v25, %v1265_v41  ;;  %v1278_v36 = vmul.f32 0.044715, %v1268_v63  ;;  %v1274_v9 = vmul.f32 0.5, %v1268_v63 }
 0xb79   :  { %v1279_v59 = vmul.f32 %v1275_v42, %v1257_v29  ;;  %v1276_v37 = vmul.f32 0.044715, %v1260_v44  ;;  %v1272_v22 = vmul.f32 0.5, %v1260_v44 }
 0xb7a   :  { %v1285_v28 = vmul.f32 %v1281_v53, %v1265_v41  ;;  %v1282_v45 = vmul.f32 %v1278_v36, %v1268_v63 }
 0xb7b   :  { %v1283_v46 = vmul.f32 %v1279_v59, %v1257_v29  ;;  %v1280_v19 = vmul.f32 %v1276_v37, %v1260_v44 }
 0xb7c   :  { %v1289_v2 = vadd.f32 %v1285_v28, %v1265_v41  ;;  %v1286_v47 = vmul.f32 %v1282_v45, %v1268_v63 }
 0xb7d   :  { %v1284_v49 = vmul.f32 %v1280_v19, %v1260_v44  ;;  %v1287_v50 = vadd.f32 %v1283_v46, %v1257_v29 }
 0xb7e   :  { %v1293_v52 = vmul.f32 0.7978846, %v1289_v2  ;;  %v1290_v58 = vadd.f32 %v1286_v47, %v1268_v63 }
 0xb7f   :  { %v1288_v62 = vadd.f32 %v1284_v49, %v1260_v44  ;;  %v1291_v6 = vmul.f32 0.7978846, %v1287_v50 }
 0xb80   :  { %3774 = vtanh.f32 %v1293_v52  ;;  %v1294_v60 = vmul.f32 0.7978846, %v1290_v58 }
 0xb81   :  { %v1292_v5 = vmul.f32 0.7978846, %v1288_v62  ;;  %3776 = vtanh.f32 %v1291_v6 }
 0xb82   :  { %3778 = vtanh.f32 %v1294_v60 }
 0xb83   :  { %3780 = vtanh.f32 %v1292_v5 }
 0xb8a   :  { %v3775_v40 = vpop.eup %3774 }
 0xb8b   :  { %v3777_v4 = vpop.eup %3776  ;;  %v1301_v57 = vadd.f32 1.0, %v3775_v40  ;;  %v3668_v40 = vld [vmem:[%s4854_s2 + $0x44] ss:$8 sps:$4 sm:$0xff]  }
 0xb8c   :  { %v3779_v54 = vpop.eup %3778  ;;  %v1299_v43 = vadd.f32 1.0, %v3777_v4  ;;  %v3666_v4 = vld [vmem:[%s4854_s2 + $0x40] ss:$8 sps:$4 sm:$0xff]   ;;  %1585 = vmatprep.subr.bf16.mxu1 %v3668_v40 }
 0xb8d   :  { %v3781_v23 = vpop.eup %3780  ;;  %v1302_v11 = vadd.f32 1.0, %v3779_v54  ;;  %v1305_v61 = vmul.f32 %v1301_v57, %v1273_v34  ;;  %1586 = vmatpush1.bf16.msra.mxu1 %v3666_v4  ;;  %v3671_v57 = vld [vmem:[%s4854_s2 + $0x54] ss:$8 sps:$4 sm:$0xff]   ;;  %v3669_v54 = vld [vmem:[%s4854_s2 + $0x50] ss:$8 sps:$4 sm:$0xff]  }
 0xb8e   :  { %v1300_v14 = vadd.f32 1.0, %v3781_v23  ;;  %v1303_v20 = vmul.f32 %v1299_v43, %v1271_v13  ;;  %1587 = vmatprep.subr.bf16.mxu1 %v3671_v57  ;;  %v3674_v43 = vld [vmem:[%s4854_s2 + $0x64] ss:$8 sps:$4 sm:$0xff]   ;;  %v3672_v23 = vld [vmem:[%s4854_s2 + $0x60] ss:$8 sps:$4 sm:$0xff]  }
 0xb8f   :  { %v1306_v18 = vmul.f32 %v1302_v11, %v1274_v9  ;;  %v3677_v34 = vld [vmem:[%s4854_s2 + $0x74] ss:$8 sps:$4 sm:$0xff]   ;;  %v3675_v9 = vld [vmem:[%s4854_s2 + $0x70] ss:$8 sps:$4 sm:$0xff]  }
 0xb90   :  { %v1304_v17 = vmul.f32 %v1300_v14, %v1272_v22 }
 0xb91   :  { %v1308_v0 = vpack.c.bf16 %v1306_v18, %v1305_v61  ;;  %1588 = vmatpush1.bf16.msra.mxu1 %v3669_v54 }
 0xb92   :  { %v1307_v21 = vpack.c.bf16 %v1304_v17, %v1303_v20  ;;  %1589 = vmatprep.subr.bf16.mxu1 %v3674_v43 }
 0xb94   :  { %3390 = vmatprep.mubr.bf16.mxu0 %v1307_v21 }
 0xb95   :  { %3391 = vmatmul.mubr.bf16.vlgmr.msra.gmra.mrb[20].mxu0 %v1308_v0  ;;  %1590 = vmatpush1.bf16.msra.mxu1 %v3672_v23 }
 0xb96   :  { %1591 = vmatprep.subr.bf16.mxu1 %v3677_v34 }
 0xb99   :  { %1592 = vmatpush1.bf16.msra.mxu1 %v3675_v9 }
 0xc68   :  { %v3392_v30 = vpop.f32.mrb[20].mxu0 }
 0xc69   :  { %v1395_v1 = vpop.f32.mrb[21].mxu0  ;;  %v1404_v35 = vadd.f32 %v3392_v30, %v1312_v26 }
 0xc6a   :  { %v1396_v38 = vadd.f32 %v1395_v1, %v1312_v26  ;;  %v3393_v39 = vpop.f32.mrb[22].mxu0  ;;  %v1468_v1 = vsub.s32 6, %v4024_v48 }
 0xc6b   :  { %v1398_v41 = vpop.f32.mrb[23].mxu0  ;;  %v1407_v15 = vadd.f32 %v3393_v39, %v1312_v26  ;;  %v1412_v55 = vadd.f32 %v1404_v35, %v4370_v16 }
 0xc6c   :  { %v1399_v29 = vadd.f32 %v1398_v41, %v1312_v26  ;;  %v1410_v7 = vadd.f32 %v1396_v38, %v4363_v3  ;;  %v1469_v35 = vrot.slane %v4355_v27, %v1468_v1  ;;  %v1476_v38 = vsub.s32 7, %v4024_v48  ;;  %v2927_v48 = vld [vmem:[%s4860_s8] sm:$0xff] }
 0xc6d   :  { %v1413_v44 = vadd.f32 %v1407_v15, %v4372_v10  ;;  %v1420_v53 = vsel %vm43_vm0, %v1412_v55, 0.0 }
 0xc6e   :  { %v1414_v25 = vsel %vm43_vm0, %v1410_v7, 0.0  ;;  %v1411_v63 = vadd.f32 %v1399_v29, %v4365_v12 }
 0xc6f   :  { %1415 = vadd.xlane.f32.xlu0 %v1414_v25  ;;  %v1423_v36 = vsel %vm43_vm0, %v1413_v44, 0.0  ;;  %v1477_v25 = vrot.slane %v4355_v27, %v1476_v38 }
 0xc70   :  { %v1417_v42 = vsel %vm43_vm0, %v1411_v63, 0.0 }
 0xc71   :  { %1418 = vadd.xlane.f32.xlu1 %v1417_v42 }
 0xc73   :  { %1421 = vadd.xlane.f32.xlu0 %v1420_v53 }
 0xc75   :  { %1424 = vadd.xlane.f32.xlu1 %v1423_v36 }
 0xcfc   :  { %v1416_v59 = vpop.xlane.xlu0 %1415 }
 0xcfd   :  { %v1426_v3 = vmul.f32 0.015625, %v1416_v59 }
 0xcfe   :  { %v1419_v37 = vpop.xlane.xlu1 %1418 }
 0xcff   :  { %v1430_v28 = vsub.f32 %v1410_v7, %v1426_v3  ;;  %v1427_v45 = vmul.f32 0.015625, %v1419_v37 }
 0xd00   :  { %v1422_v12 = vpop.xlane.xlu0 %1421 }
 0xd01   :  { %v1431_v46 = vsub.f32 %v1411_v63, %v1427_v45  ;;  %v1428_v16 = vmul.f32 0.015625, %v1422_v12  ;;  %v1434_v19 = vmul.f32 %v1430_v28, %v1430_v28 }
 0xd02   :  { %v1425_v2 = vpop.xlane.xlu1 %1424 }
 0xd03   :  { %v1432_v47 = vsub.f32 %v1412_v55, %v1428_v16  ;;  %v1429_v49 = vmul.f32 0.015625, %v1425_v2  ;;  %v1438_v10 = vsel %vm43_vm0, %v1434_v19, 0.0  ;;  %v1435_v50 = vmul.f32 %v1431_v46, %v1431_v46  ;;  %v3115_v16 = vld [vmem:[%s4858_s6 + $0x18] sm:$0xff] }
 0xd04   :  { %1439 = vadd.xlane.f32.xlu0 %v1438_v10  ;;  %v1538_v2 = vrot.slane %v3115_v16, %v4027_v51 }
 0xd05   :  { %v1433_v52 = vsub.f32 %v1413_v44, %v1429_v49  ;;  %v1441_v58 = vsel %vm43_vm0, %v1435_v50, 0.0  ;;  %v1436_v62 = vmul.f32 %v1432_v47, %v1432_v47 }
 0xd06   :  { %1442 = vadd.xlane.f32.xlu1 %v1441_v58 }
 0xd07   :  { %v1444_v6 = vsel %vm43_vm0, %v1436_v62, 0.0  ;;  %v1437_v60 = vmul.f32 %v1433_v52, %v1433_v52 }
 0xd08   :  { %1445 = vadd.xlane.f32.xlu0 %v1444_v6 }
 0xd09   :  { %v1447_v5 = vsel %vm43_vm0, %v1437_v60, 0.0 }
 0xd0a   :  { %1448 = vadd.xlane.f32.xlu1 %v1447_v5 }
 0xd91   :  { %v1440_v11 = vpop.xlane.xlu0 %1439 }
 0xd92   :  { %v1450_v13 = vmul.f32 0.015625, %v1440_v11 }
 0xd93   :  { %v1443_v22 = vpop.xlane.xlu1 %1442 }
 0xd94   :  { %v1454_v14 = vadd.f32 1e-05, %v1450_v13  ;;  %v1451_v61 = vmul.f32 0.015625, %v1443_v22 }
 0xd95   :  { %v1446_v18 = vpop.xlane.xlu0 %1445 }
 0xd96   :  { %3782 = vrsqrt.f32 %v1454_v14  ;;  %v1455_v20 = vadd.f32 1e-05, %v1451_v61  ;;  %v1452_v17 = vmul.f32 0.015625, %v1446_v18 }
 0xd97   :  { %v1449_v0 = vpop.xlane.xlu1 %1448 }
 0xd98   :  { %3784 = vrsqrt.f32 %v1455_v20  ;;  %v1456_v21 = vadd.f32 1e-05, %v1452_v17  ;;  %v1453_v26 = vmul.f32 0.015625, %v1449_v0 }
 0xd9a   :  { %3786 = vrsqrt.f32 %v1456_v21  ;;  %v1457_v30 = vadd.f32 1e-05, %v1453_v26 }
 0xd9c   :  { %3788 = vrsqrt.f32 %v1457_v30 }
 0xda0   :  { %v3783_v39 = vpop.eup %3782 }
 0xda1   :  { %v1462_v41 = vmul.f32 %v3783_v39, %v1430_v28 }
 0xda2   :  { %v3785_v15 = vpop.eup %3784 }
 0xda3   :  { %v1470_v29 = vmul.f32 %v1469_v35, %v1462_v41  ;;  %v1463_v7 = vmul.f32 %v3785_v15, %v1431_v46  ;;  %v4472_v46 = vld [vmem:[%s4858_s6 + $0x10] sm:$0xff] }
 0xda4   :  { %v3787_v63 = vpop.eup %3786 }
 0xda5   :  { %v1471_v55 = vmul.f32 %v1469_v35, %v1463_v7  ;;  %v1464_v44 = vmul.f32 %v3787_v63, %v1432_v47  ;;  %v4454_v36 = vadd.f32 %v1477_v25, %v1470_v29  ;;  %v4527_v29 = vld [vmem:[%s4853_s1 + $0x10] sm:$0xff] }
 0xda6   :  { %v3789_v42 = vpop.eup %3788 }
 0xda7   :  { %v1465_v53 = vmul.f32 %v3789_v42, %v1433_v52  ;;  %v4456_v59 = vadd.f32 %v1477_v25, %v1471_v55  ;;  %v1472_v28 = vmul.f32 %v1469_v35, %v1464_v44  ;;  %v4541_v44 = vld [vmem:[%s4853_s1 + $0x18] sm:$0xff] }
 0xda9   :  { %v1529_v3 = vpack.c.bf16 %v4456_v59, %v4454_v36  ;;  %v1473_v37 = vmul.f32 %v1469_v35, %v1465_v53  ;;  %v4464_v27 = vadd.f32 %v1477_v25, %v1472_v28  ;;  %v4521_v35 = vld [vmem:[%s4853_s1] sm:$0xff] }
 0xdab   :  { %3124 = vmatmul.mubr.msk.bf16.vlgmr.msra.gmra.mrb[28].mxu1 %vm43_vm0, %v1529_v3  ;;  %v4462_v45 = vadd.f32 %v1477_v25, %v1473_v37  ;;  %v4533_v25 = vld [vmem:[%s4853_s1 + $0x8] sm:$0xff] }
 0xdac   :  { %1627 = vmatprep.mubr.bf16.mxu1 %v3909_v33  ;;  %v1534_v33 = vrot.slane %v4472_v46, %v4027_v51 }
 0xdad   :  { %v1530_v12 = vpack.c.bf16 %v4462_v45, %v4464_v27 }
 0xdb3   :  { %3125 = vmatmul.mubr.msk.bf16.gmra.mrb[32].mxu1 %vm43_vm0, %v1530_v12 }
 0xe7e   :  { %v1619_v19 = vpop.f32.mrb[28].mxu1 }
 0xe7f   :  { %v1621_v47 = vpop.f32.mrb[29].mxu1  ;;  %v1620_v10 = vadd.f32 %v1619_v19, %v1534_v33 }
 0xe80   :  { %v1623_v49 = vpop.f32.mrb[30].mxu1  ;;  %v1622_v58 = vadd.f32 %v1621_v47, %v1538_v2 }
 0xe81   :  { %v1624_v50 = vadd.f32 %v1623_v49, %v1534_v33  ;;  %v1625_v52 = vpop.f32.mrb[31].mxu1 }
 0xe82   :  { %v1626_v62 = vadd.f32 %v1625_v52, %v1538_v2 }
 0xe83   :  { %v4480_v6 = vpack.c.bf16 %v1624_v50, %v1620_v10 }
 0xe84   :  { %v4482_v60 = vpack.c.bf16 %v1626_v62, %v1622_v58 }
 0xe85   :  { %1644 = vrot.lane.b32.xlu0 %v4480_v6, %s3911_s17  ;;  %3398 = vmatprep.mubr.msk.bf16.mxu1 %vm274_vm1, %v4480_v6 }
 0xe86   :  { %v1629_v5 = vpop.f32.mrb[32].mxu1  ;;  %3402 = vmatprep.subr.bf16.mxu0 %v4482_v60 }
 0xe87   :  { %v1631_v51 = vpop.f32.mrb[33].mxu1  ;;  %3403 = vmatpush3.bf16.msra.mxu0 %v4482_v60  ;;  %v1630_v4 = vadd.f32 %v1629_v5, %v1534_v33 }
 0xe88   :  { %v1633_v40 = vpop.f32.mrb[34].mxu1  ;;  %v1632_v43 = vadd.f32 %v1631_v51, %v1538_v2 }
 0xe89   :  { %v1634_v57 = vadd.f32 %v1633_v40, %v1534_v33  ;;  %1810 = vrot.lane.b32.xlu0 %v4480_v6, %s3912_s18  ;;  %v1635_v54 = vpop.f32.mrb[35].mxu1 }
 0xe8a   :  { %v1636_v23 = vadd.f32 %v1635_v54, %v1538_v2 }
 0xe8b   :  { %v4492_v34 = vpack.c.bf16 %v1634_v57, %v1630_v4 }
 0xe8c   :  { %v4494_v9 = vpack.c.bf16 %v1636_v23, %v1632_v43 }
 0xe8d   :  { %1646 = vrot.lane.b32.xlu1 %v4492_v34, %s3911_s17 }
 0xe8e   :  { %3404 = vmatprep.subr.bf16.mxu0 %v4494_v9 }
 0xe8f   :  { %3405 = vmatpush3.bf16.msra.mxu0 %v4494_v9 }
 0xe91   :  { %1814 = vrot.lane.b32.xlu1 %v4480_v6, %s3910_s0 }
 0xe95   :  { %1816 = vrot.lane.b32.xlu1 %v4492_v34, %s3910_s0 }
 0xe99   :  { %1812 = vrot.lane.b32.xlu1 %v4492_v34, %s3912_s18 }
 0xef7   :  { %v1645_v11 = vpop.permute.xlu0 %1644 }
 0xef8   :  { %v1655_v13 = vsel %vm274_vm1, %v1645_v11, 0  ;;  %3558 = vmatprep.subr.msk.bf16.mxu1 %vm274_vm1, %v1645_v11 }
 0xef9   :  { %3395 = vmatpush3.bf16.xpose.msra.mxu1 %v1655_v13 }
 0xefb   :  { %v1811_v18 = vpop.permute.xlu0 %1810 }
 0xeff   :  { %v1647_v22 = vpop.permute.xlu1 %1646 }
 0xf00   :  { %v1658_v14 = vsel %vm274_vm1, %v1647_v22, 0  ;;  %3559 = vmatprep.subr.msk.bf16.mxu1 %vm274_vm1, %v1647_v22 }
 0xf01   :  { %3397 = vmatpush3.bf16.xpose.msra.mxu1 %v1658_v14 }
 0xf03   :  { %v1815_v61 = vpop.permute.xlu1 %1814 }
 0xf04   :  { %3560 = vmatprep.subr.msk.bf16.mxu1 %vm274_vm1, %v1815_v61  ;;  %v1825_v20 = vsel %vm274_vm1, %v1815_v61, 0 }
 0xf07   :  { %v1817_v17 = vpop.permute.xlu1 %1816 }
 0xf08   :  { %3399 = vmatmul.mubr.msk.bf16.vlgmr.msra.gmra.mrb[36].mxu1 %vm274_vm1, %v4492_v34  ;;  %v1828_v0 = vsel %vm274_vm1, %v1817_v17, 0 }
 0xf09   :  { %3411 = vmatpush3.bf16.xpose.msra.mxu1 %v1825_v20  ;;  %3414 = vmatprep.mubr.msk.bf16.mxu1 %vm274_vm1, %v1811_v18 }
 0xf0a   :  { %3561 = vmatprep.subr.msk.bf16.mxu1 %vm274_vm1, %v1817_v17 }
 0xf0b   :  { %v1813_v21 = vpop.permute.xlu1 %1812 }
 0xf11   :  { %3413 = vmatpush3.bf16.xpose.msra.mxu1 %v1828_v0 }
 0xf18   :  { %3415 = vmatmul.mubr.msk.bf16.vlgmr.msra.gmra.mrb[40].mxu1 %vm274_vm1, %v1813_v21 }
 0xfdb   :  { %v3400_v26 = vpop.f32.mrb[36].mxu1 }
 0xfdc   :  { %v1694_v30 = vpop.f32.mrb[37].mxu1  ;;  %v1703_v7 = vadd.f32 %v4527_v29, %v3400_v26 }
 0xfdd   :  { %v1695_v39 = vadd.f32 %v4521_v35, %v1694_v30  ;;  %v3401_v41 = vpop.f32.mrb[38].mxu1 }
 0xfde   :  { %v1697_v15 = vpop.f32.mrb[39].mxu1  ;;  %v1706_v53 = vadd.f32 %v4541_v44, %v3401_v41  ;;  %v1715_v3 = vsel %vm336_vm2, %v1703_v7, -inf }
 0xfdf   :  { %v1698_v63 = vadd.f32 %v4533_v25, %v1697_v15  ;;  %v1709_v55 = vsel %vm336_vm2, %v1695_v39, -inf }
 0xfe0   :  { %1710 = vmax.xlane.f32.xlu0 %v1709_v55  ;;  %v1718_v37 = vsel %vm336_vm2, %v1706_v53, -inf }
 0xfe1   :  { %v1712_v42 = vsel %vm336_vm2, %v1698_v63, -inf }
 0xfe2   :  { %1713 = vmax.xlane.f32.xlu1 %v1712_v42 }
 0xfe4   :  { %1716 = vmax.xlane.f32.xlu0 %v1715_v3 }
 0xfe8   :  { %1719 = vmax.xlane.f32.xlu0 %v1718_v37 }
 0xfeb   :  { %v3416_v28 = vpop.f32.mrb[40].mxu1 }
 0xfec   :  { %v1864_v12 = vpop.f32.mrb[41].mxu1  ;;  %v1873_v2 = vadd.f32 %v4527_v29, %v3416_v28 }
 0xfed   :  { %v1865_v16 = vadd.f32 %v4521_v35, %v1864_v12  ;;  %v3417_v33 = vpop.f32.mrb[42].mxu1 }
 0xfee   :  { %v1867_v19 = vpop.f32.mrb[43].mxu1  ;;  %v1876_v10 = vadd.f32 %v4541_v44, %v3417_v33  ;;  %v1885_v52 = vsel %vm336_vm2, %v1873_v2, -inf }
 0xfef   :  { %v1868_v47 = vadd.f32 %v4533_v25, %v1867_v19  ;;  %v1879_v49 = vsel %vm336_vm2, %v1865_v16, -inf }
 0xff0   :  { %1880 = vmax.xlane.f32.xlu0 %v1879_v49  ;;  %v1888_v58 = vsel %vm336_vm2, %v1876_v10, -inf }
 0xff1   :  { %v1882_v50 = vsel %vm336_vm2, %v1868_v47, -inf }
 0xff2   :  { %1883 = vmax.xlane.f32.xlu1 %v1882_v50 }
 0xff4   :  { %1886 = vmax.xlane.f32.xlu0 %v1885_v52 }
 0xff6   :  { %1889 = vmax.xlane.f32.xlu1 %v1888_v58 }
0x106d   :  { %v1711_v62 = vpop.xlane.xlu0 %1710 }
0x106e   :  { %v1721_v5 = vsub.f32 %v1695_v39, %v1711_v62 }
0x106f   :  { %v1714_v51 = vpop.xlane.xlu1 %1713 }
0x1070   :  { %v1725_v57 = vmul.f32 1.442695, %v1721_v5  ;;  %v1722_v54 = vsub.f32 %v1698_v63, %v1714_v51 }
0x1071   :  { %v1717_v40 = vpop.xlane.xlu0 %1716 }
0x1072   :  { %v1723_v4 = vsub.f32 %v1703_v7, %v1717_v40  ;;  %v1727_v13 = vmul.f32 1.442695, %v1722_v54 }
0x1074   :  { %v1729_v43 = vmul.f32 1.442695, %v1723_v4 }
0x1075   :  { %v1720_v23 = vpop.xlane.xlu0 %1719 }
0x1076   :  { %3790 = vpow2.f32 %v1729_v43  ;;  %v1724_v11 = vsub.f32 %v1706_v53, %v1720_v23 }
0x1077   :  { %3792 = vpow2.f32 %v1725_v57 }
0x1078   :  { %v1731_v22 = vmul.f32 1.442695, %v1724_v11 }
0x107a   :  { %3794 = vpow2.f32 %v1731_v22 }
0x107b   :  { %3796 = vpow2.f32 %v1727_v13 }
0x107d   :  { %v1881_v14 = vpop.xlane.xlu0 %1880 }
0x107e   :  { %v1891_v18 = vsub.f32 %v1865_v16, %v1881_v14 }
0x107f   :  { %v1884_v37 = vpop.xlane.xlu1 %1883 }
0x1080   :  { %v3791_v61 = vpop.eup %3790  ;;  %v1895_v30 = vmul.f32 1.442695, %v1891_v18  ;;  %v1892_v16 = vsub.f32 %v1868_v47, %v1884_v37 }
0x1081   :  { %v1887_v20 = vpop.xlane.xlu0 %1886  ;;  %v1739_v17 = vsel %vm336_vm2, %v3791_v61, 0.0  ;;  %v3793_v0 = vpop.eup %3792 }
0x1082   :  { %v1893_v21 = vsub.f32 %v1873_v2, %v1887_v20  ;;  %1740 = vadd.xlane.f32.xlu0 %v1739_v17  ;;  %v1733_v41 = vsel %vm336_vm2, %v3793_v0, 0.0  ;;  %v1897_v19 = vmul.f32 1.442695, %v1892_v16 }
0x1083   :  { %v1890_v28 = vpop.xlane.xlu1 %1889 }
0x1084   :  { %v3795_v26 = vpop.eup %3794  ;;  %v1899_v39 = vmul.f32 1.442695, %v1893_v21  ;;  %v1894_v12 = vsub.f32 %v1876_v10, %v1890_v28 }
0x1085   :  { %v1742_v15 = vsel %vm336_vm2, %v3795_v26, 0.0  ;;  %v3797_v7 = vpop.eup %3796 }
0x1086   :  { %3798 = vpow2.f32 %v1899_v39  ;;  %1734 = vadd.xlane.f32.xlu0 %v1733_v41  ;;  %1743 = vadd.xlane.f32.xlu1 %v1742_v15  ;;  %v1736_v63 = vsel %vm336_vm2, %v3797_v7, 0.0  ;;  %v1901_v33 = vmul.f32 1.442695, %v1894_v12 }
0x1087   :  { %3800 = vpow2.f32 %v1895_v30 }
0x1088   :  { %3802 = vpow2.f32 %v1901_v33 }
0x1089   :  { %3804 = vpow2.f32 %v1897_v19 }
0x108a   :  { %1737 = vadd.xlane.f32.xlu1 %v1736_v63 }
0x1090   :  { %v4558_v55 = vpop.eup %3798 }
0x1091   :  { %v1909_v42 = vsel %vm336_vm2, %v4558_v55, 0.0  ;;  %v4562_v53 = vpop.eup %3800 }
0x1092   :  { %1910 = vadd.xlane.f32.xlu0 %v1909_v42  ;;  %v1903_v3 = vsel %vm336_vm2, %v4562_v53, 0.0  ;;  %v3803_v2 = vpop.eup %3802 }
0x1093   :  { %v1912_v49 = vsel %vm336_vm2, %v3803_v2, 0.0  ;;  %v3805_v50 = vpop.eup %3804 }
0x1094   :  { %v1906_v52 = vsel %vm336_vm2, %v3805_v50, 0.0 }
0x1096   :  { %1904 = vadd.xlane.f32.xlu0 %v1903_v3 }
0x109b   :  { %1929 = vrot.lane.b32.xlu1 %v4494_v9, %s3912_s18 }
0x10ac   :  { %1927 = vrot.lane.b32.xlu0 %v4482_v60, %s3912_s18 }
0x10b0   :  { %1988 = vrot.lane.b32.xlu0 %v4480_v6, %s3913_s19 }
0x10bf   :  { %1913 = vadd.xlane.f32.xlu1 %v1912_v49 }
0x10c3   :  { %1907 = vadd.xlane.f32.xlu1 %v1906_v52 }
0x10d4   :  { %1992 = vrot.lane.b32.xlu1 %v4480_v6, %s3914_s20 }
0x10d8   :  { %1994 = vrot.lane.b32.xlu1 %v4492_v34, %s3914_s20 }
0x10dc   :  { %1990 = vrot.lane.b32.xlu1 %v4492_v34, %s3913_s19 }
0x110f   :  { %v1741_v47 = vpop.xlane.xlu0 %1740 }
0x1113   :  { %v1744_v10 = vpop.xlane.xlu1 %1743  ;;  %v1735_v58 = vpop.xlane.xlu0 %1734 }
0x1114   :  { %3806 = vrcp.f32 %v1744_v10 }
0x1115   :  { %3808 = vrcp.f32 %v1735_v58 }
0x1116   :  { %3810 = vrcp.f32 %v1741_v47 }
0x1117   :  { %v1738_v62 = vpop.xlane.xlu1 %1737 }
0x1118   :  { %3812 = vrcp.f32 %v1738_v62 }
0x111b   :  { %v1930_v20 = vpop.permute.xlu1 %1929 }
0x111e   :  { %v3807_v5 = vpop.eup %3806 }
0x111f   :  { %v1911_v51 = vpop.xlane.xlu0 %1910  ;;  %v3809_v40 = vpop.eup %3808  ;;  %v1752_v54 = vmul.f32 %v3807_v5, %v3795_v26 }
0x1120   :  { %v3811_v4 = vpop.eup %3810  ;;  %v1749_v23 = vmul.f32 %v3809_v40, %v3793_v0 }
0x1121   :  { %v1751_v13 = vmul.f32 %v3811_v4, %v3791_v61 }
0x1122   :  { %v3813_v57 = vpop.eup %3812 }
0x1123   :  { %v1905_v43 = vpop.xlane.xlu0 %1904  ;;  %v1750_v11 = vmul.f32 %v3813_v57, %v3797_v7  ;;  %v1754_v14 = vpack.c.bf16 %v1752_v54, %v1751_v13 }
0x1125   :  { %v1753_v22 = vpack.c.bf16 %v1750_v11, %v1749_v23 }
0x1127   :  { %3406 = vmatprep.mubr.msk.bf16.mxu0 %vm336_vm2, %v1753_v22  ;;  %v1928_v18 = vpop.permute.xlu0 %1927 }
0x1128   :  { %3407 = vmatmul.mubr.msk.bf16.vlgmr.msra.gmra.mrb[24].mxu0 %vm336_vm2, %v1754_v14  ;;  %3418 = vmatprep.subr.bf16.mxu0 %v1928_v18 }
0x1129   :  { %3419 = vmatpush3.bf16.msra.mxu0 %v1928_v18 }
0x112a   :  { %3420 = vmatprep.subr.bf16.mxu0 %v1930_v20 }
0x112b   :  { %v1989_v37 = vpop.permute.xlu0 %1988 }
0x112d   :  { %3421 = vmatpush3.bf16.msra.mxu0 %v1930_v20 }
0x114c   :  { %v1914_v17 = vpop.xlane.xlu1 %1913 }
0x114d   :  { %3814 = vrcp.f32 %v1914_v17 }
0x114e   :  { %3816 = vrcp.f32 %v1905_v43 }
0x114f   :  { %3818 = vrcp.f32 %v1911_v51 }
0x1150   :  { %v1908_v21 = vpop.xlane.xlu1 %1907 }
0x1151   :  { %3820 = vrcp.f32 %v1908_v21 }
0x1154   :  { %v1993_v0 = vpop.permute.xlu1 %1992 }
0x1155   :  { %3562 = vmatprep.subr.msk.bf16.mxu0 %vm274_vm1, %v1993_v0  ;;  %v2003_v28 = vsel %vm274_vm1, %v1993_v0, 0 }
0x1157   :  { %v3815_v61 = vpop.eup %3814 }
0x1158   :  { %v3817_v26 = vpop.eup %3816  ;;  %v1922_v41 = vmul.f32 %v3815_v61, %v3803_v2  ;;  %v1995_v12 = vpop.permute.xlu1 %1994 }
0x1159   :  { %v3819_v30 = vpop.eup %3818  ;;  %v1919_v15 = vmul.f32 %v3817_v26, %v4562_v53  ;;  %v2006_v53 = vsel %vm274_vm1, %v1995_v12, 0 }
0x115a   :  { %v1921_v63 = vmul.f32 %v3819_v30, %v4558_v55 }
0x115b   :  { %v3821_v39 = vpop.eup %3820 }
0x115c   :  { %v1920_v7 = vmul.f32 %v3821_v39, %v3805_v50  ;;  %v1924_v3 = vpack.c.bf16 %v1922_v41, %v1921_v63  ;;  %v1991_v16 = vpop.permute.xlu1 %1990 }
0x115e   :  { %v1923_v42 = vpack.c.bf16 %v1920_v7, %v1919_v15 }
0x1160   :  { %3422 = vmatprep.mubr.msk.bf16.mxu0 %vm336_vm2, %v1923_v42 }
0x1161   :  { %3423 = vmatmul.mubr.msk.bf16.vlgmr.msra.gmra.mrb[28].mxu0 %vm336_vm2, %v1924_v3 }
0x1162   :  { %3427 = vmatpush3.bf16.xpose.msra.mxu0 %v2003_v28  ;;  %3430 = vmatprep.mubr.msk.bf16.mxu0 %vm274_vm1, %v1989_v37 }
0x1163   :  { %3563 = vmatprep.subr.msk.bf16.mxu0 %vm274_vm1, %v1995_v12 }
0x116a   :  { %3429 = vmatpush3.bf16.xpose.msra.mxu0 %v2006_v53 }
0x1171   :  { %3431 = vmatmul.mubr.msk.bf16.vlgmr.msra.gmra.mrb[32].mxu0 %vm274_vm1, %v1991_v16 }
0x11fb   :  { %v4592_v55 = vpop.f32.mrb[24].mxu0 }
0x11fc   :  { %v4594_v33 = vpop.f32.mrb[25].mxu0 }
0x11fd   :  { %v4596_v19 = vpop.f32.mrb[26].mxu0 }
0x11fe   :  { %v4598_v2 = vpop.f32.mrb[27].mxu0 }
0x1234   :  { %v4600_v49 = vpop.f32.mrb[28].mxu0 }
0x1235   :  { %v4602_v50 = vpop.f32.mrb[29].mxu0 }
0x1236   :  { %v4604_v52 = vpop.f32.mrb[30].mxu0 }
0x1237   :  { %v3613_v47 = vpack.i.bf16 %v4604_v52, %v4600_v49  ;;  %v4608_v10 = vpop.f32.mrb[31].mxu0 }
0x1238   :  { %v3608_v58 = vpack.i.bf16 %v4608_v10, %v4602_v50 }
0x1244   :  { %v3432_v62 = vpop.f32.mrb[32].mxu0 }
0x1245   :  { %v2042_v5 = vpop.f32.mrb[33].mxu0  ;;  %v2051_v57 = vadd.f32 %v4527_v29, %v3432_v62 }
0x1246   :  { %v2043_v51 = vadd.f32 %v4521_v35, %v2042_v5  ;;  %v3433_v40 = vpop.f32.mrb[34].mxu0 }
0x1247   :  { %v2045_v4 = vpop.f32.mrb[35].mxu0  ;;  %v2054_v11 = vadd.f32 %v4541_v44, %v3433_v40  ;;  %v2063_v13 = vsel %vm336_vm2, %v2051_v57, -inf }
0x1248   :  { %v2046_v54 = vadd.f32 %v4533_v25, %v2045_v4  ;;  %v2057_v43 = vsel %vm336_vm2, %v2043_v51, -inf }
0x1249   :  { %2058 = vmax.xlane.f32.xlu0 %v2057_v43  ;;  %v2066_v22 = vsel %vm336_vm2, %v2054_v11, -inf }
0x124a   :  { %v2060_v23 = vsel %vm336_vm2, %v2046_v54, -inf }
0x124b   :  { %2061 = vmax.xlane.f32.xlu1 %v2060_v23 }
0x124d   :  { %2064 = vmax.xlane.f32.xlu0 %v2063_v13 }
0x1251   :  { %2067 = vmax.xlane.f32.xlu0 %v2066_v22 }
0x125c   :  { %2105 = vrot.lane.b32.xlu1 %v4494_v9, %s3913_s19 }
0x12d6   :  { %v2059_v14 = vpop.xlane.xlu0 %2058 }
0x12d7   :  { %v2069_v18 = vsub.f32 %v2043_v51, %v2059_v14 }
0x12d8   :  { %v2062_v20 = vpop.xlane.xlu1 %2061 }
0x12d9   :  { %v2073_v0 = vmul.f32 1.442695, %v2069_v18  ;;  %v2070_v61 = vsub.f32 %v2046_v54, %v2062_v20 }
0x12da   :  { %v2065_v17 = vpop.xlane.xlu0 %2064 }
0x12db   :  { %v2071_v21 = vsub.f32 %v2051_v57, %v2065_v17  ;;  %v2075_v41 = vmul.f32 1.442695, %v2070_v61 }
0x12dc   :  { %v2106_v16 = vpop.permute.xlu1 %2105 }
0x12dd   :  { %v2077_v26 = vmul.f32 1.442695, %v2071_v21 }
0x12de   :  { %v2068_v30 = vpop.xlane.xlu0 %2067 }
0x12df   :  { %3822 = vpow2.f32 %v2077_v26  ;;  %v2072_v39 = vsub.f32 %v2054_v11, %v2068_v30 }
0x12e0   :  { %3824 = vpow2.f32 %v2073_v0 }
0x12e1   :  { %v2079_v15 = vmul.f32 1.442695, %v2072_v39 }
0x12e3   :  { %3826 = vpow2.f32 %v2079_v15 }
0x12e4   :  { %3828 = vpow2.f32 %v2075_v41 }
0x12e9   :  { %v3823_v7 = vpop.eup %3822 }
0x12ea   :  { %v2087_v63 = vsel %vm336_vm2, %v3823_v7, 0.0  ;;  %v3825_v42 = vpop.eup %3824 }
0x12eb   :  { %2088 = vadd.xlane.f32.xlu0 %v2087_v63  ;;  %v2081_v37 = vsel %vm336_vm2, %v3825_v42, 0.0 }
0x12ed   :  { %v3827_v3 = vpop.eup %3826 }
0x12ee   :  { %v2090_v28 = vsel %vm336_vm2, %v3827_v3, 0.0  ;;  %v3829_v12 = vpop.eup %3828 }
0x12ef   :  { %2082 = vadd.xlane.f32.xlu0 %v2081_v37  ;;  %2091 = vadd.xlane.f32.xlu1 %v2090_v28  ;;  %v2084_v53 = vsel %vm336_vm2, %v3829_v12, 0.0 }
0x12f3   :  { %2085 = vadd.xlane.f32.xlu1 %v2084_v53 }
0x1304   :  { %2168 = vrot.lane.b32.xlu1 %v4480_v6, %s3915_s29 }
0x1305   :  { %2103 = vrot.lane.b32.xlu0 %v4482_v60, %s3913_s19 }
0x1308   :  { %2170 = vrot.lane.b32.xlu1 %v4492_v34, %s3915_s29 }
0x1309   :  { %2164 = vrot.lane.b32.xlu0 %v4480_v6, %s3916_s30 }
0x130c   :  { %2166 = vrot.lane.b32.xlu1 %v4492_v34, %s3916_s30 }
0x1378   :  { %v2089_v62 = vpop.xlane.xlu0 %2088 }
0x137c   :  { %v2092_v5 = vpop.xlane.xlu1 %2091  ;;  %v2083_v51 = vpop.xlane.xlu0 %2082 }
0x137d   :  { %3830 = vrcp.f32 %v2092_v5 }
0x137e   :  { %3832 = vrcp.f32 %v2083_v51 }
0x137f   :  { %3834 = vrcp.f32 %v2089_v62 }
0x1380   :  { %v2086_v40 = vpop.xlane.xlu1 %2085  ;;  %v2104_v4 = vpop.permute.xlu0 %2103 }
0x1381   :  { %3836 = vrcp.f32 %v2086_v40  ;;  %3434 = vmatprep.subr.bf16.mxu1 %v2104_v4 }
0x1382   :  { %3435 = vmatpush3.bf16.msra.mxu1 %v2104_v4 }
0x1383   :  { %3436 = vmatprep.subr.bf16.mxu1 %v2106_v16 }
0x1384   :  { %v2169_v57 = vpop.permute.xlu1 %2168  ;;  %v2165_v17 = vpop.permute.xlu0 %2164 }
0x1385   :  { %v2179_v20 = vsel %vm274_vm1, %v2169_v57, 0 }
0x1386   :  { %3437 = vmatpush3.bf16.msra.mxu1 %v2106_v16 }
0x1387   :  { %3564 = vmatprep.subr.msk.bf16.mxu1 %vm274_vm1, %v2169_v57  ;;  %v3831_v6 = vpop.eup %3830 }
0x1388   :  { %v3833_v54 = vpop.eup %3832  ;;  %v2100_v23 = vmul.f32 %v3831_v6, %v3827_v3  ;;  %v2171_v21 = vpop.permute.xlu1 %2170 }
0x1389   :  { %v3835_v34 = vpop.eup %3834  ;;  %v2097_v11 = vmul.f32 %v3833_v54, %v3825_v42  ;;  %v2182_v0 = vsel %vm274_vm1, %v2171_v21, 0 }
0x138a   :  { %v2099_v22 = vmul.f32 %v3835_v34, %v3823_v7 }
0x138b   :  { %v3837_v43 = vpop.eup %3836 }
0x138c   :  { %v2098_v13 = vmul.f32 %v3837_v43, %v3829_v12  ;;  %v2102_v18 = vpack.c.bf16 %v2100_v23, %v2099_v22  ;;  %v2167_v61 = vpop.permute.xlu1 %2166 }
0x138e   :  { %v2101_v14 = vpack.c.bf16 %v2098_v13, %v2097_v11 }
0x1390   :  { %3438 = vmatprep.mubr.msk.bf16.mxu1 %vm336_vm2, %v2101_v14 }
0x1391   :  { %3439 = vmatmul.mubr.msk.bf16.vlgmr.msra.gmra.mrb[44].mxu1 %vm336_vm2, %v2102_v18 }
0x1392   :  { %3443 = vmatpush3.bf16.xpose.msra.mxu1 %v2179_v20  ;;  %3446 = vmatprep.mubr.msk.bf16.mxu1 %vm274_vm1, %v2165_v17 }
0x1393   :  { %3565 = vmatprep.subr.msk.bf16.mxu1 %vm274_vm1, %v2171_v21 }
0x139a   :  { %3445 = vmatpush3.bf16.xpose.msra.mxu1 %v2182_v0 }
0x13a1   :  { %3447 = vmatmul.mubr.msk.bf16.vlgmr.msra.gmra.mrb[48].mxu1 %vm274_vm1, %v2167_v61 }
0x1464   :  { %v3440_v26 = vpop.f32.mrb[44].mxu1 }
0x1465   :  { %v2149_v30 = vpop.f32.mrb[45].mxu1 }
0x1466   :  { %v3441_v39 = vpop.f32.mrb[46].mxu1 }
0x1467   :  { %v3623_v41 = vpack.i.bf16 %v3441_v39, %v3440_v26  ;;  %v2152_v15 = vpop.f32.mrb[47].mxu1 }
0x1468   :  { %v3618_v7 = vpack.i.bf16 %v2152_v15, %v2149_v30 }
0x1474   :  { %v3448_v63 = vpop.f32.mrb[48].mxu1 }
0x1475   :  { %v2218_v42 = vpop.f32.mrb[49].mxu1  ;;  %v2227_v12 = vadd.f32 %v4527_v29, %v3448_v63 }
0x1476   :  { %v2219_v3 = vadd.f32 %v4521_v35, %v2218_v42  ;;  %v3449_v37 = vpop.f32.mrb[50].mxu1  ;;  %v3678_v42 = vld [vmem:[%s4855_s3 + $0x20] sm:$0xff]  }
0x1477   :  { %v2221_v28 = vpop.f32.mrb[51].mxu1  ;;  %v2230_v5 = vadd.f32 %v4541_v44, %v3449_v37  ;;  %v2239_v51 = vsel %vm336_vm2, %v2227_v12, -inf  ;;  %v3680_v37 = vld [vmem:[%s4855_s3 + $0x30] sm:$0xff]  }
0x1478   :  { %v2222_v53 = vadd.f32 %v4533_v25, %v2221_v28  ;;  %v2233_v16 = vsel %vm336_vm2, %v2219_v3, -inf  ;;  %v3681_v28 = vld [vmem:[%s4855_s3 + $0x38] sm:$0xff]  }
0x1479   :  { %2234 = vmax.xlane.f32.xlu0 %v2233_v16  ;;  %v2242_v40 = vsel %vm336_vm2, %v2230_v5, -inf }
0x147a   :  { %v2236_v62 = vsel %vm336_vm2, %v2222_v53, -inf }
0x147b   :  { %2237 = vmax.xlane.f32.xlu1 %v2236_v62 }
0x147d   :  { %2240 = vmax.xlane.f32.xlu0 %v2239_v51 }
0x1481   :  { %2243 = vmax.xlane.f32.xlu0 %v2242_v40 }
0x1506   :  { %v2235_v35 = vpop.xlane.xlu0 %2234 }
0x1507   :  { %v2245_v4 = vsub.f32 %v2219_v3, %v2235_v35  ;;  %v3679_v3 = vld [vmem:[%s4855_s3 + $0x28] sm:$0xff]  }
0x1508   :  { %v2238_v57 = vpop.xlane.xlu1 %2237 }
0x1509   :  { %v2249_v25 = vmul.f32 1.442695, %v2245_v4  ;;  %v2246_v54 = vsub.f32 %v2222_v53, %v2238_v57 }
0x150a   :  { %v2241_v29 = vpop.xlane.xlu0 %2240 }
0x150b   :  { %v2247_v6 = vsub.f32 %v2227_v12, %v2241_v29  ;;  %v2251_v11 = vmul.f32 1.442695, %v2246_v54 }
0x150d   :  { %v2253_v34 = vmul.f32 1.442695, %v2247_v6 }
0x150e   :  { %v2244_v43 = vpop.xlane.xlu0 %2243 }
0x150f   :  { %3838 = vpow2.f32 %v2253_v34  ;;  %v2248_v23 = vsub.f32 %v2230_v5, %v2244_v43 }
0x1510   :  { %3840 = vpow2.f32 %v2249_v25 }
0x1511   :  { %v2255_v44 = vmul.f32 1.442695, %v2248_v23 }
0x1513   :  { %3842 = vpow2.f32 %v2255_v44 }
0x1514   :  { %3844 = vpow2.f32 %v2251_v11 }
0x1519   :  { %v3839_v13 = vpop.eup %3838 }
0x151a   :  { %v2263_v22 = vsel %vm336_vm2, %v3839_v13, 0.0  ;;  %v3841_v14 = vpop.eup %3840 }
0x151b   :  { %2264 = vadd.xlane.f32.xlu0 %v2263_v22  ;;  %v2257_v20 = vsel %vm336_vm2, %v3841_v14, 0.0 }
0x151d   :  { %v3843_v18 = vpop.eup %3842 }
0x151e   :  { %v2266_v17 = vsel %vm336_vm2, %v3843_v18, 0.0  ;;  %v3845_v21 = vpop.eup %3844 }
0x151f   :  { %2258 = vadd.xlane.f32.xlu0 %v2257_v20  ;;  %2267 = vadd.xlane.f32.xlu1 %v2266_v17  ;;  %v2260_v0 = vsel %vm336_vm2, %v3845_v21, 0.0 }
0x1523   :  { %2261 = vadd.xlane.f32.xlu1 %v2260_v0 }
0x1534   :  { %2281 = vrot.lane.b32.xlu1 %v4494_v9, %s3916_s30 }
0x1535   :  { %2279 = vrot.lane.b32.xlu0 %v4482_v60, %s3916_s30 }
0x1538   :  { %3609 = vrot.lane.b32.xlu1 %v3608_v58, %s3915_s29 }
0x1539   :  { %3619 = vrot.lane.b32.xlu0 %v3618_v7, %s3914_s20 }
0x153c   :  { %3614 = vrot.lane.b32.xlu1 %v3613_v47, %s3915_s29 }
0x1540   :  { %3624 = vrot.lane.b32.xlu1 %v3623_v41, %s3914_s20 }
0x15a8   :  { %v2265_v61 = vpop.xlane.xlu0 %2264 }
0x15ac   :  { %v2268_v26 = vpop.xlane.xlu1 %2267  ;;  %v2259_v9 = vpop.xlane.xlu0 %2258 }
0x15ad   :  { %3846 = vrcp.f32 %v2268_v26 }
0x15ae   :  { %3848 = vrcp.f32 %v2259_v9 }
0x15af   :  { %3850 = vrcp.f32 %v2265_v61 }
0x15b0   :  { %v2262_v60 = vpop.xlane.xlu1 %2261  ;;  %v2280_v30 = vpop.permute.xlu0 %2279 }
0x15b1   :  { %3852 = vrcp.f32 %v2262_v60  ;;  %3450 = vmatprep.subr.bf16.mxu0 %v2280_v30 }
0x15b2   :  { %3451 = vmatpush3.bf16.msra.mxu0 %v2280_v30 }
0x15b4   :  { %v2282_v50 = vpop.permute.xlu1 %2281  ;;  %v3620_v6 = vpop.permute.xlu0 %3619 }
0x15b5   :  { %3452 = vmatprep.subr.bf16.mxu0 %v2282_v50  ;;  %v3622_v23 = vunpack.i.h.bf16 %v3620_v6  ;;  %v3621_v11 = vunpack.i.l.bf16 %v3620_v6 }
0x15b6   :  { %3453 = vmatpush3.bf16.msra.mxu0 %v2282_v50 }
0x15b7   :  { %v3847_v10 = vpop.eup %3846  ;;  %3458 = vmatprep.subr.bf16.mxu0 %v3678_v42 }
0x15b8   :  { %v3849_v58 = vpop.eup %3848  ;;  %v2276_v47 = vmul.f32 %v3847_v10, %v3843_v18  ;;  %v3610_v40 = vpop.permute.xlu1 %3609 }
0x15b9   :  { %v3851_v49 = vpop.eup %3850  ;;  %v2273_v39 = vmul.f32 %v3849_v58, %v3841_v14  ;;  %v3612_v57 = vunpack.i.h.bf16 %v3610_v40  ;;  %v3611_v29 = vunpack.i.l.bf16 %v3610_v40  ;;  %v2405_v58 = vrot.slane %v4472_v46, %v4034_v56 }
0x15ba   :  { %v2275_v15 = vmul.f32 %v3851_v49, %v3839_v13 }
0x15bb   :  { %v3853_v52 = vpop.eup %3852  ;;  %v2389_v44 = vsel %vm274_vm1, %v4598_v2, %v3612_v57  ;;  %v2388_v13 = vsel %vm274_vm1, %v4594_v33, %v3611_v29 }
0x15bc   :  { %v2274_v41 = vmul.f32 %v3853_v52, %v3845_v21  ;;  %v2278_v63 = vpack.c.bf16 %v2276_v47, %v2275_v15  ;;  %v3615_v35 = vpop.permute.xlu1 %3614  ;;  %v2392_v60 = vsel %vm336_vm2, %v2388_v13, %v3621_v11  ;;  %v3683_v13 = vld [vmem:[%s4856_s4 + $0x28] sm:$0xff]  }
0x15bd   :  { %v3617_v25 = vunpack.i.h.bf16 %v3615_v35  ;;  %v3616_v54 = vunpack.i.l.bf16 %v3615_v35 }
0x15be   :  { %v2277_v7 = vpack.c.bf16 %v2274_v41, %v2273_v39 }
0x15bf   :  { %v2391_v14 = vsel %vm274_vm1, %v4596_v19, %v3617_v25  ;;  %v2390_v18 = vsel %vm274_vm1, %v4592_v55, %v3616_v54  ;;  %v2393_v19 = vsel %vm336_vm2, %v2389_v44, %v3622_v23  ;;  %v3682_v44 = vld [vmem:[%s4856_s4 + $0x20] sm:$0xff]  }
0x15c0   :  { %3454 = vmatprep.mubr.msk.bf16.mxu0 %vm336_vm2, %v2277_v7  ;;  %v3625_v4 = vpop.permute.xlu1 %3624  ;;  %3470 = vmatprep.subr.bf16.mxu1 %v3682_v44 }
0x15c1   :  { %3455 = vmatmul.mubr.msk.bf16.vlgmr.msra.gmra.mrb[36].mxu0 %vm336_vm2, %v2278_v63  ;;  %v3627_v34 = vunpack.i.h.bf16 %v3625_v4  ;;  %v3626_v43 = vunpack.i.l.bf16 %v3625_v4  ;;  %3471 = vmatpush3.bf16.msra.mxu1 %v3682_v44 }
0x15c2   :  { %3459 = vmatpush3.bf16.msra.mxu0 %v3678_v42  ;;  %3472 = vmatprep.subr.bf16.mxu1 %v3683_v13 }
0x15c3   :  { %3460 = vmatprep.subr.bf16.mxu0 %v3679_v3  ;;  %v2394_v0 = vsel %vm336_vm2, %v2390_v18, %v3626_v43  ;;  %v2395_v61 = vsel %vm336_vm2, %v2391_v14, %v3627_v34  ;;  %v3685_v14 = vld [vmem:[%s4856_s4 + $0x38] sm:$0xff]  }
0x15c5   :  { %3473 = vmatpush3.bf16.msra.mxu1 %v3683_v13 }
0x15c6   :  { %3461 = vmatpush3.bf16.msra.mxu0 %v3679_v3 }
0x15c7   :  { %3462 = vmatprep.subr.bf16.mxu0 %v3680_v37 }
0x15ca   :  { %3463 = vmatpush3.bf16.msra.mxu0 %v3680_v37 }
0x15cb   :  { %3464 = vmatprep.subr.bf16.mxu0 %v3681_v28 }
0x15ce   :  { %3465 = vmatpush3.bf16.msra.mxu0 %v3681_v28 }
0x1694   :  { %v3456_v12 = vpop.f32.mrb[36].mxu0 }
0x1695   :  { %v2325_v53 = vpop.f32.mrb[37].mxu0 }
0x1696   :  { %v3457_v16 = vpop.f32.mrb[38].mxu0 }
0x1697   :  { %v3633_v62 = vpack.i.bf16 %v3457_v16, %v3456_v12  ;;  %v2328_v5 = vpop.f32.mrb[39].mxu0 }
0x1698   :  { %v3628_v51 = vpack.i.bf16 %v2328_v5, %v2325_v53 }
0x1699   :  { %3634 = vrot.lane.b32.xlu1 %v3633_v62, %s3910_s0 }
0x169a   :  { %3629 = vrot.lane.b32.xlu0 %v3628_v51, %s3910_s0 }
0x170b   :  { %v3635_v22 = vpop.permute.xlu1 %3634 }
0x170c   :  { %v3637_v20 = vunpack.i.h.bf16 %v3635_v22  ;;  %v3636_v17 = vunpack.i.l.bf16 %v3635_v22  ;;  %v3630_v21 = vpop.permute.xlu0 %3629  ;;  %v3684_v22 = vld [vmem:[%s4856_s4 + $0x30] sm:$0xff]  }
0x170d   :  { %v3632_v26 = vunpack.i.h.bf16 %v3630_v21  ;;  %v3631_v9 = vunpack.i.l.bf16 %v3630_v21  ;;  %3474 = vmatprep.subr.bf16.mxu1 %v3684_v22 }
0x170e   :  { %v2399_v2 = vsel %vm1024_vm3, %v2395_v61, %v3637_v20  ;;  %v2398_v33 = vsel %vm1024_vm3, %v2394_v0, %v3636_v17  ;;  %3475 = vmatpush3.bf16.msra.mxu1 %v3684_v22 }
0x170f   :  { %v2401_v30 = vpack.c.bf16 %v2399_v2, %v2398_v33  ;;  %v2396_v55 = vsel %vm1024_vm3, %v2392_v60, %v3631_v9  ;;  %v2397_v50 = vsel %vm1024_vm3, %v2393_v19, %v3632_v26  ;;  %3476 = vmatprep.subr.bf16.mxu1 %v3685_v14 }
0x1710   :  { %v2400_v10 = vpack.c.bf16 %v2397_v50, %v2396_v55 }
0x1712   :  { %3466 = vmatprep.mubr.msk.bf16.mxu0 %vm43_vm0, %v2400_v10  ;;  %3477 = vmatpush3.bf16.msra.mxu1 %v3685_v14 }
0x1713   :  { %3467 = vmatmul.mubr.msk.bf16.vlgmr.msra.gmra.mrb[40].mxu0 %vm43_vm0, %v2401_v30  ;;  %v4733_v30 = vld [vmem:[%s4858_s6 + $0x10] sm:$0xff] }
0x1714   :  { %v2544_v55 = vrot.slane %v4733_v30, %v4350_v32 }
0x17e6   :  { %v3468_v49 = vpop.f32.mrb[40].mxu0 }
0x17e7   :  { %v2470_v52 = vpop.f32.mrb[41].mxu0  ;;  %v2479_v47 = vadd.f32 %v3468_v49, %v2405_v58 }
0x17e8   :  { %v2471_v39 = vadd.f32 %v2470_v52, %v2405_v58  ;;  %v3469_v41 = vpop.f32.mrb[42].mxu0 }
0x17e9   :  { %v2473_v15 = vpop.f32.mrb[43].mxu0  ;;  %v2487_v42 = vadd.f32 %v2479_v47, %v4464_v27  ;;  %v2482_v3 = vadd.f32 %v3469_v41, %v2405_v58  ;;  %v2552_v47 = vrot.slane %v4733_v30, %v1180_v31 }
0x17ea   :  { %v2485_v7 = vadd.f32 %v2471_v39, %v4454_v36  ;;  %v2474_v63 = vadd.f32 %v2473_v15, %v2405_v58 }
0x17eb   :  { %v2488_v56 = vadd.f32 %v2482_v3, %v4462_v45  ;;  %v2495_v46 = vsel %vm43_vm0, %v2487_v42, 0.0 }
0x17ec   :  { %v2486_v37 = vadd.f32 %v2474_v63, %v4456_v59  ;;  %v2489_v28 = vsel %vm43_vm0, %v2485_v7, 0.0 }
0x17ed   :  { %2490 = vadd.xlane.f32.xlu0 %v2489_v28  ;;  %v2498_v53 = vsel %vm43_vm0, %v2488_v56, 0.0 }
0x17ee   :  { %v2492_v12 = vsel %vm43_vm0, %v2486_v37, 0.0 }
0x17ef   :  { %2493 = vadd.xlane.f32.xlu1 %v2492_v12 }
0x17f1   :  { %2496 = vadd.xlane.f32.xlu0 %v2495_v46 }
0x17f5   :  { %2499 = vadd.xlane.f32.xlu0 %v2498_v53  ;;  %v3686_v53 = vld [vmem:[%s4857_s5 + $0x40] sm:$0xff]  }
0x17f6   :  { %3482 = vmatprep.subr.bf16.mxu0 %v3686_v53 }
0x17f7   :  { %3483 = vmatpush3.bf16.msra.mxu0 %v3686_v53 }
0x187a   :  { %v2491_v36 = vpop.xlane.xlu0 %2490 }
0x187b   :  { %v2501_v16 = vmul.f32 0.015625, %v2491_v36  ;;  %v3687_v36 = vld [vmem:[%s4857_s5 + $0x48] sm:$0xff]  }
0x187c   :  { %v2494_v27 = vpop.xlane.xlu1 %2493  ;;  %3484 = vmatprep.subr.bf16.mxu0 %v3687_v36 }
0x187d   :  { %v2505_v62 = vsub.f32 %v2485_v7, %v2501_v16  ;;  %v2502_v5 = vmul.f32 0.015625, %v2494_v27  ;;  %3485 = vmatpush3.bf16.msra.mxu0 %v3687_v36  ;;  %v3688_v16 = vld [vmem:[%s4857_s5 + $0x50] sm:$0xff]   ;;  %v3689_v27 = vld [vmem:[%s4857_s5 + $0x58] sm:$0xff]   ;;  %v2683_v36 = vrot.slane %v4733_v30, %v1311_v24 }
0x187e   :  { %v2497_v59 = vpop.xlane.xlu0 %2496  ;;  %3486 = vmatprep.subr.bf16.mxu0 %v3688_v16 }
0x187f   :  { %v2506_v51 = vsub.f32 %v2486_v37, %v2502_v5  ;;  %v2503_v40 = vmul.f32 0.015625, %v2497_v59  ;;  %v2509_v35 = vmul.f32 %v2505_v62, %v2505_v62  ;;  %v3691_v5 = vld [vmem:[%s4857_s5 + $0x68] sm:$0xff]   ;;  %v3692_v59 = vld [vmem:[%s4857_s5 + $0x70] sm:$0xff]  }
0x1881   :  { %v2507_v4 = vsub.f32 %v2487_v42, %v2503_v40  ;;  %v2513_v57 = vsel %vm43_vm0, %v2509_v35, 0.0  ;;  %v2510_v29 = vmul.f32 %v2506_v51, %v2506_v51  ;;  %3487 = vmatpush3.bf16.msra.mxu0 %v3688_v16  ;;  %v2562_v40 = vrot.slane %v4733_v30, %v1190_v8 }
0x1882   :  { %2514 = vadd.xlane.f32.xlu0 %v2513_v57  ;;  %v2500_v45 = vpop.xlane.xlu0 %2499  ;;  %3488 = vmatprep.subr.bf16.mxu0 %v3689_v27 }
0x1883   :  { %v2504_v6 = vmul.f32 0.015625, %v2500_v45  ;;  %v2516_v25 = vsel %vm43_vm0, %v2510_v29, 0.0  ;;  %v2511_v54 = vmul.f32 %v2507_v4, %v2507_v4 }
0x1884   :  { %2517 = vadd.xlane.f32.xlu1 %v2516_v25 }
0x1885   :  { %v2508_v34 = vsub.f32 %v2488_v56, %v2504_v6  ;;  %v2519_v43 = vsel %vm43_vm0, %v2511_v54, 0.0  ;;  %3489 = vmatpush3.bf16.msra.mxu0 %v3689_v27 }
0x1886   :  { %2520 = vadd.xlane.f32.xlu0 %v2519_v43 }
0x1887   :  { %v2512_v23 = vmul.f32 %v2508_v34, %v2508_v34 }
0x1889   :  { %v2522_v11 = vsel %vm43_vm0, %v2512_v23, 0.0 }
0x188a   :  { %2523 = vadd.xlane.f32.xlu1 %v2522_v11 }
0x190f   :  { %v2515_v18 = vpop.xlane.xlu0 %2514 }
0x1910   :  { %v2525_v20 = vmul.f32 0.015625, %v2515_v18 }
0x1911   :  { %v2518_v17 = vpop.xlane.xlu1 %2517 }
0x1912   :  { %v2529_v21 = vadd.f32 1e-05, %v2525_v20  ;;  %v2526_v0 = vmul.f32 0.015625, %v2518_v17 }
0x1913   :  { %v2521_v61 = vpop.xlane.xlu0 %2520 }
0x1914   :  { %3854 = vrsqrt.f32 %v2529_v21  ;;  %v2530_v26 = vadd.f32 1e-05, %v2526_v0  ;;  %v2527_v9 = vmul.f32 0.015625, %v2521_v61 }
0x1916   :  { %3856 = vrsqrt.f32 %v2530_v26  ;;  %v2531_v2 = vadd.f32 1e-05, %v2527_v9 }
0x1917   :  { %v2524_v33 = vpop.xlane.xlu1 %2523 }
0x1918   :  { %3858 = vrsqrt.f32 %v2531_v2  ;;  %v2528_v60 = vmul.f32 0.015625, %v2524_v33 }
0x191a   :  { %v2532_v19 = vadd.f32 1e-05, %v2528_v60 }
0x191c   :  { %3860 = vrsqrt.f32 %v2532_v19 }
0x191e   :  { %v3855_v50 = vpop.eup %3854 }
0x191f   :  { %v2537_v10 = vmul.f32 %v3855_v50, %v2505_v62  ;;  %v3690_v62 = vld [vmem:[%s4857_s5 + $0x60] sm:$0xff]  }
0x1920   :  { %v3857_v58 = vpop.eup %3856  ;;  %3490 = vmatprep.subr.bf16.mxu0 %v3690_v62 }
0x1921   :  { %v2538_v49 = vmul.f32 %v3857_v58, %v2506_v51  ;;  %v2545_v52 = vmul.f32 %v2544_v55, %v2537_v10  ;;  %3491 = vmatpush3.bf16.msra.mxu0 %v3690_v62  ;;  %v3693_v51 = vld [vmem:[%s4857_s5 + $0x78] sm:$0xff]  }
0x1922   :  { %v3859_v39 = vpop.eup %3858  ;;  %3492 = vmatprep.subr.bf16.mxu0 %v3691_v5 }
0x1923   :  { %v2539_v41 = vmul.f32 %v3859_v39, %v2507_v4  ;;  %v2546_v15 = vmul.f32 %v2544_v55, %v2538_v49  ;;  %v4740_v7 = vadd.f32 %v2552_v47, %v2545_v52 }
0x1925   :  { %v4742_v63 = vadd.f32 %v2552_v47, %v2546_v15  ;;  %v2547_v3 = vmul.f32 %v2544_v55, %v2539_v41  ;;  %3493 = vmatpush3.bf16.msra.mxu0 %v3691_v5 }
0x1926   :  { %v3861_v42 = vpop.eup %3860  ;;  %3494 = vmatprep.subr.bf16.mxu0 %v3692_v59 }
0x1927   :  { %v2540_v37 = vmul.f32 %v3861_v42, %v2508_v34  ;;  %v2557_v28 = vpack.c.bf16 %v4742_v63, %v4740_v7  ;;  %v4747_v56 = vadd.f32 %v2552_v47, %v2547_v3 }
0x1929   :  { %v2548_v12 = vmul.f32 %v2544_v55, %v2540_v37  ;;  %3478 = vmatprep.mubr.msk.bf16.mxu1 %vm43_vm0, %v2557_v28  ;;  %3495 = vmatpush3.bf16.msra.mxu0 %v3692_v59 }
0x192a   :  { %3496 = vmatprep.subr.bf16.mxu0 %v3693_v51 }
0x192b   :  { %v4749_v46 = vadd.f32 %v2552_v47, %v2548_v12 }
0x192d   :  { %v2558_v31 = vpack.c.bf16 %v4749_v46, %v4747_v56  ;;  %3497 = vmatpush3.bf16.msra.mxu0 %v3693_v51 }
0x192f   :  { %3479 = vmatmul.mubr.msk.bf16.vlgmr.msra.gmra.mrb[52].mxu1 %vm43_vm0, %v2558_v31 }
0x1a02   :  { %v3480_v35 = vpop.f32.mrb[52].mxu1 }
0x1a03   :  { %v2636_v4 = vadd.f32 %v3480_v35, %v2562_v40  ;;  %v2627_v57 = vpop.f32.mrb[53].mxu1 }
0x1a04   :  { %v2628_v29 = vadd.f32 %v2627_v57, %v2562_v40  ;;  %v3481_v45 = vpop.f32.mrb[54].mxu1 }
0x1a05   :  { %v2648_v6 = vmul.f32 0.044715, %v2636_v4  ;;  %v2639_v25 = vadd.f32 %v3481_v45, %v2562_v40  ;;  %v2630_v54 = vpop.f32.mrb[55].mxu1  ;;  %v2644_v52 = vmul.f32 0.5, %v2636_v4 }
0x1a06   :  { %v2646_v34 = vmul.f32 0.044715, %v2628_v29  ;;  %v2631_v43 = vadd.f32 %v2630_v54, %v2562_v40  ;;  %v2642_v41 = vmul.f32 0.5, %v2628_v29 }
0x1a07   :  { %v2652_v23 = vmul.f32 %v2648_v6, %v2636_v4  ;;  %v2649_v11 = vmul.f32 0.044715, %v2639_v25  ;;  %v2645_v47 = vmul.f32 0.5, %v2639_v25 }
0x1a08   :  { %v2650_v44 = vmul.f32 %v2646_v34, %v2628_v29  ;;  %v2647_v13 = vmul.f32 0.044715, %v2631_v43  ;;  %v2643_v15 = vmul.f32 0.5, %v2631_v43 }
0x1a09   :  { %v2656_v22 = vmul.f32 %v2652_v23, %v2636_v4  ;;  %v2653_v14 = vmul.f32 %v2649_v11, %v2639_v25 }
0x1a0a   :  { %v2654_v18 = vmul.f32 %v2650_v44, %v2628_v29  ;;  %v2651_v20 = vmul.f32 %v2647_v13, %v2631_v43 }
0x1a0b   :  { %v2660_v17 = vadd.f32 %v2656_v22, %v2636_v4  ;;  %v2657_v8 = vmul.f32 %v2653_v14, %v2639_v25 }
0x1a0c   :  { %v2655_v21 = vmul.f32 %v2651_v20, %v2631_v43  ;;  %v2658_v0 = vadd.f32 %v2654_v18, %v2628_v29 }
0x1a0d   :  { %v2664_v61 = vmul.f32 0.7978846, %v2660_v17  ;;  %v2661_v26 = vadd.f32 %v2657_v8, %v2639_v25 }
0x1a0e   :  { %v2659_v9 = vadd.f32 %v2655_v21, %v2631_v43  ;;  %v2662_v2 = vmul.f32 0.7978846, %v2658_v0 }
0x1a0f   :  { %3862 = vtanh.f32 %v2664_v61  ;;  %v2665_v33 = vmul.f32 0.7978846, %v2661_v26 }
0x1a10   :  { %v2663_v60 = vmul.f32 0.7978846, %v2659_v9  ;;  %3864 = vtanh.f32 %v2662_v2  ;;  %v3917_v9 = vmov 0.0|0.0   ;;  %v3919_v2 = vmov 0.0  }
0x1a11   :  { %3866 = vtanh.f32 %v2665_v33  ;;  %3532 = vmatprep.subr.bf16.mxu1 %v3917_v9  ;;  %3510 = vmatprep.mubr.msk.f32.mxu1 %vm3918_vm4, %v3919_v2 }
0x1a12   :  { %3868 = vtanh.f32 %v2663_v60 }
0x1a19   :  { %v3863_v19 = vpop.eup %3862 }
0x1a1a   :  { %v3865_v55 = vpop.eup %3864  ;;  %v2672_v50 = vadd.f32 1.0, %v3863_v19 }
0x1a1b   :  { %v3867_v10 = vpop.eup %3866  ;;  %v2670_v58 = vadd.f32 1.0, %v3865_v55 }
0x1a1c   :  { %v3869_v49 = vpop.eup %3868  ;;  %v2673_v39 = vadd.f32 1.0, %v3867_v10  ;;  %v2676_v3 = vmul.f32 %v2672_v50, %v2644_v52 }
0x1a1d   :  { %v2671_v42 = vadd.f32 1.0, %v3869_v49  ;;  %v2674_v28 = vmul.f32 %v2670_v58, %v2642_v41 }
0x1a1e   :  { %v2677_v37 = vmul.f32 %v2673_v39, %v2645_v47 }
0x1a1f   :  { %v2675_v12 = vmul.f32 %v2671_v42, %v2643_v15  ;;  %v2840_v15 = vrot.slane %v4733_v30, %v1468_v1 }
0x1a20   :  { %v2679_v31 = vpack.c.bf16 %v2677_v37, %v2676_v3 }
0x1a21   :  { %v2678_v53 = vpack.c.bf16 %v2675_v12, %v2674_v28 }
0x1a23   :  { %3498 = vmatprep.mubr.bf16.mxu0 %v2678_v53 }
0x1a24   :  { %3499 = vmatmul.mubr.bf16.vlgmr.msra.gmra.mrb[44].mxu0 %v2679_v31  ;;  %v2848_v31 = vrot.slane %v4733_v30, %v1476_v38  ;;  %v2928_v38 = vld [vmem:[%s4860_s8 + $0x8] sm:$0xff] }
0x1af7   :  { %v3500_v16 = vpop.f32.mrb[44].mxu0 }
0x1af8   :  { %v2766_v27 = vpop.f32.mrb[45].mxu0  ;;  %v2775_v62 = vadd.f32 %v3500_v16, %v2683_v36 }
0x1af9   :  { %v2767_v5 = vadd.f32 %v2766_v27, %v2683_v36  ;;  %v3501_v59 = vpop.f32.mrb[46].mxu0 }
0x1afa   :  { %v2769_v51 = vpop.f32.mrb[47].mxu0  ;;  %v2778_v35 = vadd.f32 %v3501_v59, %v2683_v36  ;;  %v2783_v57 = vadd.f32 %v2775_v62, %v4747_v56 }
0x1afb   :  { %v2781_v40 = vadd.f32 %v2767_v5, %v4740_v7  ;;  %v2770_v4 = vadd.f32 %v2769_v51, %v2683_v36 }
0x1afc   :  { %v2784_v6 = vadd.f32 %v2778_v35, %v4749_v46  ;;  %v2791_v25 = vsel %vm43_vm0, %v2783_v57, 0.0 }
0x1afd   :  { %v2782_v29 = vadd.f32 %v2770_v4, %v4742_v63  ;;  %v2785_v45 = vsel %vm43_vm0, %v2781_v40, 0.0 }
0x1afe   :  { %2786 = vadd.xlane.f32.xlu0 %v2785_v45  ;;  %v2794_v54 = vsel %vm43_vm0, %v2784_v6, 0.0  ;;  %v3539_v45 = vpack.c.bf16 %v2928_v38, %v2927_v48 }
0x1aff   :  { %v2788_v24 = vsel %vm43_vm0, %v2782_v29, 0.0 }
0x1b00   :  { %2789 = vadd.xlane.f32.xlu1 %v2788_v24  ;;  %v2930_v24 = vld [vmem:[%s4860_s8 + $0x18] sm:$0xff] }
0x1b02   :  { %2792 = vadd.xlane.f32.xlu0 %v2791_v25 }
0x1b04   :  { %2795 = vadd.xlane.f32.xlu1 %v2794_v54  ;;  %v2931_v54 = vld [vmem:[%s4860_s8 + $0x20] sm:$0xff] }
0x1b8b   :  { %v2787_v7 = vpop.xlane.xlu0 %2786 }
0x1b8c   :  { %v2797_v34 = vmul.f32 0.015625, %v2787_v7  ;;  %v2932_v7 = vld [vmem:[%s4860_s8 + $0x28] sm:$0xff] }
0x1b8d   :  { %v2790_v43 = vpop.xlane.xlu1 %2789 }
0x1b8e   :  { %v2801_v56 = vsub.f32 %v2781_v40, %v2797_v34  ;;  %v2798_v23 = vmul.f32 0.015625, %v2790_v43  ;;  %v3545_v34 = vpack.c.bf16 %v2932_v7, %v2931_v54  ;;  %v2933_v43 = vld [vmem:[%s4860_s8 + $0x30] sm:$0xff] }
0x1b8f   :  { %v2793_v63 = vpop.xlane.xlu0 %2792 }
0x1b90   :  { %v2802_v11 = vsub.f32 %v2782_v29, %v2798_v23  ;;  %v2799_v44 = vmul.f32 0.015625, %v2793_v63  ;;  %v2805_v13 = vmul.f32 %v2801_v56, %v2801_v56 }
0x1b91   :  { %v2796_v22 = vpop.xlane.xlu1 %2795 }
0x1b92   :  { %v2803_v46 = vsub.f32 %v2783_v57, %v2799_v44  ;;  %v2800_v14 = vmul.f32 0.015625, %v2796_v22  ;;  %v2809_v18 = vsel %vm43_vm0, %v2805_v13, 0.0  ;;  %v2806_v20 = vmul.f32 %v2802_v11, %v2802_v11  ;;  %v3884_v57 = vld [vmem:[%s4859_s7] sm:$0x1f] }
0x1b93   :  { %2810 = vadd.xlane.f32.xlu0 %v2809_v18  ;;  %v2854_v29 = vrot.slane %v3884_v57, 3  ;;  %v2938_v44 = vrot.slane %v3884_v57, %v4350_v32 }
0x1b94   :  { %v2804_v17 = vsub.f32 %v2784_v6, %v2800_v14  ;;  %v2812_v8 = vsel %vm43_vm0, %v2806_v20, 0.0  ;;  %v2807_v21 = vmul.f32 %v2803_v46, %v2803_v46  ;;  %v2929_v6 = vld [vmem:[%s4860_s8 + $0x10] sm:$0xff] }
0x1b95   :  { %2813 = vadd.xlane.f32.xlu1 %v2812_v8  ;;  %v3542_v25 = vpack.c.bf16 %v2930_v24, %v2929_v6 }
0x1b96   :  { %v2815_v0 = vsel %vm43_vm0, %v2807_v21, 0.0  ;;  %v2808_v61 = vmul.f32 %v2804_v17, %v2804_v17 }
0x1b97   :  { %2816 = vadd.xlane.f32.xlu0 %v2815_v0 }
0x1b98   :  { %v2818_v26 = vsel %vm43_vm0, %v2808_v61, 0.0 }
0x1b99   :  { %2819 = vadd.xlane.f32.xlu1 %v2818_v26 }
0x1c20   :  { %v2811_v33 = vpop.xlane.xlu0 %2810 }
0x1c21   :  { %v2821_v60 = vmul.f32 0.015625, %v2811_v33 }
0x1c22   :  { %v2814_v19 = vpop.xlane.xlu1 %2813 }
0x1c23   :  { %v2825_v55 = vadd.f32 1e-05, %v2821_v60  ;;  %v2822_v50 = vmul.f32 0.015625, %v2814_v19 }
0x1c24   :  { %v2817_v10 = vpop.xlane.xlu0 %2816 }
0x1c25   :  { %3870 = vrsqrt.f32 %v2825_v55  ;;  %v2826_v58 = vadd.f32 1e-05, %v2822_v50  ;;  %v2823_v49 = vmul.f32 0.015625, %v2817_v10 }
0x1c26   :  { %v2820_v52 = vpop.xlane.xlu1 %2819 }
0x1c27   :  { %3872 = vrsqrt.f32 %v2826_v58  ;;  %v2827_v47 = vadd.f32 1e-05, %v2823_v49  ;;  %v2824_v39 = vmul.f32 0.015625, %v2820_v52 }
0x1c29   :  { %3874 = vrsqrt.f32 %v2827_v47  ;;  %v2828_v41 = vadd.f32 1e-05, %v2824_v39 }
0x1c2b   :  { %3876 = vrsqrt.f32 %v2828_v41 }
0x1c2f   :  { %v3871_v42 = vpop.eup %3870 }
0x1c30   :  { %v2833_v3 = vmul.f32 %v3871_v42, %v2801_v56  ;;  %v2934_v56 = vld [vmem:[%s4860_s8 + $0x38] sm:$0xff]  ;;  %s3885_s8 = scalar_lea.vmem %s3021_s26, 32 }
0x1c31   :  { %v3873_v37 = vpop.eup %3872  ;;  %v3548_v23 = vpack.c.bf16 %v2934_v56, %v2933_v43  ;;  %p3886_p0 = scmp.ne.s32.totalorder %s3021_s26, %s3885_s8  ;;  %p3891_p2 = scmp.lt.s32.totalorder %s3885_s8, %s3885_s8 }
0x1c32   :  { %v2834_v28 = vmul.f32 %v3873_v37, %v2802_v11  ;;  %v2841_v12 = vmul.f32 %v2840_v15, %v2833_v3 }
0x1c33   :  { %v3875_v53 = vpop.eup %3874  ;;  %p3892_p3 = por %p3891_p2, %p3890_p1 }
0x1c34   :  { %v2835_v36 = vmul.f32 %v3875_v53, %v2803_v46  ;;  %v2842_v16 = vmul.f32 %v2840_v15, %v2834_v28  ;;  %v2849_v5 = vadd.f32 %v2848_v31, %v2841_v12 }
0x1c35   :  { %v3877_v27 = vpop.eup %3876  ;;  %p3893_p4 = pnand %p3892_p3, %p3886_p0 }
0x1c36   :  { %v2836_v62 = vmul.f32 %v3877_v27, %v2804_v17  ;;  %v2850_v59 = vadd.f32 %v2848_v31, %v2842_v16  ;;  %v2843_v51 = vmul.f32 %v2840_v15, %v2835_v36 }
0x1c38   :  { %v3533_v40 = vpack.c.bf16 %v2850_v59, %v2849_v5  ;;  %v2844_v35 = vmul.f32 %v2840_v15, %v2836_v62  ;;  %v2851_v1 = vadd.f32 %v2848_v31, %v2843_v51 }
0x1c3a   :  { %3534 = vmatpush3.bf16.msra.mxu1 %v3533_v40  ;;  %v2852_v4 = vadd.f32 %v2848_v31, %v2844_v35 }
0x1c3b   :  { %3535 = vmatprep.subr.bf16.mxu1 %v3917_v9 }
0x1c3c   :  { %v3536_v30 = vpack.c.bf16 %v2852_v4, %v2851_v1 }
0x1c3e   :  { %3537 = vmatpush3.bf16.msra.mxu1 %v3536_v30 }
0x1c3f   :  { %3538 = vmatprep.subr.bf16.mxu1 %v3917_v9 }
0x1c41   :  { %3511 = vmatmul.mubr.msk.f32.vlgmr.msra.gmra.mrb[56].mxu1 %vm336_vm2, %v2854_v29 }
0x1c42   :  { %3540 = vmatpush3.bf16.msra.mxu1 %v3539_v45  ;;  %3529 = vmatprep.mubr.msk.f32.mxu1 %vm3918_vm4, %v3919_v2 }
0x1c43   :  { %3541 = vmatprep.subr.bf16.mxu1 %v3917_v9 }
0x1c46   :  { %3543 = vmatpush3.bf16.msra.mxu1 %v3542_v25 }
0x1c47   :  { %3544 = vmatprep.subr.bf16.mxu1 %v3917_v9 }
0x1c4a   :  { %3546 = vmatpush3.bf16.msra.mxu1 %v3545_v34 }
0x1c4b   :  { %3547 = vmatprep.subr.bf16.mxu1 %v3917_v9 }
0x1c4e   :  { %3549 = vmatpush3.bf16.msra.mxu1 %v3548_v23 }
0x1d14   :  { %v2923_v63 = vpop.f32.mrb[56].mxu1 }
0x1d15   :  { %v3512_v11 = vpop.f32.mrb[57].mxu1  ;;  %3530 = vmatmul.mubr.msk.f32.vlgmr.msra.gmra.mrb[58].mxu1 %vm43_vm0, %v2923_v63 }
0x1de8   :  { %v3008_v13 = vpop.f32.mrb[58].mxu1 }
0x1de9   :  { %v3009_v22 = vadd.f32 %v3008_v13, %v2938_v44  ;;  %v3531_v46 = vpop.f32.mrb[59].mxu1 }
0x1deb   :  { %3013 = vst.msk [vmem:[#allocation2] sm:$0x3] %vm3012_vm5, %v3009_v22 }
0x1dec   :  { %3896 = shalt.err (!%p3893_p4)
}
0x1ded   :  { %s3897_s1 = scalar_lea.hbm %s4861_s9, 32 }
0x1dee   :  { %p3898_p5 = scmp.ne.s32.totalorder %s4861_s9, %s3897_s1  ;;  %p3901_p6 = scmp.lt.u32.totalorder %s3897_s1, %s4861_s9 }
0x1df0   :  { %p3903_p7 = pnand %p3901_p6, %p3898_p5 }
0x1df2   :  { %3906 = shalt.err (!%p3903_p7)
}
0x1df3   :  { %3023 = dma.vmem_to_hbm [thread:$0]  %s3021_s26, 32, %s4861_s9, [#allocation3]  }
0x1df4   :  { %3907 = dma.done.wait [#allocation3], 32  }
0x1df5   :  { %3908 = vsyncadd [#allocation3], 4294967264 }
0x1df6   :  { %3027 = vsyncpa [#allocation3], 1 }

</bundles_post_ra>
